<compile_context>
chip_gen: v6e
topology: v6e:2x2x1
jax: 0.10.0
libtpu: 0.0.40
codegen_flags: <defaults>
</compile_context>

<pallas_src>
import functools

import jax
import jax.numpy as jnp
from jax.experimental import pallas as pl
from jax.experimental.pallas import tpu as pltpu

MID = 512                 # fixed by the module: Linear(hidden, 512) -> ReLU -> Linear(512, out)
_RESIDENT_MAX_H = 8192    # keep W1 resident (no K split) up to this padded hidden dim


def _round_up(n, m):
    return ((n + m - 1) // m) * m


def _cdiv(a, b):
    return (a + b - 1) // b


def _choose_tk(hidden, block_k, resident_max_h):
    """K-tile size: full (padded) hidden dim when W1 can stay resident, else block_k."""
    h128 = _round_up(max(hidden, 1), 128)
    if h128 <= resident_max_h:
        return h128
    assert block_k % 128 == 0
    return block_k


def _batch_tiling(batch, block_b):
    """Balanced batch tiles (avoids padding e.g. B=300 up to 512)."""
    n = _cdiv(batch, block_b)
    if n == 1 and batch >= 512:
        n = 2                                   # feed both v7x TensorCores
    tb = _round_up(_cdiv(batch, n), 8)
    return tb, tb * n, n


# --------------------------------------------------------------------------- kernels
def _probe_kernel_resident(x_ref, w1_ref, b1_ref, w2_ref, b2_ref, o_ref):
    # Whole hidden dim in one shot: x @ W1 + b1 -> ReLU -> @ W2 + b2.
    h = jnp.dot(x_ref[...], w1_ref[...], preferred_element_type=jnp.float32)
    h = jnp.maximum(h + b1_ref[...], 0.0).astype(w2_ref.dtype)
    y = jnp.dot(h, w2_ref[...], preferred_element_type=jnp.float32)
    o_ref[...] = (y + b2_ref[...]).astype(o_ref.dtype)


def _probe_kernel_ksplit(x_ref, w1_ref, b1_ref, w2_ref, b2_ref, o_ref, acc_ref):
    # Fallback for very large hidden dims: stream W1 in (tk, MID) slices and
    # accumulate x @ W1 in f32.  NOTE: correctness requires the K axis to stay
    # the *last* grid axis, marked "arbitrary", with out_specs independent of k.
    k = pl.program_id(1)

    @pl.when(k == 0)
    def _init():                                 # fold b1 into the accumulator init
        acc_ref[...] = jnp.broadcast_to(b1_ref[...], acc_ref.shape)

    acc_ref[...] += jnp.dot(x_ref[...], w1_ref[...],
                            preferred_element_type=jnp.float32)

    @pl.when(k == pl.num_programs(1) - 1)
    def _finalize():
        h = jnp.maximum(acc_ref[...], 0.0).astype(w2_ref.dtype)
        y = jnp.dot(h, w2_ref[...], preferred_element_type=jnp.float32)
        o_ref[...] = (y + b2_ref[...]).astype(o_ref.dtype)


# --------------------------------------------------------------------------- wrappers
def prepare_params(w1, b1, w2, b2, *, block_k=2048, resident_max_h=_RESIDENT_MAX_H):
    """One-time pad + bf16 cast of the parameters (hoisted out of the hot path).

    w1: (H, MID), b1: (MID,), w2: (MID, OUT), b2: (OUT,) — (in, out) layout,
    i.e. already transposed relative to PyTorch's nn.Linear (out, in) storage.
    """
    H, mid = w1.shape
    assert mid == MID and b1.shape == (MID,) and w2.shape[0] == MID
    OUT = w2.shape[1]
    tk = _choose_tk(H, block_k, resident_max_h)
    H_pad = _round_up(H, tk)
    OUT_pad = _round_up(OUT, 128)                 # lane-dense output stores
    w1p = jnp.pad(w1, ((0, H_pad - H), (0, 0))).astype(jnp.bfloat16)
    w2p = jnp.pad(w2, ((0, 0), (0, OUT_pad - OUT))).astype(jnp.bfloat16)
    b1p = b1.reshape(1, MID).astype(jnp.float32)
    b2p = jnp.pad(b2, (0, OUT_pad - OUT)).reshape(1, OUT_pad).astype(jnp.float32)
    return w1p, b1p, w2p, b2p


@functools.partial(jax.jit,
                   static_argnames=("out_dim", "block_b", "block_k", "resident_max_h"))
def siamese_probe(x, w1p, b1p, w2p, b2p, *, out_dim,
                  block_b=512, block_k=2048, resident_max_h=_RESIDENT_MAX_H):
    """Forward pass of SiameseProbe.  x: (B, H); params from prepare_params()."""
    B, H = x.shape
    tk = _choose_tk(H, block_k, resident_max_h)
    H_pad = w1p.shape[0]
    OUT_pad = w2p.shape[1]
    assert H_pad == _round_up(H, tk), "params prepared with different block_k/resident_max_h"
    assert out_dim <= OUT_pad
    out_dtype = x.dtype

    tb, B_pad, n_b = _batch_tiling(B, block_b)
    n_k = H_pad // tk

    # Activations: cast / pad only when actually needed (accepts bf16 callers,
    # no-op when batch/hidden are already aligned).
    xb = x
    if xb.dtype != jnp.bfloat16:
        xb = xb.astype(jnp.bfloat16)
    if (B_pad, H_pad) != (B, H):
        xb = jnp.pad(xb, ((0, B_pad - B), (0, H_pad - H)))

    # Cost estimate: W1 is re-streamed once per batch tile only on the K-split
    # path (constant-index blocks are fetched once on the resident path).
    out_isize = jnp.dtype(out_dtype).itemsize
    flops = 2 * B_pad * (H_pad * MID + MID * OUT_pad)
    w1_bytes = w1p.size * 2 * (n_b if n_k > 1 else 1)
    bytes_accessed = (B_pad * H_pad * 2 + w1_bytes + w2p.size * 2
                      + b1p.size * 4 + b2p.size * 4 + B_pad * OUT_pad * out_isize)

    # VMEM footprint (pipeline double-buffers every operand, plus f32
    # intermediates), with headroom; capped at 64 MiB so the limit is valid on
    # v7x.  (Constant-index operands could use pl.Buffered(1) to halve their
    # footprint on v7x, left off here for portability.)
    vmem_need = (2 * tb * tk * 2 + 2 * tk * MID * 2 + 2 * MID * 4
                 + 2 * MID * OUT_pad * 2 + 2 * OUT_pad * 4
                 + 2 * tb * OUT_pad * out_isize
                 + tb * MID * 4 + tb * OUT_pad * 4)
    if n_k > 1:
        vmem_need += tb * MID * 4
    vmem_limit = min(64 * 1024 * 1024,
                     max(int(vmem_need * 1.5) + 2 * 1024 * 1024, 16 * 1024 * 1024))

    # NOTE: for very large out_dim (OUT_pad >= ~8K) on v7x, W2's resident
    # (MID, OUT_pad) block would additionally need an N grid split; not needed
    # for the module's default out_dim=256.
    if n_k == 1:
        kernel = _probe_kernel_resident
        grid = (n_b,)
        in_specs = [
            pl.BlockSpec((tb, tk), lambda i: (i, 0)),           # x batch tile
            pl.BlockSpec((tk, MID), lambda i: (0, 0)),          # W1 (resident)
            pl.BlockSpec((1, MID), lambda i: (0, 0)),           # b1 (resident)
            pl.BlockSpec((MID, OUT_pad), lambda i: (0, 0)),     # W2 (resident)
            pl.BlockSpec((1, OUT_pad), lambda i: (0, 0)),       # b2 (resident)
        ]
        out_specs = pl.BlockSpec((tb, OUT_pad), lambda i: (i, 0))
        scratch_shapes = []
        dims = ("parallel",)
    else:
        kernel = _probe_kernel_ksplit
        # Reduction (K) axis is last and "arbitrary"; out_specs ignore k so the
        # output block stays resident while the f32 accumulator carries sums.
        grid = (n_b, n_k)
        in_specs = [
            pl.BlockSpec((tb, tk), lambda i, k: (i, k)),
            pl.BlockSpec((tk, MID), lambda i, k: (k, 0)),
            pl.BlockSpec((1, MID), lambda i, k: (0, 0)),
            pl.BlockSpec((MID, OUT_pad), lambda i, k: (0, 0)),
            pl.BlockSpec((1, OUT_pad), lambda i, k: (0, 0)),
        ]
        out_specs = pl.BlockSpec((tb, OUT_pad), lambda i, k: (i, 0))
        scratch_shapes = [pltpu.VMEM((tb, MID), jnp.float32)]
        dims = ("parallel", "arbitrary")

    out = pl.pallas_call(
        kernel,
        out_shape=jax.ShapeDtypeStruct((B_pad, OUT_pad), out_dtype),
        grid=grid,
        in_specs=in_specs,
        out_specs=out_specs,
        scratch_shapes=scratch_shapes,
        compiler_params=pltpu.CompilerParams(
            dimension_semantics=dims, vmem_limit_bytes=vmem_limit),
        cost_estimate=pl.CostEstimate(
            flops=flops, transcendentals=0, bytes_accessed=bytes_accessed),
    )(xb, w1p, b1p, w2p, b2p)

    return out[:B, :out_dim]


def init_params(key, hidden_dim, mid_dim, out_dim, dtype=jnp.float32):
    """Deterministic init mimicking nn.Linear's default U(-1/sqrt(fan_in), +)."""
    k1, k2, k3, k4 = jax.random.split(key, 4)
    bound1 = 1.0 / (hidden_dim ** 0.5)
    bound2 = 1.0 / (mid_dim ** 0.5)
    # Stored transposed relative to PyTorch: (in, out) so the kernel does x @ W.
    w1 = jax.random.uniform(k1, (hidden_dim, mid_dim), dtype, -bound1, bound1)
    b1 = jax.random.uniform(k2, (mid_dim,), dtype, -bound1, bound1)
    w2 = jax.random.uniform(k3, (mid_dim, out_dim), dtype, -bound2, bound2)
    b2 = jax.random.uniform(k4, (out_dim,), dtype, -bound2, bound2)
    return w1, b1, w2, b2


if __name__ == "__main__":
    # Small shapes consistent with the module (hidden -> 512 -> out):
    # hidden=1024, out=256; batch=300 exercises the balanced batch tiling
    # (pads to 304 rows, not 512 as before).
    B, HIDDEN, OUT = 300, 1024, 256

    key = jax.random.PRNGKey(0)
    kx, kp = jax.random.split(key)
    x = jax.random.normal(kx, (B, HIDDEN), jnp.float32)
    w1, b1, w2, b2 = init_params(kp, HIDDEN, MID, OUT)

    # Reference: same math with inputs rounded to bf16 (matching the kernel's
    # MXU inputs), accumulation in f32.
    xb = x.astype(jnp.bfloat16).astype(jnp.float32)
    w1b = w1.astype(jnp.bfloat16).astype(jnp.float32)
    w2b = w2.astype(jnp.bfloat16).astype(jnp.float32)
    ref = jnp.maximum(xb @ w1b + b1, 0.0) @ w2b + b2

    # Path 1 (default): W1 resident, single "parallel" grid axis over batch tiles.
    params = prepare_params(w1, b1, w2, b2)
    out = jax.block_until_ready(siamese_probe(x, *params, out_dim=OUT))
    assert out.shape == (B, OUT), out.shape
    err = float(jnp.max(jnp.abs(out - ref)))
    assert jnp.allclose(out, ref, atol=2e-2, rtol=2e-2), f"resident path mismatch: {err}"

    # Path 2: forced K-split (exercises the accumulator kernel used for huge H).
    params_ks = prepare_params(w1, b1, w2, b2, block_k=512, resident_max_h=0)
    out_ks = jax.block_until_ready(
        siamese_probe(x, *params_ks, out_dim=OUT, block_k=512, resident_max_h=0))
    err_ks = float(jnp.max(jnp.abs(out_ks - ref)))
    assert jnp.allclose(out_ks, ref, atol=2e-2, rtol=2e-2), f"k-split path mismatch: {err_ks}"

    print("KERNEL_OK")
</pallas_src>

<mosaic_0001>
module attributes {stable_mosaic.version = 11 : i64} {
  func.func @_probe_kernel_resident(%arg0: i32, %arg1: memref<304x1024xbf16, #tpu.memory_space<vmem>>, %arg2: memref<1024x512xbf16, #tpu.memory_space<vmem>>, %arg3: memref<1x512xf32, #tpu.memory_space<vmem>>, %arg4: memref<512x256xbf16, #tpu.memory_space<vmem>>, %arg5: memref<1x256xf32, #tpu.memory_space<vmem>>, %arg6: memref<304x256xf32, #tpu.memory_space<vmem>>) attributes {dimension_semantics = [#tpu.dimension_semantics<parallel>], iteration_bounds = array<i64: 1>, scalar_prefetch = 0 : i64, scratch_operands = 0 : i64, tpu.core_type = #tpu.core_type<tc>, window_params = [{transform_indices = @transform_0, window_bounds = array<i64: 304, 1024>}, {pipeline_mode = #tpu.pipeline_mode<synchronous>, transform_indices = @transform_1, window_bounds = array<i64: 1024, 512>}, {pipeline_mode = #tpu.pipeline_mode<synchronous>, transform_indices = @transform_2, window_bounds = array<i64: 1, 512>}, {pipeline_mode = #tpu.pipeline_mode<synchronous>, transform_indices = @transform_3, window_bounds = array<i64: 512, 256>}, {pipeline_mode = #tpu.pipeline_mode<synchronous>, transform_indices = @transform_4, window_bounds = array<i64: 1, 256>}, {transform_indices = @transform_5, window_bounds = array<i64: 304, 256>}]} {
    %c0 = arith.constant 0 : index
    %c0_0 = arith.constant 0 : index
    %0 = vector.load %arg1[%c0, %c0_0] : memref<304x1024xbf16, #tpu.memory_space<vmem>>, vector<304x1024xbf16>
    %c0_1 = arith.constant 0 : index
    %c0_2 = arith.constant 0 : index
    %1 = vector.load %arg2[%c0_1, %c0_2] : memref<1024x512xbf16, #tpu.memory_space<vmem>>, vector<1024x512xbf16>
    %cst = arith.constant dense<0.000000e+00> : vector<304x512xf32>
    %2 = tpu.matmul %0, %1, %cst {dimension_numbers = #tpu.dot_dimension_numbers<[1], [0], [0], [1], [0, 0, 1, 1], [], []>} : vector<304x1024xbf16>, vector<1024x512xbf16>, vector<304x512xf32> -> vector<304x512xf32>
    %c0_3 = arith.constant 0 : index
    %c0_4 = arith.constant 0 : index
    %3 = vector.load %arg3[%c0_3, %c0_4] : memref<1x512xf32, #tpu.memory_space<vmem>>, vector<1x512xf32>
    %4 = vector.broadcast %3 : vector<1x512xf32> to vector<304x512xf32>
    %5 = arith.addf %2, %4 : vector<304x512xf32>
    %cst_5 = arith.constant 0.000000e+00 : f32
    %6 = vector.broadcast %cst_5 : f32 to vector<304x512xf32>
    %7 = arith.maximumf %5, %6 : vector<304x512xf32>
    %8 = arith.truncf %7 : vector<304x512xf32> to vector<304x512xbf16>
    %c0_6 = arith.constant 0 : index
    %c0_7 = arith.constant 0 : index
    %9 = vector.load %arg4[%c0_6, %c0_7] : memref<512x256xbf16, #tpu.memory_space<vmem>>, vector<512x256xbf16>
    %cst_8 = arith.constant dense<0.000000e+00> : vector<304x256xf32>
    %10 = tpu.matmul %8, %9, %cst_8 {dimension_numbers = #tpu.dot_dimension_numbers<[1], [0], [0], [1], [0, 0, 1, 1], [], []>} : vector<304x512xbf16>, vector<512x256xbf16>, vector<304x256xf32> -> vector<304x256xf32>
    %c0_9 = arith.constant 0 : index
    %c0_10 = arith.constant 0 : index
    %11 = vector.load %arg5[%c0_9, %c0_10] : memref<1x256xf32, #tpu.memory_space<vmem>>, vector<1x256xf32>
    %12 = vector.broadcast %11 : vector<1x256xf32> to vector<304x256xf32>
    %13 = arith.addf %10, %12 : vector<304x256xf32>
    %c0_11 = arith.constant 0 : index
    %c0_12 = arith.constant 0 : index
    %14 = vector.load %arg6[%c0_11, %c0_12] : memref<304x256xf32, #tpu.memory_space<vmem>>, vector<304x256xf32>
    tpu.vector_store %arg6[%c0_11, %c0_12], %13 {strides = array<i32>} : memref<304x256xf32, #tpu.memory_space<vmem>>, vector<304x256xf32>,
    return
  }
  func.func @transform_0(%arg0: i32) -> (i32, i32) {
    %c0_i32 = arith.constant 0 : i32
    %c0_i32_0 = arith.constant 0 : i32
    return %arg0, %c0_i32 : i32, i32
  }
  func.func @transform_1(%arg0: i32) -> (i32, i32) {
    %c0_i32 = arith.constant 0 : i32
    %c0_i32_0 = arith.constant 0 : i32
    %c0_i32_1 = arith.constant 0 : i32
    return %c0_i32, %c0_i32_0 : i32, i32
  }
  func.func @transform_2(%arg0: i32) -> (i32, i32) {
    %c0_i32 = arith.constant 0 : i32
    %c0_i32_0 = arith.constant 0 : i32
    %c0_i32_1 = arith.constant 0 : i32
    return %c0_i32, %c0_i32_0 : i32, i32
  }
  func.func @transform_3(%arg0: i32) -> (i32, i32) {
    %c0_i32 = arith.constant 0 : i32
    %c0_i32_0 = arith.constant 0 : i32
    %c0_i32_1 = arith.constant 0 : i32
    return %c0_i32, %c0_i32_0 : i32, i32
  }
  func.func @transform_4(%arg0: i32) -> (i32, i32) {
    %c0_i32 = arith.constant 0 : i32
    %c0_i32_0 = arith.constant 0 : i32
    %c0_i32_1 = arith.constant 0 : i32
    return %c0_i32, %c0_i32_0 : i32, i32
  }
  func.func @transform_5(%arg0: i32) -> (i32, i32) {
    %c0_i32 = arith.constant 0 : i32
    %c0_i32_0 = arith.constant 0 : i32
    return %arg0, %c0_i32 : i32, i32
  }
}

</mosaic_0001>

<bundles_post_ra>
// kernel: siamese_probe.1
= control target key start
LH: loop header
LB: loop body
LE: loop exit
PB: predicated region body
PF: predicated region fallthrough
CT: control target
= control target key end

     0   :  { %s9497_s0 = inlined_call_operand.vmem [shape: bf16[304,1024], index: 0, kind: input, shape index: {}]   ;;  %s9498_s1 = inlined_call_operand.vmem [shape: bf16[1024,512], index: 1, kind: input, shape index: {}]   ;;  %s9499_s2 = inlined_call_operand.vmem [shape: f32[1,512], index: 2, kind: input, shape index: {}]   ;;  %s9500_s3 = inlined_call_operand.vmem [shape: bf16[512,256], index: 3, kind: input, shape index: {}]   ;;  %s9501_s4 = inlined_call_operand.vmem [shape: f32[1,256], index: 4, kind: input, shape index: {}]   ;;  %s9502_s5 = inlined_call_operand.hbm [shape: f32[304,256], index: 5, kind: output, shape index: {}]  }
   0x1   :  { %v5912_v0 = vld [vmem:[%s9498_s1 + $0xe4] ss:$16 sps:$4 sm:$0xff]   ;;  %v5916_v2 = vld [vmem:[%s9498_s1 + $0xe0] ss:$16 sps:$4 sm:$0xff]   ;;  %v22_v50 = vld [vmem:[%s9497_s0 + $0x8] sm:$0xff] }
   0x2   :  { %v5914_v1 = vld [vmem:[%s9498_s1 + $0x2e4] ss:$16 sps:$4 sm:$0xff]   ;;  %2491 = vmatprep.subr.bf16.mxu0 %v5912_v0  ;;  %v5917_v3 = vld [vmem:[%s9498_s1 + $0x2e0] ss:$16 sps:$4 sm:$0xff]   ;;  %v26_v51 = vld [vmem:[%s9497_s0 + $0x28] sm:$0xff] }
   0x3   :  { %2714 = vmatprep.subr.bf16.mxu1 %v5914_v1  ;;  %v5918_v4 = vld [vmem:[%s9498_s1 + $0xc4] ss:$16 sps:$4 sm:$0xff]   ;;  %2492 = vmatpush1.bf16.msra.mxu0 %v5916_v2  ;;  %v5922_v6 = vld [vmem:[%s9498_s1 + $0xc0] ss:$16 sps:$4 sm:$0xff]   ;;  %v6612_v55 = vcombine.high %v22_v50, %v26_v51 }
   0x4   :  { %2715 = vmatpush1.bf16.msra.mxu1 %v5917_v3  ;;  %v5920_v5 = vld [vmem:[%s9498_s1 + $0x2c4] ss:$16 sps:$4 sm:$0xff]   ;;  %2493 = vmatprep.subr.bf16.mxu0 %v5918_v4  ;;  %v5923_v7 = vld [vmem:[%s9498_s1 + $0x2c0] ss:$16 sps:$4 sm:$0xff]  }
   0x5   :  { %2716 = vmatprep.subr.bf16.mxu1 %v5920_v5  ;;  %v5924_v8 = vld [vmem:[%s9498_s1 + $0xa4] ss:$16 sps:$4 sm:$0xff]   ;;  %v5928_v10 = vld [vmem:[%s9498_s1 + $0xa0] ss:$16 sps:$4 sm:$0xff]   ;;  %2746 = vmatprep.mubr.bf16.mxu1 %v6612_v55 }
   0x6   :  { %v5926_v9 = vld [vmem:[%s9498_s1 + $0x2a4] ss:$16 sps:$4 sm:$0xff]   ;;  %v5929_v11 = vld [vmem:[%s9498_s1 + $0x2a0] ss:$16 sps:$4 sm:$0xff]  }
   0x7   :  { %2494 = vmatpush1.bf16.msra.mxu0 %v5922_v6  ;;  %v5930_v12 = vld [vmem:[%s9498_s1 + $0x84] ss:$16 sps:$4 sm:$0xff]   ;;  %v5934_v14 = vld [vmem:[%s9498_s1 + $0x80] ss:$16 sps:$4 sm:$0xff]  }
   0x8   :  { %2717 = vmatpush1.bf16.msra.mxu1 %v5923_v7  ;;  %2495 = vmatprep.subr.bf16.mxu0 %v5924_v8  ;;  %v5932_v13 = vld [vmem:[%s9498_s1 + $0x284] ss:$16 sps:$4 sm:$0xff]   ;;  %v5935_v15 = vld [vmem:[%s9498_s1 + $0x280] ss:$16 sps:$4 sm:$0xff]  }
   0x9   :  { %2718 = vmatprep.subr.bf16.mxu1 %v5926_v9  ;;  %v5936_v16 = vld [vmem:[%s9498_s1 + $0x64] ss:$16 sps:$4 sm:$0xff]   ;;  %v5940_v18 = vld [vmem:[%s9498_s1 + $0x60] ss:$16 sps:$4 sm:$0xff]  }
   0xa   :  { %v5938_v17 = vld [vmem:[%s9498_s1 + $0x264] ss:$16 sps:$4 sm:$0xff]   ;;  %v5941_v19 = vld [vmem:[%s9498_s1 + $0x260] ss:$16 sps:$4 sm:$0xff]  }
   0xb   :  { %2496 = vmatpush1.bf16.msra.mxu0 %v5928_v10  ;;  %v5942_v20 = vld [vmem:[%s9498_s1 + $0x44] ss:$16 sps:$4 sm:$0xff]   ;;  %v5946_v22 = vld [vmem:[%s9498_s1 + $0x40] ss:$16 sps:$4 sm:$0xff]   ;;  %v30_v10 = vld [vmem:[%s9497_s0 + $0x48] sm:$0xff] }
   0xc   :  { %2719 = vmatpush1.bf16.msra.mxu1 %v5929_v11  ;;  %2497 = vmatprep.subr.bf16.mxu0 %v5930_v12  ;;  %v5944_v21 = vld [vmem:[%s9498_s1 + $0x244] ss:$16 sps:$4 sm:$0xff]   ;;  %v5947_v23 = vld [vmem:[%s9498_s1 + $0x240] ss:$16 sps:$4 sm:$0xff]   ;;  %v34_v11 = vld [vmem:[%s9497_s0 + $0x68] sm:$0xff] }
   0xd   :  { %2720 = vmatprep.subr.bf16.mxu1 %v5932_v13  ;;  %v5948_v24 = vld [vmem:[%s9498_s1 + $0x24] ss:$16 sps:$4 sm:$0xff]   ;;  %v5952_v26 = vld [vmem:[%s9498_s1 + $0x20] ss:$16 sps:$4 sm:$0xff]   ;;  %v6678_v13 = vcombine.low %v22_v50, %v26_v51 }
   0xe   :  { %v5950_v25 = vld [vmem:[%s9498_s1 + $0x224] ss:$16 sps:$4 sm:$0xff]   ;;  %v5953_v27 = vld [vmem:[%s9498_s1 + $0x220] ss:$16 sps:$4 sm:$0xff]  }
   0xf   :  { %2498 = vmatpush1.bf16.msra.mxu0 %v5934_v14  ;;  %v5954_v28 = vld [vmem:[%s9498_s1 + $0x4] ss:$16 sps:$4 sm:$0xff]   ;;  %v5958_v30 = vld [vmem:[%s9498_s1] ss:$16 sps:$4 sm:$0xff]  }
  0x10   :  { %2721 = vmatpush1.bf16.msra.mxu1 %v5935_v15  ;;  %2499 = vmatprep.subr.bf16.mxu0 %v5936_v16  ;;  %v5956_v29 = vld [vmem:[%s9498_s1 + $0x204] ss:$16 sps:$4 sm:$0xff]   ;;  %v5959_v31 = vld [vmem:[%s9498_s1 + $0x200] ss:$16 sps:$4 sm:$0xff]  }
  0x11   :  { %2722 = vmatprep.subr.bf16.mxu1 %v5938_v17  ;;  %v5960_v32 = vld [vmem:[%s9498_s1 + $0x1e4] ss:$16 sps:$4 sm:$0xff]   ;;  %v5964_v34 = vld [vmem:[%s9498_s1 + $0x1e0] ss:$16 sps:$4 sm:$0xff]   ;;  %v6688_v17 = vcombine.high %v30_v10, %v34_v11 }
  0x12   :  { %v5962_v33 = vld [vmem:[%s9498_s1 + $0x3e4] ss:$16 sps:$4 sm:$0xff]   ;;  %v5965_v35 = vld [vmem:[%s9498_s1 + $0x3e0] ss:$16 sps:$4 sm:$0xff]  }
  0x13   :  { %2500 = vmatpush1.bf16.msra.mxu0 %v5940_v18  ;;  %v5966_v36 = vld [vmem:[%s9498_s1 + $0x1c4] ss:$16 sps:$4 sm:$0xff]   ;;  %v5970_v38 = vld [vmem:[%s9498_s1 + $0x1c0] ss:$16 sps:$4 sm:$0xff]  }
  0x14   :  { %2723 = vmatpush1.bf16.msra.mxu1 %v5941_v19  ;;  %2501 = vmatprep.subr.bf16.mxu0 %v5942_v20  ;;  %v5968_v37 = vld [vmem:[%s9498_s1 + $0x3c4] ss:$16 sps:$4 sm:$0xff]   ;;  %v5971_v39 = vld [vmem:[%s9498_s1 + $0x3c0] ss:$16 sps:$4 sm:$0xff]  }
  0x15   :  { %2724 = vmatprep.subr.bf16.mxu1 %v5944_v21  ;;  %v5972_v40 = vld [vmem:[%s9498_s1 + $0x1a4] ss:$16 sps:$4 sm:$0xff]   ;;  %v5976_v42 = vld [vmem:[%s9498_s1 + $0x1a0] ss:$16 sps:$4 sm:$0xff]  }
  0x16   :  { %v5974_v41 = vld [vmem:[%s9498_s1 + $0x3a4] ss:$16 sps:$4 sm:$0xff]   ;;  %v5977_v43 = vld [vmem:[%s9498_s1 + $0x3a0] ss:$16 sps:$4 sm:$0xff]  }
  0x17   :  { %2502 = vmatpush1.bf16.msra.mxu0 %v5946_v22  ;;  %v5978_v44 = vld [vmem:[%s9498_s1 + $0x184] ss:$16 sps:$4 sm:$0xff]   ;;  %v5982_v46 = vld [vmem:[%s9498_s1 + $0x180] ss:$16 sps:$4 sm:$0xff]  }
  0x18   :  { %2725 = vmatpush1.bf16.msra.mxu1 %v5947_v23  ;;  %2503 = vmatprep.subr.bf16.mxu0 %v5948_v24  ;;  %v5980_v45 = vld [vmem:[%s9498_s1 + $0x384] ss:$16 sps:$4 sm:$0xff]   ;;  %v5983_v47 = vld [vmem:[%s9498_s1 + $0x380] ss:$16 sps:$4 sm:$0xff]   ;;  %v38_v24 = vld [vmem:[%s9497_s0 + $0x88] sm:$0xff] }
  0x19   :  { %2726 = vmatprep.subr.bf16.mxu1 %v5950_v25  ;;  %v21_v48 = vld [vmem:[%s9497_s0] sm:$0xff]  ;;  %v42_v25 = vld [vmem:[%s9497_s0 + $0xa8] sm:$0xff] }
  0x1a   :  { %v25_v49 = vld [vmem:[%s9497_s0 + $0x20] sm:$0xff] }
  0x1b   :  { %2504 = vmatpush1.bf16.msra.mxu0 %v5952_v26  ;;  %v5984_v52 = vld [vmem:[%s9498_s1 + $0x164] ss:$16 sps:$4 sm:$0xff]   ;;  %v6607_v53 = vcombine.high %v21_v48, %v25_v49  ;;  %v5988_v56 = vld [vmem:[%s9498_s1 + $0x160] ss:$16 sps:$4 sm:$0xff]   ;;  %v6676_v12 = vcombine.low %v21_v48, %v25_v49 }
  0x1c   :  { %2727 = vmatpush1.bf16.msra.mxu1 %v5953_v27  ;;  %2505 = vmatprep.subr.bf16.mxu0 %v5954_v28  ;;  %v5986_v54 = vld [vmem:[%s9498_s1 + $0x364] ss:$16 sps:$4 sm:$0xff]   ;;  %v5989_v57 = vld [vmem:[%s9498_s1 + $0x360] ss:$16 sps:$4 sm:$0xff]  }
  0x1d   :  { %2728 = vmatprep.subr.bf16.mxu1 %v5956_v29  ;;  %2523 = vmatprep.mubr.bf16.mxu0 %v6607_v53  ;;  %v5990_v58 = vld [vmem:[%s9498_s1 + $0x144] ss:$16 sps:$4 sm:$0xff]   ;;  %v5994_v60 = vld [vmem:[%s9498_s1 + $0x140] ss:$16 sps:$4 sm:$0xff]   ;;  %v6726_v29 = vcombine.low %v30_v10, %v34_v11 }
  0x1e   :  { %v5992_v59 = vld [vmem:[%s9498_s1 + $0x344] ss:$16 sps:$4 sm:$0xff]   ;;  %v5995_v61 = vld [vmem:[%s9498_s1 + $0x340] ss:$16 sps:$4 sm:$0xff]  }
  0x1f   :  { %2506 = vmatpush1.bf16.msra.mxu0 %v5958_v30  ;;  %v5996_v62 = vld [vmem:[%s9498_s1 + $0x124] ss:$16 sps:$4 sm:$0xff]   ;;  %v6000_v0 = vld [vmem:[%s9498_s1 + $0x120] ss:$16 sps:$4 sm:$0xff]  }
  0x20   :  { %2729 = vmatpush1.bf16.msra.mxu1 %v5959_v31  ;;  %2507 = vmatprep.subr.bf16.mxu0 %v5960_v32  ;;  %v5998_v63 = vld [vmem:[%s9498_s1 + $0x324] ss:$16 sps:$4 sm:$0xff]   ;;  %v6001_v1 = vld [vmem:[%s9498_s1 + $0x320] ss:$16 sps:$4 sm:$0xff]   ;;  %v6730_v31 = vcombine.high %v38_v24, %v42_v25 }
  0x21   :  { %2730 = vmatprep.subr.bf16.mxu1 %v5962_v33  ;;  %v6002_v2 = vld [vmem:[%s9498_s1 + $0x104] ss:$16 sps:$4 sm:$0xff]   ;;  %v6006_v4 = vld [vmem:[%s9498_s1 + $0x100] ss:$16 sps:$4 sm:$0xff]  }
  0x22   :  { %v6004_v3 = vld [vmem:[%s9498_s1 + $0x304] ss:$16 sps:$4 sm:$0xff]   ;;  %v6007_v5 = vld [vmem:[%s9498_s1 + $0x300] ss:$16 sps:$4 sm:$0xff]  }
  0x23   :  { %2508 = vmatpush2.bf16.msra.mxu0 %v5964_v34  ;;  %v6010_v6 = vld [vmem:[%s9498_s1 + $0x4e4] ss:$16 sps:$4 sm:$0xff]   ;;  %v6008_v14 = vld [vmem:[%s9498_s1 + $0x4e0] ss:$16 sps:$4 sm:$0xff]  }
  0x24   :  { %2731 = vmatpush2.bf16.msra.mxu1 %v5965_v35  ;;  %2509 = vmatprep.subr.bf16.mxu0 %v5966_v36  ;;  %v6013_v7 = vld [vmem:[%s9498_s1 + $0x6e4] ss:$16 sps:$4 sm:$0xff]   ;;  %v6011_v15 = vld [vmem:[%s9498_s1 + $0x6e0] ss:$16 sps:$4 sm:$0xff]  }
  0x25   :  { %2732 = vmatprep.subr.bf16.mxu1 %v5968_v37  ;;  %v29_v8 = vld [vmem:[%s9497_s0 + $0x40] sm:$0xff] }
  0x26   :  { %v33_v9 = vld [vmem:[%s9497_s0 + $0x60] sm:$0xff] }
  0x27   :  { %2510 = vmatpush2.bf16.msra.mxu0 %v5970_v38  ;;  %v6686_v16 = vcombine.high %v29_v8, %v33_v9  ;;  %v6016_v18 = vld [vmem:[%s9498_s1 + $0x4c4] ss:$16 sps:$4 sm:$0xff]   ;;  %v6014_v19 = vld [vmem:[%s9498_s1 + $0x4c0] ss:$16 sps:$4 sm:$0xff]   ;;  %v6724_v28 = vcombine.low %v29_v8, %v33_v9  ;;  %v46_v38 = vld [vmem:[%s9497_s0 + $0xc8] sm:$0xff] }
  0x28   :  { %2733 = vmatpush2.bf16.msra.mxu1 %v5971_v39  ;;  %2511 = vmatprep.subr.bf16.mxu0 %v5972_v40  ;;  %v6017_v20 = vld [vmem:[%s9498_s1 + $0x6c0] ss:$16 sps:$4 sm:$0xff]   ;;  %v6019_v21 = vld [vmem:[%s9498_s1 + $0x6c4] ss:$16 sps:$4 sm:$0xff]   ;;  %v50_v39 = vld [vmem:[%s9497_s0 + $0xe8] sm:$0xff] }
  0x29   :  { %2734 = vmatprep.subr.bf16.mxu1 %v5974_v41  ;;  %v37_v22 = vld [vmem:[%s9497_s0 + $0x80] sm:$0xff]  ;;  %v62_v8 = vld [vmem:[%s9497_s0 + $0x148] sm:$0xff] }
  0x2a   :  { %v41_v23 = vld [vmem:[%s9497_s0 + $0xa0] sm:$0xff]  ;;  %v66_v9 = vld [vmem:[%s9497_s0 + $0x168] sm:$0xff] }
  0x2b   :  { %2512 = vmatpush2.bf16.msra.mxu0 %v5976_v42  ;;  %v6022_v26 = vld [vmem:[%s9498_s1 + $0x4a4] ss:$16 sps:$4 sm:$0xff]   ;;  %v6728_v30 = vcombine.high %v37_v22, %v41_v23  ;;  %v6020_v32 = vld [vmem:[%s9498_s1 + $0x4a0] ss:$16 sps:$4 sm:$0xff]  }
  0x2c   :  { %2735 = vmatpush2.bf16.msra.mxu1 %v5977_v43  ;;  %2513 = vmatprep.subr.bf16.mxu0 %v5978_v44  ;;  %v6025_v27 = vld [vmem:[%s9498_s1 + $0x6a4] ss:$16 sps:$4 sm:$0xff]   ;;  %v6023_v33 = vld [vmem:[%s9498_s1 + $0x6a0] ss:$16 sps:$4 sm:$0xff]   ;;  %v6772_v44 = vcombine.low %v37_v22, %v41_v23 }
  0x2d   :  { %2736 = vmatprep.subr.bf16.mxu1 %v5980_v45  ;;  %v6028_v34 = vld [vmem:[%s9498_s1 + $0x484] ss:$16 sps:$4 sm:$0xff]   ;;  %v6026_v40 = vld [vmem:[%s9498_s1 + $0x480] ss:$16 sps:$4 sm:$0xff]   ;;  %v6774_v45 = vcombine.low %v38_v24, %v42_v25 }
  0x2e   :  { %v6031_v35 = vld [vmem:[%s9498_s1 + $0x684] ss:$16 sps:$4 sm:$0xff]   ;;  %v6029_v41 = vld [vmem:[%s9498_s1 + $0x680] ss:$16 sps:$4 sm:$0xff]  }
  0x2f   :  { %2514 = vmatpush2.bf16.msra.mxu0 %v5982_v46  ;;  %v45_v36 = vld [vmem:[%s9497_s0 + $0xc0] sm:$0xff] }
  0x30   :  { %2737 = vmatpush2.bf16.msra.mxu1 %v5983_v47  ;;  %2515 = vmatprep.subr.bf16.mxu0 %v5984_v52  ;;  %v49_v37 = vld [vmem:[%s9497_s0 + $0xe0] sm:$0xff]  ;;  %v6778_v47 = vcombine.high %v46_v38, %v50_v39 }
  0x31   :  { %2738 = vmatprep.subr.bf16.mxu1 %v5986_v54  ;;  %v6034_v42 = vld [vmem:[%s9498_s1 + $0x464] ss:$16 sps:$4 sm:$0xff]   ;;  %v6776_v46 = vcombine.high %v45_v36, %v49_v37  ;;  %v6032_v48 = vld [vmem:[%s9498_s1 + $0x460] ss:$16 sps:$4 sm:$0xff]  }
  0x32   :  { %v6037_v43 = vld [vmem:[%s9498_s1 + $0x664] ss:$16 sps:$4 sm:$0xff]   ;;  %v6035_v49 = vld [vmem:[%s9498_s1 + $0x660] ss:$16 sps:$4 sm:$0xff]  }
  0x33   :  { %2516 = vmatpush2.bf16.msra.mxu0 %v5988_v56  ;;  %v6040_v50 = vld [vmem:[%s9498_s1 + $0x444] ss:$16 sps:$4 sm:$0xff]   ;;  %v54_v56 = vld [vmem:[%s9497_s0 + $0x108] sm:$0xff]  ;;  %v6050_v10 = vld [vmem:[%s9498_s1 + $0x400] ss:$16 sps:$4 sm:$0xff]  }
  0x34   :  { %2739 = vmatpush2.bf16.msra.mxu1 %v5989_v57  ;;  %2517 = vmatprep.subr.bf16.mxu0 %v5990_v58  ;;  %v6043_v51 = vld [vmem:[%s9498_s1 + $0x644] ss:$16 sps:$4 sm:$0xff]   ;;  %v58_v57 = vld [vmem:[%s9497_s0 + $0x128] sm:$0xff]  ;;  %v6038_v58 = vld [vmem:[%s9498_s1 + $0x440] ss:$16 sps:$4 sm:$0xff]  }
  0x35   :  { %2740 = vmatprep.subr.bf16.mxu1 %v5992_v59  ;;  %v53_v52 = vld [vmem:[%s9497_s0 + $0x100] sm:$0xff] }
  0x36   :  { %v57_v54 = vld [vmem:[%s9497_s0 + $0x120] sm:$0xff] }
  0x37   :  { %2518 = vmatpush2.bf16.msra.mxu0 %v5994_v60  ;;  %v6041_v59 = vld [vmem:[%s9498_s1 + $0x640] ss:$16 sps:$4 sm:$0xff]   ;;  %v6046_v60 = vld [vmem:[%s9498_s1 + $0x424] ss:$16 sps:$4 sm:$0xff]  }
  0x38   :  { %2741 = vmatpush2.bf16.msra.mxu1 %v5995_v61  ;;  %2519 = vmatprep.subr.bf16.mxu0 %v5996_v62  ;;  %v6049_v61 = vld [vmem:[%s9498_s1 + $0x624] ss:$16 sps:$4 sm:$0xff]   ;;  %v6820_v62 = vcombine.low %v45_v36, %v49_v37  ;;  %v6053_v11 = vld [vmem:[%s9498_s1 + $0x600] ss:$16 sps:$4 sm:$0xff]  }
  0x39   :  { %2742 = vmatprep.subr.bf16.mxu1 %v5998_v63  ;;  %v6822_v63 = vcombine.low %v46_v38, %v50_v39  ;;  %v6056_v22 = vld [vmem:[%s9498_s1 + $0x5e0] ss:$16 sps:$4 sm:$0xff]   ;;  %v6064_v24 = vld [vmem:[%s9498_s1 + $0x5c4] ss:$16 sps:$4 sm:$0xff]   ;;  %v6918_v39 = vcombine.low %v62_v8, %v66_v9 }
  0x3a   :  { %v6059_v23 = vld [vmem:[%s9498_s1 + $0x7e0] ss:$16 sps:$4 sm:$0xff]   ;;  %v6067_v25 = vld [vmem:[%s9498_s1 + $0x7c4] ss:$16 sps:$4 sm:$0xff]  }
  0x3b   :  { %2520 = vmatpush2.bf16.msra.mxu0 %v6000_v0  ;;  %v6824_v0 = vcombine.high %v53_v52, %v57_v54  ;;  %v6070_v36 = vld [vmem:[%s9498_s1 + $0x5a4] ss:$16 sps:$4 sm:$0xff]  }
  0x3c   :  { %2743 = vmatpush2.bf16.msra.mxu1 %v6001_v1  ;;  %2521 = vmatprep.subr.bf16.mxu0 %v6002_v2  ;;  %v6826_v1 = vcombine.high %v54_v56, %v58_v57  ;;  %v6044_v2 = vld [vmem:[%s9498_s1 + $0x420] ss:$16 sps:$4 sm:$0xff]   ;;  %v6073_v37 = vld [vmem:[%s9498_s1 + $0x7a4] ss:$16 sps:$4 sm:$0xff]  }
  0x3d   :  { %2744 = vmatprep.subr.bf16.mxu1 %v6004_v3  ;;  %v6047_v3 = vld [vmem:[%s9498_s1 + $0x620] ss:$16 sps:$4 sm:$0xff]  }
  0x3f   :  { %2522 = vmatpush2.bf16.msra.mxu0 %v6006_v4  ;;  %v6052_v4 = vld [vmem:[%s9498_s1 + $0x404] ss:$16 sps:$4 sm:$0xff]  }
  0x40   :  { %2745 = vmatpush2.bf16.msra.mxu1 %v6007_v5  ;;  %2937 = vmatprep.subr.bf16.mxu0 %v6010_v6  ;;  %v6055_v5 = vld [vmem:[%s9498_s1 + $0x604] ss:$16 sps:$4 sm:$0xff]  }
  0x41   :  { %3160 = vmatprep.subr.bf16.mxu1 %v6013_v7  ;;  %v61_v6 = vld [vmem:[%s9497_s0 + $0x140] sm:$0xff] }
  0x42   :  { %2524 = vmatmul.mubr.bf16.vlgmr.msra.gmra.mxu0 %v6676_v12  ;;  %v65_v7 = vld [vmem:[%s9497_s0 + $0x160] sm:$0xff] }
  0x43   :  { %2747 = vmatmul.mubr.bf16.vlgmr.msra.gmra.mxu1 %v6678_v13  ;;  %2938 = vmatpush1.bf16.msra.mxu0 %v6008_v14  ;;  %v6058_v14 = vld [vmem:[%s9498_s1 + $0x5e4] ss:$16 sps:$4 sm:$0xff]   ;;  %v6916_v38 = vcombine.low %v61_v6, %v65_v7 }
  0x44   :  { %3161 = vmatpush1.bf16.msra.mxu1 %v6011_v15  ;;  %2533 = vmatprep.mubr.bf16.mxu0 %v6686_v16  ;;  %v6061_v15 = vld [vmem:[%s9498_s1 + $0x7e4] ss:$16 sps:$4 sm:$0xff]  }
  0x45   :  { %2756 = vmatprep.mubr.bf16.mxu1 %v6688_v17  ;;  %2939 = vmatprep.subr.bf16.mxu0 %v6016_v18  ;;  %v6868_v18 = vcombine.low %v53_v52, %v57_v54  ;;  %v78_v52 = vld [vmem:[%s9497_s0 + $0x1c8] sm:$0xff] }
  0x46   :  { %3162 = vmatprep.subr.bf16.mxu1 %v6019_v21  ;;  %v6874_v21 = vcombine.high %v62_v8, %v66_v9  ;;  %v82_v54 = vld [vmem:[%s9497_s0 + $0x1e8] sm:$0xff]  ;;  %v85_v8 = vld [vmem:[%s9497_s0 + $0x200] sm:$0xff] }
  0x47   :  { %2940 = vmatpush1.bf16.msra.mxu0 %v6014_v19  ;;  %v6870_v19 = vcombine.low %v54_v56, %v58_v57  ;;  %v6074_v56 = vld [vmem:[%s9498_s1 + $0x580] ss:$16 sps:$4 sm:$0xff]  }
  0x48   :  { %3163 = vmatpush1.bf16.msra.mxu1 %v6017_v20  ;;  %2941 = vmatprep.subr.bf16.mxu0 %v6022_v26  ;;  %v6872_v20 = vcombine.high %v61_v6, %v65_v7  ;;  %v69_v26 = vld [vmem:[%s9497_s0 + $0x180] sm:$0xff] }
  0x49   :  { %3164 = vmatprep.subr.bf16.mxu1 %v6025_v27  ;;  %v73_v27 = vld [vmem:[%s9497_s0 + $0x1a0] sm:$0xff] }
  0x4a   :  { %2534 = vmatmul.mubr.bf16.gmra.mxu0 %v6724_v28  ;;  %v6077_v57 = vld [vmem:[%s9498_s1 + $0x780] ss:$16 sps:$4 sm:$0xff]   ;;  %v6088_v6 = vld [vmem:[%s9498_s1 + $0x544] ss:$16 sps:$4 sm:$0xff]  }
  0x4b   :  { %2757 = vmatmul.mubr.bf16.gmra.mxu1 %v6726_v29  ;;  %2543 = vmatprep.mubr.bf16.mxu0 %v6728_v30  ;;  %v6091_v7 = vld [vmem:[%s9498_s1 + $0x744] ss:$16 sps:$4 sm:$0xff]  }
  0x4c   :  { %2766 = vmatprep.mubr.bf16.mxu1 %v6730_v31  ;;  %2942 = vmatpush1.bf16.msra.mxu0 %v6020_v32  ;;  %v70_v32 = vld [vmem:[%s9497_s0 + $0x188] sm:$0xff]  ;;  %v89_v9 = vld [vmem:[%s9497_s0 + $0x220] sm:$0xff] }
  0x4d   :  { %3165 = vmatpush1.bf16.msra.mxu1 %v6023_v33  ;;  %2943 = vmatprep.subr.bf16.mxu0 %v6028_v34  ;;  %v74_v33 = vld [vmem:[%s9497_s0 + $0x1a8] sm:$0xff]  ;;  %v6062_v34 = vld [vmem:[%s9498_s1 + $0x5c0] ss:$16 sps:$4 sm:$0xff]  }
  0x4e   :  { %3166 = vmatprep.subr.bf16.mxu1 %v6031_v35  ;;  %v6065_v35 = vld [vmem:[%s9498_s1 + $0x7c0] ss:$16 sps:$4 sm:$0xff]  }
  0x50   :  { %2944 = vmatpush1.bf16.msra.mxu0 %v6026_v40  ;;  %v6920_v40 = vcombine.high %v69_v26, %v73_v27 }
  0x51   :  { %3167 = vmatpush1.bf16.msra.mxu1 %v6029_v41  ;;  %2945 = vmatprep.subr.bf16.mxu0 %v6034_v42  ;;  %v6922_v41 = vcombine.high %v70_v32, %v74_v33  ;;  %v6068_v42 = vld [vmem:[%s9498_s1 + $0x5a0] ss:$16 sps:$4 sm:$0xff]  }
  0x52   :  { %3168 = vmatprep.subr.bf16.mxu1 %v6037_v43  ;;  %2544 = vmatmul.mubr.bf16.gmra.mxu0 %v6772_v44  ;;  %v6071_v43 = vld [vmem:[%s9498_s1 + $0x7a0] ss:$16 sps:$4 sm:$0xff]  }
  0x53   :  { %2767 = vmatmul.mubr.bf16.gmra.mxu1 %v6774_v45  ;;  %2553 = vmatprep.mubr.bf16.mxu0 %v6776_v46 }
  0x54   :  { %2776 = vmatprep.mubr.bf16.mxu1 %v6778_v47  ;;  %2946 = vmatpush1.bf16.msra.mxu0 %v6032_v48  ;;  %v6076_v48 = vld [vmem:[%s9498_s1 + $0x584] ss:$16 sps:$4 sm:$0xff]  }
  0x55   :  { %3169 = vmatpush1.bf16.msra.mxu1 %v6035_v49  ;;  %2947 = vmatprep.subr.bf16.mxu0 %v6040_v50  ;;  %v6079_v49 = vld [vmem:[%s9498_s1 + $0x784] ss:$16 sps:$4 sm:$0xff]  }
  0x56   :  { %3170 = vmatprep.subr.bf16.mxu1 %v6043_v51  ;;  %v77_v50 = vld [vmem:[%s9497_s0 + $0x1c0] sm:$0xff] }
  0x57   :  { %v81_v51 = vld [vmem:[%s9497_s0 + $0x1e0] sm:$0xff] }
  0x58   :  { %2948 = vmatpush1.bf16.msra.mxu0 %v6038_v58  ;;  %v6082_v58 = vld [vmem:[%s9498_s1 + $0x564] ss:$16 sps:$4 sm:$0xff]  }
  0x59   :  { %3171 = vmatpush1.bf16.msra.mxu1 %v6041_v59  ;;  %2949 = vmatprep.subr.bf16.mxu0 %v6046_v60  ;;  %v6085_v59 = vld [vmem:[%s9498_s1 + $0x764] ss:$16 sps:$4 sm:$0xff]   ;;  %v6964_v60 = vcombine.low %v69_v26, %v73_v27  ;;  %v7016_v26 = vcombine.high %v85_v8, %v89_v9 }
  0x5a   :  { %3172 = vmatprep.subr.bf16.mxu1 %v6049_v61  ;;  %2554 = vmatmul.mubr.bf16.gmra.mxu0 %v6820_v62  ;;  %v6966_v61 = vcombine.low %v70_v32, %v74_v33  ;;  %v6092_v32 = vld [vmem:[%s9498_s1 + $0x520] ss:$16 sps:$4 sm:$0xff]  }
  0x5b   :  { %2777 = vmatmul.mubr.bf16.gmra.mxu1 %v6822_v63  ;;  %2563 = vmatprep.mubr.bf16.mxu0 %v6824_v0  ;;  %9631 = vst [vmem:[#allocation7_spill] sm:$0xff] %v7016_v26  ;;  %v6095_v33 = vld [vmem:[%s9498_s1 + $0x720] ss:$16 sps:$4 sm:$0xff]  }
  0x5c   :  { %2786 = vmatprep.mubr.bf16.mxu1 %v6826_v1  ;;  %2950 = vmatpush1.bf16.msra.mxu0 %v6044_v2  ;;  %v6968_v2 = vcombine.high %v77_v50, %v81_v51 }
  0x5d   :  { %3173 = vmatpush1.bf16.msra.mxu1 %v6047_v3  ;;  %2951 = vmatprep.subr.bf16.mxu0 %v6052_v4  ;;  %v6970_v3 = vcombine.high %v78_v52, %v82_v54  ;;  %v6080_v4 = vld [vmem:[%s9498_s1 + $0x560] ss:$16 sps:$4 sm:$0xff]  }
  0x5e   :  { %3174 = vmatprep.subr.bf16.mxu1 %v6055_v5  ;;  %v6083_v5 = vld [vmem:[%s9498_s1 + $0x760] ss:$16 sps:$4 sm:$0xff]  }
  0x60   :  { %2952 = vmatpush1.bf16.msra.mxu0 %v6050_v10  ;;  %v86_v10 = vld [vmem:[%s9497_s0 + $0x208] sm:$0xff] }
  0x61   :  { %3175 = vmatpush1.bf16.msra.mxu1 %v6053_v11  ;;  %2953 = vmatprep.subr.bf16.mxu0 %v6058_v14  ;;  %v90_v11 = vld [vmem:[%s9497_s0 + $0x228] sm:$0xff]  ;;  %v6086_v14 = vld [vmem:[%s9498_s1 + $0x540] ss:$16 sps:$4 sm:$0xff]  }
  0x62   :  { %3176 = vmatprep.subr.bf16.mxu1 %v6061_v15  ;;  %2564 = vmatmul.mubr.bf16.gmra.mxu0 %v6868_v18  ;;  %v6089_v15 = vld [vmem:[%s9498_s1 + $0x740] ss:$16 sps:$4 sm:$0xff]   ;;  %v7018_v27 = vcombine.high %v86_v10, %v90_v11 }
  0x63   :  { %2787 = vmatmul.mubr.bf16.gmra.mxu1 %v6870_v19  ;;  %2573 = vmatprep.mubr.bf16.mxu0 %v6872_v20 }
  0x64   :  { %2796 = vmatprep.mubr.bf16.mxu1 %v6874_v21  ;;  %2954 = vmatpush2.bf16.msra.mxu0 %v6056_v22  ;;  %v6094_v22 = vld [vmem:[%s9498_s1 + $0x524] ss:$16 sps:$4 sm:$0xff]   ;;  %9632 = vst [vmem:[#allocation8_spill] sm:$0xff] %v7018_v27 }
  0x65   :  { %3177 = vmatpush2.bf16.msra.mxu1 %v6059_v23  ;;  %2955 = vmatprep.subr.bf16.mxu0 %v6064_v24  ;;  %v6097_v23 = vld [vmem:[%s9498_s1 + $0x724] ss:$16 sps:$4 sm:$0xff]   ;;  %v7012_v24 = vcombine.low %v77_v50, %v81_v51  ;;  %v6106_v50 = vld [vmem:[%s9498_s1 + $0xec] ss:$16 sps:$4 sm:$0xff]  }
  0x66   :  { %3178 = vmatprep.subr.bf16.mxu1 %v6067_v25  ;;  %v7014_v25 = vcombine.low %v78_v52, %v82_v54  ;;  %v6109_v51 = vld [vmem:[%s9498_s1 + $0x2ec] ss:$16 sps:$4 sm:$0xff]   ;;  %v7060_v52 = vcombine.low %v85_v8, %v89_v9  ;;  %v7062_v54 = vcombine.low %v86_v10, %v90_v11  ;;  %v109_v10 = vld [vmem:[%s9497_s0 + $0x2c0] sm:$0xff] }
  0x67   :  { %9629 = vst [vmem:[#allocation5_spill] sm:$0xff] %v7012_v24  ;;  %v113_v11 = vld [vmem:[%s9497_s0 + $0x2e0] sm:$0xff] }
  0x68   :  { %2956 = vmatpush2.bf16.msra.mxu0 %v6062_v34  ;;  %9630 = vst [vmem:[#allocation6_spill] sm:$0xff] %v7014_v25  ;;  %v6100_v34 = vld [vmem:[%s9498_s1 + $0x504] ss:$16 sps:$4 sm:$0xff]   ;;  %9633 = vst [vmem:[#allocation9_spill] sm:$0xff] %v7060_v52 }
  0x69   :  { %3179 = vmatpush2.bf16.msra.mxu1 %v6065_v35  ;;  %2957 = vmatprep.subr.bf16.mxu0 %v6070_v36  ;;  %v6103_v35 = vld [vmem:[%s9498_s1 + $0x704] ss:$16 sps:$4 sm:$0xff]   ;;  %9634 = vst [vmem:[#allocation10_spill] sm:$0xff] %v7062_v54 }
  0x6a   :  { %3180 = vmatprep.subr.bf16.mxu1 %v6073_v37  ;;  %2574 = vmatmul.mubr.bf16.gmra.mxu0 %v6916_v38  ;;  %v93_v36 = vld [vmem:[%s9497_s0 + $0x240] sm:$0xff] }
  0x6b   :  { %2797 = vmatmul.mubr.bf16.gmra.mxu1 %v6918_v39  ;;  %2583 = vmatprep.mubr.bf16.mxu0 %v6920_v40  ;;  %v97_v37 = vld [vmem:[%s9497_s0 + $0x260] sm:$0xff] }
  0x6c   :  { %2806 = vmatprep.mubr.bf16.mxu1 %v6922_v41  ;;  %2958 = vmatpush2.bf16.msra.mxu0 %v6068_v42  ;;  %v94_v42 = vld [vmem:[%s9497_s0 + $0x248] sm:$0xff] }
  0x6d   :  { %3181 = vmatpush2.bf16.msra.mxu1 %v6071_v43  ;;  %2959 = vmatprep.subr.bf16.mxu0 %v6076_v48  ;;  %v98_v43 = vld [vmem:[%s9497_s0 + $0x268] sm:$0xff]  ;;  %v6098_v48 = vld [vmem:[%s9498_s1 + $0x500] ss:$16 sps:$4 sm:$0xff]  }
  0x6e   :  { %3182 = vmatprep.subr.bf16.mxu1 %v6079_v49  ;;  %v6101_v49 = vld [vmem:[%s9498_s1 + $0x700] ss:$16 sps:$4 sm:$0xff]  }
  0x70   :  { %2960 = vmatpush2.bf16.msra.mxu0 %v6074_v56  ;;  %v7064_v56 = vcombine.high %v93_v36, %v97_v37 }
  0x71   :  { %3183 = vmatpush2.bf16.msra.mxu1 %v6077_v57  ;;  %2961 = vmatprep.subr.bf16.mxu0 %v6082_v58  ;;  %v7066_v57 = vcombine.high %v94_v42, %v98_v43  ;;  %v101_v58 = vld [vmem:[%s9497_s0 + $0x280] sm:$0xff] }
  0x72   :  { %3184 = vmatprep.subr.bf16.mxu1 %v6085_v59  ;;  %2584 = vmatmul.mubr.bf16.gmra.mxu0 %v6964_v60  ;;  %9635 = vst [vmem:[#allocation11_spill] sm:$0xff] %v7064_v56  ;;  %v105_v59 = vld [vmem:[%s9497_s0 + $0x2a0] sm:$0xff] }
  0x73   :  { %2807 = vmatmul.mubr.bf16.gmra.mxu1 %v6966_v61  ;;  %2593 = vmatprep.mubr.bf16.mxu0 %v6968_v2  ;;  %9636 = vst [vmem:[#allocation12_spill] sm:$0xff] %v7066_v57  ;;  %v7088_v8 = vcombine.high %v101_v58, %v105_v59 }
  0x74   :  { %2816 = vmatprep.mubr.bf16.mxu1 %v6970_v3  ;;  %2962 = vmatpush2.bf16.msra.mxu0 %v6080_v4  ;;  %v102_v4 = vld [vmem:[%s9497_s0 + $0x288] sm:$0xff] }
  0x75   :  { %3185 = vmatpush2.bf16.msra.mxu1 %v6083_v5  ;;  %2963 = vmatprep.subr.bf16.mxu0 %v6088_v6  ;;  %v106_v5 = vld [vmem:[%s9497_s0 + $0x2a8] sm:$0xff]  ;;  %v7084_v6 = vcombine.low %v93_v36, %v97_v37  ;;  %9639 = vst [vmem:[#allocation15_spill] sm:$0xff] %v7088_v8 }
  0x76   :  { %3186 = vmatprep.subr.bf16.mxu1 %v6091_v7  ;;  %v7086_v7 = vcombine.low %v94_v42, %v98_v43  ;;  %v7090_v9 = vcombine.high %v102_v4, %v106_v5  ;;  %v118_v36 = vld [vmem:[%s9497_s0 + $0x308] sm:$0xff]  ;;  %v7132_v42 = vcombine.low %v109_v10, %v113_v11 }
  0x77   :  { %9637 = vst [vmem:[#allocation13_spill] sm:$0xff] %v7084_v6  ;;  %v122_v37 = vld [vmem:[%s9497_s0 + $0x328] sm:$0xff] }
  0x78   :  { %2964 = vmatpush2.bf16.msra.mxu0 %v6086_v14  ;;  %9638 = vst [vmem:[#allocation14_spill] sm:$0xff] %v7086_v7  ;;  %9640 = vst [vmem:[#allocation16_spill] sm:$0xff] %v7090_v9  ;;  %v110_v14 = vld [vmem:[%s9497_s0 + $0x2c8] sm:$0xff] }
  0x79   :  { %3187 = vmatpush2.bf16.msra.mxu1 %v6089_v15  ;;  %2965 = vmatprep.subr.bf16.mxu0 %v6094_v22  ;;  %v114_v15 = vld [vmem:[%s9497_s0 + $0x2e8] sm:$0xff]  ;;  %v7108_v22 = vcombine.low %v101_v58, %v105_v59  ;;  %9645 = vst [vmem:[#allocation21_spill] sm:$0xff] %v7132_v42 }
  0x7a   :  { %3188 = vmatprep.subr.bf16.mxu1 %v6097_v23  ;;  %2594 = vmatmul.mubr.bf16.gmra.mxu0 %v7012_v24  ;;  %v7110_v23 = vcombine.low %v102_v4, %v106_v5  ;;  %v7134_v43 = vcombine.low %v110_v14, %v114_v15  ;;  %v126_v58 = vld [vmem:[%s9497_s0 + $0x348] sm:$0xff]  ;;  %v7158_v5 = vcombine.low %v118_v36, %v122_v37 }
  0x7b   :  { %2817 = vmatmul.mubr.bf16.gmra.mxu1 %v7014_v25  ;;  %2603 = vmatprep.mubr.bf16.mxu0 %v7016_v26  ;;  %9641 = vst [vmem:[#allocation17_spill] sm:$0xff] %v7108_v22  ;;  %v130_v59 = vld [vmem:[%s9497_s0 + $0x368] sm:$0xff] }
  0x7c   :  { %2826 = vmatprep.mubr.bf16.mxu1 %v7018_v27  ;;  %2966 = vmatpush2.bf16.msra.mxu0 %v6092_v32  ;;  %9642 = vst [vmem:[#allocation18_spill] sm:$0xff] %v7110_v23  ;;  %v7112_v32 = vcombine.high %v109_v10, %v113_v11  ;;  %9646 = vst [vmem:[#allocation22_spill] sm:$0xff] %v7134_v43  ;;  %v7162_v11 = vcombine.high %v126_v58, %v130_v59 }
  0x7d   :  { %3189 = vmatpush2.bf16.msra.mxu1 %v6095_v33  ;;  %2967 = vmatprep.subr.bf16.mxu0 %v6100_v34  ;;  %v7114_v33 = vcombine.high %v110_v14, %v114_v15  ;;  %v117_v34 = vld [vmem:[%s9497_s0 + $0x300] sm:$0xff]  ;;  %9650 = vst [vmem:[#allocation26_spill] sm:$0xff] %v7158_v5 }
  0x7e   :  { %3190 = vmatprep.subr.bf16.mxu1 %v6103_v35  ;;  %9643 = vst [vmem:[#allocation19_spill] sm:$0xff] %v7112_v32  ;;  %v121_v35 = vld [vmem:[%s9497_s0 + $0x320] sm:$0xff]  ;;  %9652 = vst [vmem:[#allocation28_spill] sm:$0xff] %v7162_v11 }
  0x7f   :  { %9644 = vst [vmem:[#allocation20_spill] sm:$0xff] %v7114_v33  ;;  %v7156_v4 = vcombine.low %v117_v34, %v121_v35  ;;  %v133_v14 = vld [vmem:[%s9497_s0 + $0x380] sm:$0xff] }
  0x80   :  { %2968 = vmatpush2.bf16.msra.mxu0 %v6098_v48  ;;  %v7136_v48 = vcombine.high %v117_v34, %v121_v35  ;;  %v137_v15 = vld [vmem:[%s9497_s0 + $0x3a0] sm:$0xff]  ;;  %v134_v34 = vld [vmem:[%s9497_s0 + $0x388] sm:$0xff] }
  0x81   :  { %3191 = vmatpush2.bf16.msra.mxu1 %v6101_v49  ;;  %3383 = vmatprep.subr.bf16.mxu0 %v6106_v50  ;;  %v7138_v49 = vcombine.high %v118_v36, %v122_v37  ;;  %v125_v50 = vld [vmem:[%s9497_s0 + $0x340] sm:$0xff]  ;;  %9649 = vst [vmem:[#allocation25_spill] sm:$0xff] %v7156_v4  ;;  %v138_v35 = vld [vmem:[%s9497_s0 + $0x3a8] sm:$0xff]  ;;  %v7182_v37 = vcombine.low %v126_v58, %v130_v59 }
  0x82   :  { %3606 = vmatprep.subr.bf16.mxu1 %v6109_v51  ;;  %2604 = vmatmul.mubr.bf16.gmra.mxu0 %v7060_v52  ;;  %9647 = vst [vmem:[#allocation23_spill] sm:$0xff] %v7136_v48  ;;  %v129_v51 = vld [vmem:[%s9497_s0 + $0x360] sm:$0xff]  ;;  %v7204_v58 = vcombine.low %v133_v14, %v137_v15  ;;  %v7206_v59 = vcombine.low %v134_v34, %v138_v35 }
  0x83   :  { %2827 = vmatmul.mubr.bf16.gmra.mxu1 %v7062_v54  ;;  %2613 = vmatprep.mubr.bf16.mxu0 %v7064_v56  ;;  %9648 = vst [vmem:[#allocation24_spill] sm:$0xff] %v7138_v49  ;;  %v7160_v10 = vcombine.high %v125_v50, %v129_v51  ;;  %v7180_v36 = vcombine.low %v125_v50, %v129_v51  ;;  %9654 = vst [vmem:[#allocation30_spill] sm:$0xff] %v7182_v37  ;;  %v142_v50 = vld [vmem:[%s9497_s0 + $0x3c8] sm:$0xff] }
  0x84   :  { %2836 = vmatprep.mubr.bf16.mxu1 %v7066_v57  ;;  %v146_v51 = vld [vmem:[%s9497_s0 + $0x3e8] sm:$0xff]  ;;  %9657 = vst [vmem:[#allocation33_spill] sm:$0xff] %v7204_v58  ;;  %9658 = vst [vmem:[#allocation34_spill] sm:$0xff] %v7206_v59 }
  0x85   :  { %9651 = vst [vmem:[#allocation27_spill] sm:$0xff] %v7160_v10  ;;  %9653 = vst [vmem:[#allocation29_spill] sm:$0xff] %v7180_v36 }
  0x8a   :  { %2614 = vmatmul.mubr.bf16.gmra.mxu0 %v7084_v6 }
  0x8b   :  { %2837 = vmatmul.mubr.bf16.gmra.mxu1 %v7086_v7  ;;  %2623 = vmatprep.mubr.bf16.mxu0 %v7088_v8 }
  0x8c   :  { %2846 = vmatprep.mubr.bf16.mxu1 %v7090_v9 }
  0x92   :  { %2624 = vmatmul.mubr.bf16.gmra.mxu0 %v7108_v22 }
  0x93   :  { %2847 = vmatmul.mubr.bf16.gmra.mxu1 %v7110_v23  ;;  %2633 = vmatprep.mubr.bf16.mxu0 %v7112_v32 }
  0x94   :  { %2856 = vmatprep.mubr.bf16.mxu1 %v7114_v33 }
  0x9a   :  { %2634 = vmatmul.mubr.bf16.gmra.mxu0 %v7132_v42 }
  0x9b   :  { %2857 = vmatmul.mubr.bf16.gmra.mxu1 %v7134_v43  ;;  %2643 = vmatprep.mubr.bf16.mxu0 %v7136_v48 }
  0x9c   :  { %2866 = vmatprep.mubr.bf16.mxu1 %v7138_v49  ;;  %v141_v49 = vld [vmem:[%s9497_s0 + $0x3c0] sm:$0xff] }
  0xa2   :  { %2644 = vmatmul.mubr.bf16.gmra.mxu0 %v7156_v4  ;;  %v7186_v4 = vcombine.high %v134_v34, %v138_v35  ;;  %v7230_v35 = vcombine.low %v142_v50, %v146_v51 }
  0xa3   :  { %2867 = vmatmul.mubr.bf16.gmra.mxu1 %v7158_v5  ;;  %2653 = vmatprep.mubr.bf16.mxu0 %v7160_v10  ;;  %v7184_v5 = vcombine.high %v133_v14, %v137_v15  ;;  %v150_v14 = vld [vmem:[%s9497_s0 + $0x408] sm:$0xff]  ;;  %v23_v10 = vld [vmem:[%s9497_s0 + $0x10] sm:$0xff] }
  0xa4   :  { %2876 = vmatprep.mubr.bf16.mxu1 %v7162_v11  ;;  %9656 = vst [vmem:[#allocation32_spill] sm:$0xff] %v7186_v4  ;;  %v145_v11 = vld [vmem:[%s9497_s0 + $0x3e0] sm:$0xff]  ;;  %v154_v15 = vld [vmem:[%s9497_s0 + $0x428] sm:$0xff]  ;;  %9662 = vst [vmem:[#allocation38_spill] sm:$0xff] %v7230_v35 }
  0xa5   :  { %9655 = vst [vmem:[#allocation31_spill] sm:$0xff] %v7184_v5  ;;  %v7228_v34 = vcombine.low %v141_v49, %v145_v11 }
  0xa7   :  { %9661 = vst [vmem:[#allocation37_spill] sm:$0xff] %v7228_v34 }
  0xaa   :  { %2654 = vmatmul.mubr.bf16.gmra.mxu0 %v7180_v36  ;;  %v7210_v36 = vcombine.high %v142_v50, %v146_v51  ;;  %v7254_v51 = vcombine.low %v150_v14, %v154_v15 }
  0xab   :  { %2877 = vmatmul.mubr.bf16.gmra.mxu1 %v7182_v37  ;;  %2663 = vmatprep.mubr.bf16.mxu0 %v7184_v5  ;;  %v7208_v37 = vcombine.high %v141_v49, %v145_v11  ;;  %v153_v5 = vld [vmem:[%s9497_s0 + $0x420] sm:$0xff]  ;;  %v158_v49 = vld [vmem:[%s9497_s0 + $0x448] sm:$0xff] }
  0xac   :  { %2886 = vmatprep.mubr.bf16.mxu1 %v7186_v4  ;;  %9660 = vst [vmem:[#allocation36_spill] sm:$0xff] %v7210_v36  ;;  %v149_v4 = vld [vmem:[%s9497_s0 + $0x400] sm:$0xff]  ;;  %v162_v11 = vld [vmem:[%s9497_s0 + $0x468] sm:$0xff]  ;;  %9666 = vst [vmem:[#allocation42_spill] sm:$0xff] %v7254_v51 }
  0xad   :  { %9659 = vst [vmem:[#allocation35_spill] sm:$0xff] %v7208_v37  ;;  %v7252_v50 = vcombine.low %v149_v4, %v153_v5 }
  0xaf   :  { %9665 = vst [vmem:[#allocation41_spill] sm:$0xff] %v7252_v50 }
  0xb2   :  { %2664 = vmatmul.mubr.bf16.gmra.mxu0 %v7204_v58  ;;  %v7234_v58 = vcombine.high %v150_v14, %v154_v15  ;;  %v7278_v15 = vcombine.low %v158_v49, %v162_v11 }
  0xb3   :  { %2887 = vmatmul.mubr.bf16.gmra.mxu1 %v7206_v59  ;;  %2673 = vmatprep.mubr.bf16.mxu0 %v7208_v37  ;;  %v7232_v59 = vcombine.high %v149_v4, %v153_v5  ;;  %v161_v37 = vld [vmem:[%s9497_s0 + $0x460] sm:$0xff]  ;;  %v166_v4 = vld [vmem:[%s9497_s0 + $0x488] sm:$0xff] }
  0xb4   :  { %2896 = vmatprep.mubr.bf16.mxu1 %v7210_v36  ;;  %9664 = vst [vmem:[#allocation40_spill] sm:$0xff] %v7234_v58  ;;  %v157_v36 = vld [vmem:[%s9497_s0 + $0x440] sm:$0xff]  ;;  %v170_v5 = vld [vmem:[%s9497_s0 + $0x4a8] sm:$0xff]  ;;  %9670 = vst [vmem:[#allocation46_spill] sm:$0xff] %v7278_v15 }
  0xb5   :  { %9663 = vst [vmem:[#allocation39_spill] sm:$0xff] %v7232_v59  ;;  %v7276_v14 = vcombine.low %v157_v36, %v161_v37 }
  0xb7   :  { %9669 = vst [vmem:[#allocation45_spill] sm:$0xff] %v7276_v14 }
  0xba   :  { %2674 = vmatmul.mubr.bf16.gmra.mxu0 %v7228_v34  ;;  %v7258_v34 = vcombine.high %v158_v49, %v162_v11  ;;  %v7302_v11 = vcombine.low %v166_v4, %v170_v5 }
  0xbb   :  { %2897 = vmatmul.mubr.bf16.gmra.mxu1 %v7230_v35  ;;  %2683 = vmatprep.mubr.bf16.mxu0 %v7232_v59  ;;  %v7256_v35 = vcombine.high %v157_v36, %v161_v37  ;;  %v169_v59 = vld [vmem:[%s9497_s0 + $0x4a0] sm:$0xff]  ;;  %v24_v36 = vld [vmem:[%s9497_s0 + $0x18] sm:$0xff] }
  0xbc   :  { %2906 = vmatprep.mubr.bf16.mxu1 %v7234_v58  ;;  %9668 = vst [vmem:[#allocation44_spill] sm:$0xff] %v7258_v34  ;;  %v165_v58 = vld [vmem:[%s9497_s0 + $0x480] sm:$0xff]  ;;  %v28_v37 = vld [vmem:[%s9497_s0 + $0x38] sm:$0xff]  ;;  %9674 = vst [vmem:[#allocation50_spill] sm:$0xff] %v7302_v11 }
  0xbd   :  { %9667 = vst [vmem:[#allocation43_spill] sm:$0xff] %v7256_v35  ;;  %v7300_v49 = vcombine.low %v165_v58, %v169_v59 }
  0xbf   :  { %9673 = vst [vmem:[#allocation49_spill] sm:$0xff] %v7300_v49 }
  0xc2   :  { %2684 = vmatmul.mubr.bf16.gmra.mxu0 %v7252_v50  ;;  %v7282_v50 = vcombine.high %v166_v4, %v170_v5 }
  0xc3   :  { %2907 = vmatmul.mubr.bf16.gmra.mxu1 %v7254_v51  ;;  %2693 = vmatprep.mubr.bf16.mxu0 %v7256_v35  ;;  %v7280_v51 = vcombine.high %v165_v58, %v169_v59 }
  0xc4   :  { %2916 = vmatprep.mubr.bf16.mxu1 %v7258_v34  ;;  %9672 = vst [vmem:[#allocation48_spill] sm:$0xff] %v7282_v50  ;;  %v27_v34 = vld [vmem:[%s9497_s0 + $0x30] sm:$0xff] }
  0xc5   :  { %9671 = vst [vmem:[#allocation47_spill] sm:$0xff] %v7280_v51 }
  0xca   :  { %2694 = vmatmul.mubr.bf16.gmra.mxu0 %v7276_v14  ;;  %v7306_v14 = vcombine.high %v24_v36, %v28_v37 }
  0xcb   :  { %2917 = vmatmul.mubr.bf16.gmra.mxu1 %v7278_v15  ;;  %2703 = vmatprep.mubr.bf16.mxu0 %v7280_v51  ;;  %v7304_v15 = vcombine.high %v23_v10, %v27_v34 }
  0xcc   :  { %2926 = vmatprep.mubr.bf16.mxu1 %v7282_v50  ;;  %9676 = vst [vmem:[#allocation52_spill] sm:$0xff] %v7306_v14  ;;  %v31_v50 = vld [vmem:[%s9497_s0 + $0x50] sm:$0xff] }
  0xcd   :  { %9675 = vst [vmem:[#allocation51_spill] sm:$0xff] %v7304_v15 }
  0xd2   :  { %2704 = vmatmul.mubr.bf16.gmra.mxu0 %v7300_v49 }
  0xd3   :  { %2927 = vmatmul.mubr.bf16.gmra.mxu1 %v7302_v11  ;;  %2969 = vmatprep.mubr.bf16.mxu0 %v7304_v15 }
  0xd4   :  { %3192 = vmatprep.mubr.bf16.mxu1 %v7306_v14 }
  0xd5   :  { %10 = vsyncpa [#allocation3], 0  ;;  %v35_v58 = vld [vmem:[%s9497_s0 + $0x70] sm:$0xff]  ;;  %v32_v59 = vld [vmem:[%s9497_s0 + $0x58] sm:$0xff]  ;;  %v7324_v5 = vcombine.low %v23_v10, %v27_v34  ;;  %v7326_v14 = vcombine.low %v24_v36, %v28_v37 }
  0xd6   :  { %v36_v4 = vld [vmem:[%s9497_s0 + $0x78] sm:$0xff]  ;;  %v7334_v49 = vcombine.high %v31_v50, %v35_v58  ;;  %v39_v37 = vld [vmem:[%s9497_s0 + $0x90] sm:$0xff]  ;;  %v7372_v43 = vcombine.low %v31_v50, %v35_v58 }
  0xd7   :  { %9677 = vst [vmem:[#allocation53_spill] sm:$0xff] %v7324_v5  ;;  %9678 = vst [vmem:[#allocation54_spill] sm:$0xff] %v7326_v14  ;;  %v6104_v15 = vld [vmem:[%s9498_s1 + $0xe8] ss:$16 sps:$4 sm:$0xff]   ;;  %v7336_v51 = vcombine.high %v32_v59, %v36_v4  ;;  %v6112_v35 = vld [vmem:[%s9498_s1 + $0xcc] ss:$16 sps:$4 sm:$0xff]   ;;  %v7374_v42 = vcombine.low %v32_v59, %v36_v4 }
  0xd8   :  { %v6107_v11 = vld [vmem:[%s9498_s1 + $0x2e8] ss:$16 sps:$4 sm:$0xff]   ;;  %9679 = vst [vmem:[#allocation55_spill] sm:$0xff] %v7334_v49  ;;  %v6115_v10 = vld [vmem:[%s9498_s1 + $0x2cc] ss:$16 sps:$4 sm:$0xff]   ;;  %9681 = vst [vmem:[#allocation57_spill] sm:$0xff] %v7372_v43 }
  0xd9   :  { %9680 = vst [vmem:[#allocation56_spill] sm:$0xff] %v7336_v51  ;;  %v6110_v34 = vld [vmem:[%s9498_s1 + $0xc8] ss:$16 sps:$4 sm:$0xff]   ;;  %v6121_v48 = vld [vmem:[%s9498_s1 + $0x2ac] ss:$16 sps:$4 sm:$0xff]   ;;  %9682 = vst [vmem:[#allocation58_spill] sm:$0xff] %v7374_v42 }
  0xda   :  { %2970 = vmatmul.mubr.bf16.vlgmr.msra.gmra.mxu0 %v7324_v5  ;;  %v6113_v36 = vld [vmem:[%s9498_s1 + $0x2c8] ss:$16 sps:$4 sm:$0xff]   ;;  %v43_v5 = vld [vmem:[%s9497_s0 + $0xb0] sm:$0xff]  ;;  %v6124_v50 = vld [vmem:[%s9498_s1 + $0x8c] ss:$16 sps:$4 sm:$0xff]  }
  0xdb   :  { %3193 = vmatmul.mubr.bf16.vlgmr.msra.gmra.mxu1 %v7326_v14  ;;  %3384 = vmatpush1.bf16.msra.mxu0 %v6104_v15  ;;  %v40_v14 = vld [vmem:[%s9497_s0 + $0x98] sm:$0xff]  ;;  %v51_v59 = vld [vmem:[%s9497_s0 + $0xf0] sm:$0xff] }
  0xdc   :  { %3607 = vmatpush1.bf16.msra.mxu1 %v6107_v11  ;;  %2979 = vmatprep.mubr.bf16.mxu0 %v7334_v49  ;;  %v44_v15 = vld [vmem:[%s9497_s0 + $0xb8] sm:$0xff] }
  0xdd   :  { %3202 = vmatprep.mubr.bf16.mxu1 %v7336_v51  ;;  %v6118_v11 = vld [vmem:[%s9498_s1 + $0xac] ss:$16 sps:$4 sm:$0xff]   ;;  %3385 = vmatprep.subr.bf16.mxu0 %v6112_v35  ;;  %v7376_v51 = vcombine.high %v39_v37, %v43_v5  ;;  %v7378_v49 = vcombine.high %v40_v14, %v44_v15  ;;  %v6116_v33 = vld [vmem:[%s9498_s1 + $0xa8] ss:$16 sps:$4 sm:$0xff]  }
  0xde   :  { %3608 = vmatprep.subr.bf16.mxu1 %v6115_v10  ;;  %v6119_v35 = vld [vmem:[%s9498_s1 + $0x2a8] ss:$16 sps:$4 sm:$0xff]   ;;  %v6127_v58 = vld [vmem:[%s9498_s1 + $0x28c] ss:$16 sps:$4 sm:$0xff]  }
  0xdf   :  { %3386 = vmatpush1.bf16.msra.mxu0 %v6110_v34  ;;  %9683 = vst [vmem:[#allocation59_spill] sm:$0xff] %v7376_v51  ;;  %9684 = vst [vmem:[#allocation60_spill] sm:$0xff] %v7378_v49  ;;  %v48_v4 = vld [vmem:[%s9497_s0 + $0xd8] sm:$0xff] }
  0xe0   :  { %3609 = vmatpush1.bf16.msra.mxu1 %v6113_v36  ;;  %3387 = vmatprep.subr.bf16.mxu0 %v6118_v11  ;;  %v52_v10 = vld [vmem:[%s9497_s0 + $0xf8] sm:$0xff] }
  0xe1   :  { %3610 = vmatprep.subr.bf16.mxu1 %v6121_v48  ;;  %v47_v48 = vld [vmem:[%s9497_s0 + $0xd0] sm:$0xff]  ;;  %v6122_v34 = vld [vmem:[%s9498_s1 + $0x88] ss:$16 sps:$4 sm:$0xff]   ;;  %v6130_v11 = vld [vmem:[%s9498_s1 + $0x6c] ss:$16 sps:$4 sm:$0xff]  }
  0xe2   :  { %2980 = vmatmul.mubr.bf16.gmra.mxu0 %v7372_v43  ;;  %v6125_v36 = vld [vmem:[%s9498_s1 + $0x288] ss:$16 sps:$4 sm:$0xff]   ;;  %v6178_v9 = vld [vmem:[%s9498_s1 + $0x16c] ss:$16 sps:$4 sm:$0xff]  }
  0xe3   :  { %3203 = vmatmul.mubr.bf16.gmra.mxu1 %v7374_v42  ;;  %2989 = vmatprep.mubr.bf16.mxu0 %v7376_v51  ;;  %v7424_v51 = vcombine.high %v47_v48, %v51_v59  ;;  %v7426_v42 = vcombine.high %v48_v4, %v52_v10  ;;  %v6176_v56 = vld [vmem:[%s9498_s1 + $0x168] ss:$16 sps:$4 sm:$0xff]  }
  0xe4   :  { %3212 = vmatprep.mubr.bf16.mxu1 %v7378_v49  ;;  %3388 = vmatpush1.bf16.msra.mxu0 %v6116_v33  ;;  %v6133_v33 = vld [vmem:[%s9498_s1 + $0x26c] ss:$16 sps:$4 sm:$0xff]   ;;  %v7422_v49 = vcombine.low %v40_v14, %v44_v15  ;;  %v59_v15 = vld [vmem:[%s9497_s0 + $0x130] sm:$0xff]  ;;  %v6188_v26 = vld [vmem:[%s9498_s1 + $0x128] ss:$16 sps:$4 sm:$0xff]  }
  0xe5   :  { %3611 = vmatpush1.bf16.msra.mxu1 %v6119_v35  ;;  %3389 = vmatprep.subr.bf16.mxu0 %v6124_v50  ;;  %v7420_v35 = vcombine.low %v39_v37, %v43_v5  ;;  %9687 = vst [vmem:[#allocation63_spill] sm:$0xff] %v7424_v51  ;;  %9688 = vst [vmem:[#allocation64_spill] sm:$0xff] %v7426_v42  ;;  %v6128_v50 = vld [vmem:[%s9498_s1 + $0x68] ss:$16 sps:$4 sm:$0xff]   ;;  %v6136_v14 = vld [vmem:[%s9498_s1 + $0x4c] ss:$16 sps:$4 sm:$0xff]  }
  0xe6   :  { %3612 = vmatprep.subr.bf16.mxu1 %v6127_v58  ;;  %9686 = vst [vmem:[#allocation62_spill] sm:$0xff] %v7422_v49  ;;  %v6131_v58 = vld [vmem:[%s9498_s1 + $0x268] ss:$16 sps:$4 sm:$0xff]   ;;  %v6139_v5 = vld [vmem:[%s9498_s1 + $0x24c] ss:$16 sps:$4 sm:$0xff]   ;;  %v55_v37 = vld [vmem:[%s9497_s0 + $0x110] sm:$0xff] }
  0xe7   :  { %9685 = vst [vmem:[#allocation61_spill] sm:$0xff] %v7420_v35 }
  0xe8   :  { %3390 = vmatpush1.bf16.msra.mxu0 %v6122_v34  ;;  %v56_v34 = vld [vmem:[%s9497_s0 + $0x118] sm:$0xff] }
  0xe9   :  { %3613 = vmatpush1.bf16.msra.mxu1 %v6125_v36  ;;  %3391 = vmatprep.subr.bf16.mxu0 %v6130_v11  ;;  %v60_v36 = vld [vmem:[%s9497_s0 + $0x138] sm:$0xff] }
  0xea   :  { %3614 = vmatprep.subr.bf16.mxu1 %v6133_v33  ;;  %2990 = vmatmul.mubr.bf16.gmra.mxu0 %v7420_v35  ;;  %v6134_v11 = vld [vmem:[%s9498_s1 + $0x48] ss:$16 sps:$4 sm:$0xff]   ;;  %v7474_v35 = vcombine.high %v56_v34, %v60_v36 }
  0xeb   :  { %3213 = vmatmul.mubr.bf16.gmra.mxu1 %v7422_v49  ;;  %2999 = vmatprep.mubr.bf16.mxu0 %v7424_v51  ;;  %v6137_v33 = vld [vmem:[%s9498_s1 + $0x248] ss:$16 sps:$4 sm:$0xff]   ;;  %v6145_v51 = vld [vmem:[%s9498_s1 + $0x22c] ss:$16 sps:$4 sm:$0xff]   ;;  %v7472_v49 = vcombine.high %v55_v37, %v59_v15 }
  0xec   :  { %3222 = vmatprep.mubr.bf16.mxu1 %v7426_v42  ;;  %3392 = vmatpush1.bf16.msra.mxu0 %v6128_v50  ;;  %v6142_v42 = vld [vmem:[%s9498_s1 + $0x2c] ss:$16 sps:$4 sm:$0xff]   ;;  %v7468_v50 = vcombine.low %v47_v48, %v51_v59  ;;  %9692 = vst [vmem:[#allocation68_spill] sm:$0xff] %v7474_v35 }
  0xed   :  { %3615 = vmatpush1.bf16.msra.mxu1 %v6131_v58  ;;  %3393 = vmatprep.subr.bf16.mxu0 %v6136_v14  ;;  %v7470_v58 = vcombine.low %v48_v4, %v52_v10  ;;  %9691 = vst [vmem:[#allocation67_spill] sm:$0xff] %v7472_v49  ;;  %v6140_v14 = vld [vmem:[%s9498_s1 + $0x28] ss:$16 sps:$4 sm:$0xff]   ;;  %v6148_v48 = vld [vmem:[%s9498_s1 + $0xc] ss:$16 sps:$4 sm:$0xff]   ;;  %v431_v10 = vlaneseq }
  0xee   :  { %3616 = vmatprep.subr.bf16.mxu1 %v6139_v5  ;;  %9689 = vst [vmem:[#allocation65_spill] sm:$0xff] %v7468_v50  ;;  %v6143_v5 = vld [vmem:[%s9498_s1 + $0x228] ss:$16 sps:$4 sm:$0xff]   ;;  %v6151_v59 = vld [vmem:[%s9498_s1 + $0x20c] ss:$16 sps:$4 sm:$0xff]  }
  0xef   :  { %9690 = vst [vmem:[#allocation66_spill] sm:$0xff] %v7470_v58  ;;  %v64_v4 = vld [vmem:[%s9497_s0 + $0x158] sm:$0xff]  ;;  %v7524_v32 = vshrl.u32 %v431_v10, 7 }
  0xf0   :  { %3394 = vmatpush1.bf16.msra.mxu0 %v6134_v11  ;;  %v68_v11 = vld [vmem:[%s9497_s0 + $0x178] sm:$0xff] }
  0xf1   :  { %3617 = vmatpush1.bf16.msra.mxu1 %v6137_v33  ;;  %3395 = vmatprep.subr.bf16.mxu0 %v6142_v42  ;;  %v63_v42 = vld [vmem:[%s9497_s0 + $0x150] sm:$0xff]  ;;  %v6146_v33 = vld [vmem:[%s9498_s1 + $0x8] ss:$16 sps:$4 sm:$0xff]   ;;  %v7522_v43 = vcombine.high %v64_v4, %v68_v11  ;;  %9697 = vst [vmem:[#allocation73_spill] sm:$0xff] %v7524_v32 }
  0xf2   :  { %3618 = vmatprep.subr.bf16.mxu1 %v6145_v51  ;;  %3000 = vmatmul.mubr.bf16.gmra.mxu0 %v7468_v50  ;;  %v67_v51 = vld [vmem:[%s9497_s0 + $0x170] sm:$0xff]  ;;  %v76_v10 = vld [vmem:[%s9497_s0 + $0x1b8] sm:$0xff] }
  0xf3   :  { %3223 = vmatmul.mubr.bf16.gmra.mxu1 %v7470_v58  ;;  %3009 = vmatprep.mubr.bf16.mxu0 %v7472_v49  ;;  %v6154_v49 = vld [vmem:[%s9498_s1 + $0x1ec] ss:$16 sps:$4 sm:$0xff]   ;;  %v7520_v50 = vcombine.high %v63_v42, %v67_v51  ;;  %9696 = vst [vmem:[#allocation72_spill] sm:$0xff] %v7522_v43 }
  0xf4   :  { %3232 = vmatprep.mubr.bf16.mxu1 %v7474_v35  ;;  %3396 = vmatpush1.bf16.msra.mxu0 %v6140_v14  ;;  %v6149_v35 = vld [vmem:[%s9498_s1 + $0x208] ss:$16 sps:$4 sm:$0xff]   ;;  %v6157_v58 = vld [vmem:[%s9498_s1 + $0x3ec] ss:$16 sps:$4 sm:$0xff]   ;;  %v7516_v14 = vcombine.low %v55_v37, %v59_v15 }
  0xf5   :  { %3619 = vmatpush1.bf16.msra.mxu1 %v6143_v5  ;;  %3397 = vmatprep.subr.bf16.mxu0 %v6148_v48  ;;  %v7518_v5 = vcombine.low %v56_v34, %v60_v36  ;;  %9695 = vst [vmem:[#allocation71_spill] sm:$0xff] %v7520_v50  ;;  %v6152_v48 = vld [vmem:[%s9498_s1 + $0x1e8] ss:$16 sps:$4 sm:$0xff]   ;;  %v6160_v37 = vld [vmem:[%s9498_s1 + $0x1cc] ss:$16 sps:$4 sm:$0xff]   ;;  %v71_v34 = vld [vmem:[%s9497_s0 + $0x190] sm:$0xff] }
  0xf6   :  { %3620 = vmatprep.subr.bf16.mxu1 %v6151_v59  ;;  %9693 = vst [vmem:[#allocation69_spill] sm:$0xff] %v7516_v14  ;;  %v6155_v59 = vld [vmem:[%s9498_s1 + $0x3e8] ss:$16 sps:$4 sm:$0xff]   ;;  %v6163_v15 = vld [vmem:[%s9498_s1 + $0x3cc] ss:$16 sps:$4 sm:$0xff]   ;;  %v75_v36 = vld [vmem:[%s9497_s0 + $0x1b0] sm:$0xff] }
  0xf7   :  { %9694 = vst [vmem:[#allocation70_spill] sm:$0xff] %v7518_v5  ;;  %v7579_v22 = vcombine.high %v71_v34, %v75_v36  ;;  %v7631_v7 = vcombine.low %v71_v34, %v75_v36  ;;  %v6179_v34 = vld [vmem:[%s9498_s1 + $0x368] ss:$16 sps:$4 sm:$0xff]   ;;  %v6184_v36 = vld [vmem:[%s9498_s1 + $0x14c] ss:$16 sps:$4 sm:$0xff]  }
  0xf8   :  { %3398 = vmatpush1.bf16.msra.mxu0 %v6146_v33  ;;  %v6158_v33 = vld [vmem:[%s9498_s1 + $0x1c8] ss:$16 sps:$4 sm:$0xff]  }
  0xf9   :  { %3621 = vmatpush1.bf16.msra.mxu1 %v6149_v35  ;;  %3399 = vmatprep.subr.bf16.mxu0 %v6154_v49  ;;  %v429_v35 = vld [vmem:[%s9499_s2] sm:$0xf]  ;;  %v6161_v49 = vld [vmem:[%s9498_s1 + $0x3c8] ss:$16 sps:$4 sm:$0xff]   ;;  %9701 = vst [vmem:[#allocation76_spill] sm:$0xff] %v7579_v22  ;;  %9703 = vst [vmem:[#allocation78_spill] sm:$0xff] %v7631_v7 }
  0xfa   :  { %3622 = vmatprep.subr.bf16.mxu1 %v6157_v58  ;;  %3010 = vmatmul.mubr.bf16.gmra.mxu0 %v7516_v14  ;;  %v72_v58 = vld [vmem:[%s9497_s0 + $0x198] sm:$0xff]  ;;  %v9700_v14 = vsub.s32 0, %v7524_v32 }
  0xfb   :  { %3233 = vmatmul.mubr.bf16.gmra.mxu1 %v7518_v5  ;;  %3019 = vmatprep.mubr.bf16.mxu0 %v7520_v50  ;;  %v6166_v50 = vld [vmem:[%s9498_s1 + $0x1ac] ss:$16 sps:$4 sm:$0xff]   ;;  %v7573_v5 = vcombine.low %v64_v4, %v68_v11  ;;  %v7633_v6 = vcombine.low %v72_v58, %v76_v10 }
  0xfc   :  { %3242 = vmatprep.mubr.bf16.mxu1 %v7522_v43  ;;  %3400 = vmatpush2.bf16.msra.mxu0 %v6152_v48  ;;  %v9559_v43 = vsub.s32 1, %v7524_v32  ;;  %v6169_v48 = vld [vmem:[%s9498_s1 + $0x3ac] ss:$16 sps:$4 sm:$0xff]   ;;  %v7577_v23 = vrot.slane %v429_v35, %v9700_v14 }
  0xfd   :  { %3623 = vmatpush2.bf16.msra.mxu1 %v6155_v59  ;;  %3401 = vmatprep.subr.bf16.mxu0 %v6160_v37  ;;  %v7571_v59 = vcombine.low %v63_v42, %v67_v51  ;;  %9699 = vst [vmem:[#allocation75_spill] sm:$0xff] %v7573_v5  ;;  %v7581_v37 = vcombine.high %v72_v58, %v76_v10  ;;  %v6167_v42 = vld [vmem:[%s9498_s1 + $0x3a8] ss:$16 sps:$4 sm:$0xff]   ;;  %v6172_v4 = vld [vmem:[%s9498_s1 + $0x18c] ss:$16 sps:$4 sm:$0xff]   ;;  %9704 = vst [vmem:[#allocation79_spill] sm:$0xff] %v7633_v6 }
  0xfe   :  { %3624 = vmatprep.subr.bf16.mxu1 %v6163_v15  ;;  %v6164_v15 = vld [vmem:[%s9498_s1 + $0x1a8] ss:$16 sps:$4 sm:$0xff]   ;;  %v7591_v51 = vrot.slane %v429_v35, %v9559_v43  ;;  %v6175_v11 = vld [vmem:[%s9498_s1 + $0x38c] ss:$16 sps:$4 sm:$0xff]   ;;  %v83_v35 = vld [vmem:[%s9497_s0 + $0x1f0] sm:$0xff] }
  0xff   :  { %9698 = vst [vmem:[#allocation74_spill] sm:$0xff] %v7571_v59  ;;  %9702 = vst [vmem:[#allocation77_spill] sm:$0xff] %v7581_v37 }
 0x100   :  { %3402 = vmatpush2.bf16.msra.mxu0 %v6158_v33 }
 0x101   :  { %3625 = vmatpush2.bf16.msra.mxu1 %v6161_v49  ;;  %3403 = vmatprep.subr.bf16.mxu0 %v6166_v50  ;;  %v79_v50 = vld [vmem:[%s9497_s0 + $0x1d0] sm:$0xff] }
 0x102   :  { %3626 = vmatprep.subr.bf16.mxu1 %v6169_v48  ;;  %v2525_v14 = vpop.f32.mrf.mxu0  ;;  %3020 = vmatmul.mubr.bf16.gmra.mxu0 %v7571_v59  ;;  %v80_v48 = vld [vmem:[%s9497_s0 + $0x1d8] sm:$0xff]  ;;  %v7691_v54 = vcombine.low %v79_v50, %v83_v35 }
 0x103   :  { %v2748_v49 = vpop.f32.mrf.mxu1  ;;  %3243 = vmatmul.mubr.bf16.gmra.mxu1 %v7573_v5  ;;  %v2526_v33 = vadd.f32 %v2525_v14, %v7577_v23  ;;  %3029 = vmatprep.mubr.bf16.mxu0 %v7579_v22  ;;  %v84_v14 = vld [vmem:[%s9497_s0 + $0x1f8] sm:$0xff] }
 0x104   :  { %3252 = vmatprep.mubr.bf16.mxu1 %v7581_v37  ;;  %v2527_v43 = vpop.f32.mrf.mxu0  ;;  %3404 = vmatpush2.bf16.msra.mxu0 %v6164_v15  ;;  %v6170_v37 = vld [vmem:[%s9498_s1 + $0x188] ss:$16 sps:$4 sm:$0xff]   ;;  %v6181_v15 = vld [vmem:[%s9498_s1 + $0x36c] ss:$16 sps:$4 sm:$0xff]   ;;  %9707 = vst [vmem:[#allocation82_spill] sm:$0xff] %v7691_v54  ;;  %v7693_v52 = vcombine.low %v80_v48, %v84_v14 }
 0x105   :  { %v2750_v5 = vpop.f32.mrf.mxu1  ;;  %3627 = vmatpush2.bf16.msra.mxu1 %v6167_v42  ;;  %v6173_v22 = vld [vmem:[%s9498_s1 + $0x388] ss:$16 sps:$4 sm:$0xff]   ;;  %v7622_v59 = vadd.f32 %v2748_v49, %v2526_v33  ;;  %v2528_v32 = vadd.f32 %v2527_v43, %v7591_v51  ;;  %3405 = vmatprep.subr.bf16.mxu0 %v6172_v4  ;;  %v7638_v4 = vcombine.high %v79_v50, %v83_v35 }
 0x106   :  { %3628 = vmatprep.subr.bf16.mxu1 %v6175_v11  ;;  %v2529_v42 = vpop.f32.mrf.mxu0  ;;  %v7640_v11 = vcombine.high %v80_v48, %v84_v14  ;;  %9708 = vst [vmem:[#allocation83_spill] sm:$0xff] %v7693_v52  ;;  %v6191_v50 = vld [vmem:[%s9498_s1 + $0x328] ss:$16 sps:$4 sm:$0xff]   ;;  %v6196_v14 = vld [vmem:[%s9498_s1 + $0x10c] ss:$16 sps:$4 sm:$0xff]  }
 0x107   :  { %v2752_v8 = vpop.f32.mrf.mxu1  ;;  %v7635_v49 = vadd.f32 %v2750_v5, %v2528_v32  ;;  %v2530_v43 = vadd.f32 %v2529_v42, %v7577_v23  ;;  %9705 = vst [vmem:[#allocation80_spill] sm:$0xff] %v7638_v4  ;;  %v88_v42 = vld [vmem:[%s9497_s0 + $0x218] sm:$0xff] }
 0x108   :  { %9706 = vst [vmem:[#allocation81_spill] sm:$0xff] %v7640_v11  ;;  %v2531_v33 = vpop.f32.mrf.mxu0  ;;  %3406 = vmatpush2.bf16.msra.mxu0 %v6170_v37 }
 0x109   :  { %v2754_v57 = vpop.f32.mrf.mxu1  ;;  %3629 = vmatpush2.bf16.msra.mxu1 %v6173_v22  ;;  %v7648_v32 = vadd.f32 %v2752_v8, %v2530_v43  ;;  %v2532_v5 = vadd.f32 %v2531_v33, %v7591_v51  ;;  %3407 = vmatprep.subr.bf16.mxu0 %v6178_v9  ;;  %v6187_v22 = vld [vmem:[%s9498_s1 + $0x34c] ss:$16 sps:$4 sm:$0xff]   ;;  %v87_v9 = vld [vmem:[%s9497_s0 + $0x210] sm:$0xff] }
 0x10a   :  { %3630 = vmatprep.subr.bf16.mxu1 %v6181_v15  ;;  %v2535_v58 = vpop.f32.mrf.mxu0  ;;  %3030 = vmatmul.mubr.bf16.gmra.mxu0 %v7631_v7  ;;  %v91_v15 = vld [vmem:[%s9497_s0 + $0x230] sm:$0xff]  ;;  %v92_v33 = vld [vmem:[%s9497_s0 + $0x238] sm:$0xff] }
 0x10b   :  { %v2758_v10 = vpop.f32.mrf.mxu1  ;;  %3253 = vmatmul.mubr.bf16.gmra.mxu1 %v7633_v6  ;;  %v7659_v8 = vadd.f32 %v2754_v57, %v2532_v5  ;;  %v2536_v37 = vadd.f32 %v2535_v58, %v7577_v23  ;;  %3039 = vmatprep.mubr.bf16.mxu0 %v7638_v4  ;;  %v6182_v5 = vld [vmem:[%s9498_s1 + $0x148] ss:$16 sps:$4 sm:$0xff]   ;;  %v6190_v6 = vld [vmem:[%s9498_s1 + $0x12c] ss:$16 sps:$4 sm:$0xff]   ;;  %v7751_v25 = vcombine.low %v87_v9, %v91_v15 }
 0x10c   :  { %3262 = vmatprep.mubr.bf16.mxu1 %v7640_v11  ;;  %v2537_v57 = vpop.f32.mrf.mxu0  ;;  %3408 = vmatpush2.bf16.msra.mxu0 %v6176_v56  ;;  %v6185_v58 = vld [vmem:[%s9498_s1 + $0x348] ss:$16 sps:$4 sm:$0xff]   ;;  %v6193_v56 = vld [vmem:[%s9498_s1 + $0x32c] ss:$16 sps:$4 sm:$0xff]   ;;  %v7753_v24 = vcombine.low %v88_v42, %v92_v33 }
 0x10d   :  { %v2760_v43 = vpop.f32.mrf.mxu1  ;;  %3631 = vmatpush2.bf16.msra.mxu1 %v6179_v34  ;;  %v7682_v11 = vadd.f32 %v2758_v10, %v2536_v37  ;;  %v2538_v4 = vadd.f32 %v2537_v57, %v7591_v51  ;;  %3409 = vmatprep.subr.bf16.mxu0 %v6184_v36  ;;  %v7698_v36 = vcombine.high %v87_v9, %v91_v15 }
 0x10e   :  { %3632 = vmatprep.subr.bf16.mxu1 %v6187_v22  ;;  %v2539_v34 = vpop.f32.mrf.mxu0  ;;  %v7700_v22 = vcombine.high %v88_v42, %v92_v33  ;;  %9714 = vst [vmem:[#allocation89_spill] sm:$0xff] %v7751_v25  ;;  %9715 = vst [vmem:[#allocation90_spill] sm:$0xff] %v7753_v24 }
 0x10f   :  { %v2762_v7 = vpop.f32.mrf.mxu1  ;;  %v7695_v10 = vadd.f32 %v2760_v43, %v2538_v4  ;;  %v2540_v37 = vadd.f32 %v2539_v34, %v7577_v23  ;;  %9709 = vst [vmem:[#allocation84_spill] sm:$0xff] %v7698_v36  ;;  %v6199_v4 = vld [vmem:[%s9498_s1 + $0x30c] ss:$16 sps:$4 sm:$0xff]  }
 0x110   :  { %9710 = vst [vmem:[#allocation85_spill] sm:$0xff] %v7700_v22  ;;  %v2541_v57 = vpop.f32.mrf.mxu0  ;;  %3410 = vmatpush2.bf16.msra.mxu0 %v6182_v5  ;;  %v96_v34 = vld [vmem:[%s9497_s0 + $0x258] sm:$0xff] }
 0x111   :  { %v2764_v27 = vpop.f32.mrf.mxu1  ;;  %3633 = vmatpush2.bf16.msra.mxu1 %v6185_v58  ;;  %v7708_v35 = vadd.f32 %v2762_v7, %v2540_v37  ;;  %v2542_v48 = vadd.f32 %v2541_v57, %v7591_v51  ;;  %3411 = vmatprep.subr.bf16.mxu0 %v6190_v6  ;;  %v95_v6 = vld [vmem:[%s9497_s0 + $0x250] sm:$0xff]  ;;  %v100_v57 = vld [vmem:[%s9497_s0 + $0x278] sm:$0xff] }
 0x112   :  { %3634 = vmatprep.subr.bf16.mxu1 %v6193_v56  ;;  %v2545_v43 = vpop.f32.mrf.mxu0  ;;  %3040 = vmatmul.mubr.bf16.gmra.mxu0 %v7691_v54  ;;  %v99_v56 = vld [vmem:[%s9497_s0 + $0x270] sm:$0xff] }
 0x113   :  { %9711 = vst [vmem:[#allocation86_spill] sm:$0xff] %v7708_v35  ;;  %v2768_v5 = vpop.f32.mrf.mxu1  ;;  %3263 = vmatmul.mubr.bf16.gmra.mxu1 %v7693_v52  ;;  %v7719_v7 = vadd.f32 %v2764_v27, %v2542_v48  ;;  %v2546_v58 = vadd.f32 %v2545_v43, %v7577_v23  ;;  %3049 = vmatprep.mubr.bf16.mxu0 %v7698_v36  ;;  %v6194_v48 = vld [vmem:[%s9498_s1 + $0x108] ss:$16 sps:$4 sm:$0xff]   ;;  %v6202_v52 = vld [vmem:[%s9498_s1 + $0x4ec] ss:$16 sps:$4 sm:$0xff]  }
 0x114   :  { %3272 = vmatprep.mubr.bf16.mxu1 %v7700_v22  ;;  %v2547_v27 = vpop.f32.mrf.mxu0  ;;  %3412 = vmatpush2.bf16.msra.mxu0 %v6188_v26  ;;  %v6197_v43 = vld [vmem:[%s9498_s1 + $0x308] ss:$16 sps:$4 sm:$0xff]   ;;  %v6205_v26 = vld [vmem:[%s9498_s1 + $0x6ec] ss:$16 sps:$4 sm:$0xff]  }
 0x115   :  { %9712 = vst [vmem:[#allocation87_spill] sm:$0xff] %v7719_v7  ;;  %v2770_v37 = vpop.f32.mrf.mxu1  ;;  %3635 = vmatpush2.bf16.msra.mxu1 %v6191_v50  ;;  %v7742_v22 = vadd.f32 %v2768_v5, %v2546_v58  ;;  %v2548_v36 = vadd.f32 %v2547_v27, %v7591_v51  ;;  %3413 = vmatprep.subr.bf16.mxu0 %v6196_v14 }
 0x116   :  { %3636 = vmatprep.subr.bf16.mxu1 %v6199_v4  ;;  %v2549_v50 = vpop.f32.mrf.mxu0  ;;  %v7758_v14 = vcombine.high %v95_v6, %v99_v56  ;;  %v7760_v4 = vcombine.high %v96_v34, %v100_v57 }
 0x117   :  { %9713 = vst [vmem:[#allocation88_spill] sm:$0xff] %v7742_v22  ;;  %v2772_v54 = vpop.f32.mrf.mxu1  ;;  %v7755_v5 = vadd.f32 %v2770_v37, %v2548_v36  ;;  %v2550_v58 = vadd.f32 %v2549_v50, %v7577_v23  ;;  %v107_v37 = vld [vmem:[%s9497_s0 + $0x2b0] sm:$0xff] }
 0x118   :  { %9716 = vst [vmem:[#allocation91_spill] sm:$0xff] %v7758_v14  ;;  %9717 = vst [vmem:[#allocation92_spill] sm:$0xff] %v7760_v4  ;;  %v2551_v27 = vpop.f32.mrf.mxu0  ;;  %3414 = vmatpush2.bf16.msra.mxu0 %v6194_v48 }
 0x119   :  { %v2774_v22 = vpop.f32.mrf.mxu1  ;;  %3637 = vmatpush2.bf16.msra.mxu1 %v6197_v43  ;;  %v7762_v7 = vadd.f32 %v2772_v54, %v2550_v58  ;;  %v2552_v35 = vadd.f32 %v2551_v27, %v7591_v51  ;;  %3829 = vmatprep.subr.bf16.mxu0 %v6202_v52  ;;  %v103_v54 = vld [vmem:[%s9497_s0 + $0x290] sm:$0xff]  ;;  %v7787_v58 = vcombine.low %v95_v6, %v99_v56 }
 0x11a   :  { %4052 = vmatprep.subr.bf16.mxu1 %v6205_v26  ;;  %v2555_v9 = vpop.f32.mrf.mxu0  ;;  %3050 = vmatmul.mubr.bf16.gmra.mxu0 %v7751_v25  ;;  %v7789_v27 = vcombine.low %v96_v34, %v100_v57  ;;  %v111_v34 = vld [vmem:[%s9497_s0 + $0x2d0] sm:$0xff] }
 0x11b   :  { %v2778_v15 = vpop.f32.mrf.mxu1  ;;  %3273 = vmatmul.mubr.bf16.gmra.mxu1 %v7753_v24  ;;  %v7767_v42 = vadd.f32 %v2774_v22, %v2552_v35  ;;  %v2556_v33 = vadd.f32 %v2555_v9, %v7577_v23  ;;  %3059 = vmatprep.mubr.bf16.mxu0 %v7758_v14  ;;  %v104_v22 = vld [vmem:[%s9497_s0 + $0x298] sm:$0xff]  ;;  %9720 = vst [vmem:[#allocation95_spill] sm:$0xff] %v7787_v58 }
 0x11c   :  { %3282 = vmatprep.mubr.bf16.mxu1 %v7760_v4  ;;  %v2557_v52 = vpop.f32.mrf.mxu0  ;;  %v108_v35 = vld [vmem:[%s9497_s0 + $0x2b8] sm:$0xff]  ;;  %9721 = vst [vmem:[#allocation96_spill] sm:$0xff] %v7789_v27  ;;  %v7794_v14 = vcombine.high %v103_v54, %v107_v37 }
 0x11d   :  { %9718 = vst [vmem:[#allocation93_spill] sm:$0xff] %v7767_v42  ;;  %v2780_v36 = vpop.f32.mrf.mxu1  ;;  %v7784_v48 = vadd.f32 %v2778_v15, %v2556_v33  ;;  %v2558_v43 = vadd.f32 %v2557_v52, %v7591_v51  ;;  %v7796_v24 = vcombine.high %v104_v22, %v108_v35 }
 0x11e   :  { %v2559_v26 = vpop.f32.mrf.mxu0  ;;  %9723 = vst [vmem:[#allocation98_spill] sm:$0xff] %v7794_v14 }
 0x11f   :  { %9719 = vst [vmem:[#allocation94_spill] sm:$0xff] %v7784_v48  ;;  %v2782_v50 = vpop.f32.mrf.mxu1  ;;  %v7791_v9 = vadd.f32 %v2780_v36, %v2558_v43  ;;  %v2560_v4 = vadd.f32 %v2559_v26, %v7577_v23  ;;  %9724 = vst [vmem:[#allocation99_spill] sm:$0xff] %v7796_v24  ;;  %v116_v36 = vld [vmem:[%s9497_s0 + $0x2f8] sm:$0xff] }
 0x120   :  { %v2561_v25 = vpop.f32.mrf.mxu0 }
 0x121   :  { %9722 = vst [vmem:[#allocation97_spill] sm:$0xff] %v7791_v9  ;;  %v2784_v42 = vpop.f32.mrf.mxu1  ;;  %v7798_v15 = vadd.f32 %v2782_v50, %v2560_v4  ;;  %v2562_v33 = vadd.f32 %v2561_v25, %v7591_v51  ;;  %v115_v4 = vld [vmem:[%s9497_s0 + $0x2f0] sm:$0xff] }
 0x122   :  { %v2565_v52 = vpop.f32.mrf.mxu0  ;;  %3060 = vmatmul.mubr.bf16.gmra.mxu0 %v7787_v58  ;;  %v7830_v58 = vcombine.high %v111_v34, %v115_v4 }
 0x123   :  { %9725 = vst [vmem:[#allocation100_spill] sm:$0xff] %v7798_v15  ;;  %v2788_v48 = vpop.f32.mrf.mxu1  ;;  %3283 = vmatmul.mubr.bf16.gmra.mxu1 %v7789_v27  ;;  %v7803_v6 = vadd.f32 %v2784_v42, %v2562_v33  ;;  %v2566_v56 = vadd.f32 %v2565_v52, %v7577_v23  ;;  %3069 = vmatprep.mubr.bf16.mxu0 %v7794_v14  ;;  %v112_v42 = vld [vmem:[%s9497_s0 + $0x2d8] sm:$0xff] }
 0x124   :  { %3292 = vmatprep.mubr.bf16.mxu1 %v7796_v24  ;;  %v2567_v57 = vpop.f32.mrf.mxu0  ;;  %v7823_v52 = vcombine.low %v103_v54, %v107_v37  ;;  %v7825_v24 = vcombine.low %v104_v22, %v108_v35  ;;  %9731 = vst [vmem:[#allocation106_spill] sm:$0xff] %v7830_v58  ;;  %v119_v22 = vld [vmem:[%s9497_s0 + $0x310] sm:$0xff] }
 0x125   :  { %9726 = vst [vmem:[#allocation101_spill] sm:$0xff] %v7803_v6  ;;  %v2790_v25 = vpop.f32.mrf.mxu1  ;;  %v7820_v43 = vadd.f32 %v2788_v48, %v2566_v56  ;;  %v2568_v26 = vadd.f32 %v2567_v57, %v7591_v51  ;;  %v7832_v6 = vcombine.high %v112_v42, %v116_v36 }
 0x126   :  { %v2569_v50 = vpop.f32.mrf.mxu0  ;;  %9728 = vst [vmem:[#allocation103_spill] sm:$0xff] %v7823_v52  ;;  %9729 = vst [vmem:[#allocation104_spill] sm:$0xff] %v7825_v24 }
 0x127   :  { %9727 = vst [vmem:[#allocation102_spill] sm:$0xff] %v7820_v43  ;;  %v2792_v33 = vpop.f32.mrf.mxu1  ;;  %v7827_v14 = vadd.f32 %v2790_v25, %v2568_v26  ;;  %v2570_v27 = vadd.f32 %v2569_v50, %v7577_v23  ;;  %9732 = vst [vmem:[#allocation107_spill] sm:$0xff] %v7832_v6  ;;  %v124_v25 = vld [vmem:[%s9497_s0 + $0x338] sm:$0xff] }
 0x128   :  { %v2571_v15 = vpop.f32.mrf.mxu0 }
 0x129   :  { %9730 = vst [vmem:[#allocation105_spill] sm:$0xff] %v7827_v14  ;;  %v2794_v9 = vpop.f32.mrf.mxu1  ;;  %v7834_v48 = vadd.f32 %v2792_v33, %v2570_v27  ;;  %v2572_v56 = vadd.f32 %v2571_v15, %v7591_v51  ;;  %v123_v15 = vld [vmem:[%s9497_s0 + $0x330] sm:$0xff] }
 0x12a   :  { %v2575_v57 = vpop.f32.mrf.mxu0  ;;  %3070 = vmatmul.mubr.bf16.gmra.mxu0 %v7823_v52  ;;  %v7866_v52 = vcombine.high %v119_v22, %v123_v15 }
 0x12b   :  { %9733 = vst [vmem:[#allocation108_spill] sm:$0xff] %v7834_v48  ;;  %v2798_v43 = vpop.f32.mrf.mxu1  ;;  %3293 = vmatmul.mubr.bf16.gmra.mxu1 %v7825_v24  ;;  %v7839_v54 = vadd.f32 %v2794_v9, %v2572_v56  ;;  %v2576_v37 = vadd.f32 %v2575_v57, %v7577_v23  ;;  %3079 = vmatprep.mubr.bf16.mxu0 %v7830_v58  ;;  %v120_v9 = vld [vmem:[%s9497_s0 + $0x318] sm:$0xff] }
 0x12c   :  { %3302 = vmatprep.mubr.bf16.mxu1 %v7832_v6  ;;  %v2577_v35 = vpop.f32.mrf.mxu0  ;;  %v7859_v57 = vcombine.low %v111_v34, %v115_v4  ;;  %v7861_v6 = vcombine.low %v112_v42, %v116_v36  ;;  %9739 = vst [vmem:[#allocation114_spill] sm:$0xff] %v7866_v52 }
 0x12d   :  { %9734 = vst [vmem:[#allocation109_spill] sm:$0xff] %v7839_v54  ;;  %v2800_v27 = vpop.f32.mrf.mxu1  ;;  %v7856_v26 = vadd.f32 %v2798_v43, %v2576_v37  ;;  %v2578_v50 = vadd.f32 %v2577_v35, %v7591_v51  ;;  %v7868_v54 = vcombine.high %v120_v9, %v124_v25 }
 0x12e   :  { %v2579_v33 = vpop.f32.mrf.mxu0  ;;  %9736 = vst [vmem:[#allocation111_spill] sm:$0xff] %v7859_v57  ;;  %9737 = vst [vmem:[#allocation112_spill] sm:$0xff] %v7861_v6 }
 0x12f   :  { %9735 = vst [vmem:[#allocation110_spill] sm:$0xff] %v7856_v26  ;;  %v2802_v56 = vpop.f32.mrf.mxu1  ;;  %v7863_v58 = vadd.f32 %v2800_v27, %v2578_v50  ;;  %v2580_v24 = vadd.f32 %v2579_v33, %v7577_v23  ;;  %9740 = vst [vmem:[#allocation115_spill] sm:$0xff] %v7868_v54  ;;  %v132_v27 = vld [vmem:[%s9497_s0 + $0x378] sm:$0xff] }
 0x130   :  { %v2581_v48 = vpop.f32.mrf.mxu0 }
 0x131   :  { %9738 = vst [vmem:[#allocation113_spill] sm:$0xff] %v7863_v58  ;;  %v2804_v14 = vpop.f32.mrf.mxu1  ;;  %v7870_v43 = vadd.f32 %v2802_v56, %v2580_v24  ;;  %v2582_v37 = vadd.f32 %v2581_v48, %v7591_v51  ;;  %v127_v24 = vld [vmem:[%s9497_s0 + $0x350] sm:$0xff] }
 0x132   :  { %v2585_v35 = vpop.f32.mrf.mxu0  ;;  %3080 = vmatmul.mubr.bf16.gmra.mxu0 %v7859_v57  ;;  %v131_v48 = vld [vmem:[%s9497_s0 + $0x370] sm:$0xff] }
 0x133   :  { %9741 = vst [vmem:[#allocation116_spill] sm:$0xff] %v7870_v43  ;;  %v2808_v26 = vpop.f32.mrf.mxu1  ;;  %3303 = vmatmul.mubr.bf16.gmra.mxu1 %v7861_v6  ;;  %v7875_v34 = vadd.f32 %v2804_v14, %v2582_v37  ;;  %v2586_v4 = vadd.f32 %v2585_v35, %v7577_v23  ;;  %3089 = vmatprep.mubr.bf16.mxu0 %v7866_v52  ;;  %v128_v14 = vld [vmem:[%s9497_s0 + $0x358] sm:$0xff] }
 0x134   :  { %3312 = vmatprep.mubr.bf16.mxu1 %v7868_v54  ;;  %v2587_v42 = vpop.f32.mrf.mxu0  ;;  %v7895_v35 = vcombine.low %v119_v22, %v123_v15  ;;  %v7897_v54 = vcombine.low %v120_v9, %v124_v25  ;;  %v7902_v57 = vcombine.high %v127_v24, %v131_v48 }
 0x135   :  { %9742 = vst [vmem:[#allocation117_spill] sm:$0xff] %v7875_v34  ;;  %v2810_v36 = vpop.f32.mrf.mxu1  ;;  %v7892_v50 = vadd.f32 %v2808_v26, %v2586_v4  ;;  %v2588_v33 = vadd.f32 %v2587_v42, %v7591_v51  ;;  %v7904_v34 = vcombine.high %v128_v14, %v132_v27 }
 0x136   :  { %v2589_v56 = vpop.f32.mrf.mxu0  ;;  %9744 = vst [vmem:[#allocation119_spill] sm:$0xff] %v7895_v35  ;;  %9745 = vst [vmem:[#allocation120_spill] sm:$0xff] %v7897_v54 }
 0x137   :  { %9743 = vst [vmem:[#allocation118_spill] sm:$0xff] %v7892_v50  ;;  %v2812_v37 = vpop.f32.mrf.mxu1  ;;  %v7899_v52 = vadd.f32 %v2810_v36, %v2588_v33  ;;  %v2590_v6 = vadd.f32 %v2589_v56, %v7577_v23  ;;  %9747 = vst [vmem:[#allocation122_spill] sm:$0xff] %v7902_v57  ;;  %v140_v36 = vld [vmem:[%s9497_s0 + $0x3b8] sm:$0xff] }
 0x138   :  { %9748 = vst [vmem:[#allocation123_spill] sm:$0xff] %v7904_v34  ;;  %v2591_v43 = vpop.f32.mrf.mxu0 }
 0x139   :  { %9746 = vst [vmem:[#allocation121_spill] sm:$0xff] %v7899_v52  ;;  %v2814_v58 = vpop.f32.mrf.mxu1  ;;  %v7906_v26 = vadd.f32 %v2812_v37, %v2590_v6  ;;  %v2592_v4 = vadd.f32 %v2591_v43, %v7591_v51  ;;  %v135_v6 = vld [vmem:[%s9497_s0 + $0x390] sm:$0xff] }
 0x13a   :  { %v2595_v42 = vpop.f32.mrf.mxu0  ;;  %3090 = vmatmul.mubr.bf16.gmra.mxu0 %v7895_v35  ;;  %v139_v43 = vld [vmem:[%s9497_s0 + $0x3b0] sm:$0xff] }
 0x13b   :  { %9749 = vst [vmem:[#allocation124_spill] sm:$0xff] %v7906_v26  ;;  %v2818_v50 = vpop.f32.mrf.mxu1  ;;  %3313 = vmatmul.mubr.bf16.gmra.mxu1 %v7897_v54  ;;  %v7911_v22 = vadd.f32 %v2814_v58, %v2592_v4  ;;  %v2596_v15 = vadd.f32 %v2595_v42, %v7577_v23  ;;  %3099 = vmatprep.mubr.bf16.mxu0 %v7902_v57  ;;  %v136_v58 = vld [vmem:[%s9497_s0 + $0x398] sm:$0xff] }
 0x13c   :  { %3322 = vmatprep.mubr.bf16.mxu1 %v7904_v34  ;;  %v2597_v9 = vpop.f32.mrf.mxu0  ;;  %v7931_v42 = vcombine.low %v127_v24, %v131_v48  ;;  %v7933_v34 = vcombine.low %v128_v14, %v132_v27  ;;  %v7938_v35 = vcombine.high %v135_v6, %v139_v43 }
 0x13d   :  { %9750 = vst [vmem:[#allocation125_spill] sm:$0xff] %v7911_v22  ;;  %v2820_v25 = vpop.f32.mrf.mxu1  ;;  %v7928_v33 = vadd.f32 %v2818_v50, %v2596_v15  ;;  %v2598_v56 = vadd.f32 %v2597_v9, %v7591_v51  ;;  %v7940_v22 = vcombine.high %v136_v58, %v140_v36 }
 0x13e   :  { %v2599_v37 = vpop.f32.mrf.mxu0  ;;  %9752 = vst [vmem:[#allocation127_spill] sm:$0xff] %v7931_v42  ;;  %9753 = vst [vmem:[#allocation128_spill] sm:$0xff] %v7933_v34 }
 0x13f   :  { %9751 = vst [vmem:[#allocation126_spill] sm:$0xff] %v7928_v33  ;;  %v2822_v4 = vpop.f32.mrf.mxu1  ;;  %v7935_v57 = vadd.f32 %v2820_v25, %v2598_v56  ;;  %v2600_v54 = vadd.f32 %v2599_v37, %v7577_v23  ;;  %9755 = vst [vmem:[#allocation130_spill] sm:$0xff] %v7938_v35  ;;  %v148_v25 = vld [vmem:[%s9497_s0 + $0x3f8] sm:$0xff] }
 0x140   :  { %9756 = vst [vmem:[#allocation131_spill] sm:$0xff] %v7940_v22  ;;  %v2601_v26 = vpop.f32.mrf.mxu0 }
 0x141   :  { %9754 = vst [vmem:[#allocation129_spill] sm:$0xff] %v7935_v57  ;;  %v2824_v52 = vpop.f32.mrf.mxu1  ;;  %v7942_v50 = vadd.f32 %v2822_v4, %v2600_v54  ;;  %v2602_v15 = vadd.f32 %v2601_v26, %v7591_v51  ;;  %v143_v54 = vld [vmem:[%s9497_s0 + $0x3d0] sm:$0xff] }
 0x142   :  { %v2605_v9 = vpop.f32.mrf.mxu0  ;;  %3100 = vmatmul.mubr.bf16.gmra.mxu0 %v7931_v42  ;;  %v147_v26 = vld [vmem:[%s9497_s0 + $0x3f0] sm:$0xff] }
 0x143   :  { %9757 = vst [vmem:[#allocation132_spill] sm:$0xff] %v7942_v50  ;;  %v2828_v33 = vpop.f32.mrf.mxu1  ;;  %3323 = vmatmul.mubr.bf16.gmra.mxu1 %v7933_v34  ;;  %v7947_v24 = vadd.f32 %v2824_v52, %v2602_v15  ;;  %v2606_v48 = vadd.f32 %v2605_v9, %v7577_v23  ;;  %3109 = vmatprep.mubr.bf16.mxu0 %v7938_v35  ;;  %v144_v52 = vld [vmem:[%s9497_s0 + $0x3d8] sm:$0xff] }
 0x144   :  { %3332 = vmatprep.mubr.bf16.mxu1 %v7940_v22  ;;  %v2607_v14 = vpop.f32.mrf.mxu0  ;;  %v7967_v9 = vcombine.low %v135_v6, %v139_v43  ;;  %v7969_v22 = vcombine.low %v136_v58, %v140_v36  ;;  %v7974_v42 = vcombine.high %v143_v54, %v147_v26 }
 0x145   :  { %9758 = vst [vmem:[#allocation133_spill] sm:$0xff] %v7947_v24  ;;  %v2830_v27 = vpop.f32.mrf.mxu1  ;;  %v7964_v56 = vadd.f32 %v2828_v33, %v2606_v48  ;;  %v2608_v37 = vadd.f32 %v2607_v14, %v7591_v51  ;;  %v7976_v24 = vcombine.high %v144_v52, %v148_v25 }
 0x146   :  { %v2609_v4 = vpop.f32.mrf.mxu0  ;;  %9760 = vst [vmem:[#allocation135_spill] sm:$0xff] %v7967_v9  ;;  %9761 = vst [vmem:[#allocation136_spill] sm:$0xff] %v7969_v22 }
 0x147   :  { %9759 = vst [vmem:[#allocation134_spill] sm:$0xff] %v7964_v56  ;;  %v2832_v15 = vpop.f32.mrf.mxu1  ;;  %v7971_v35 = vadd.f32 %v2830_v27, %v2608_v37  ;;  %v2610_v34 = vadd.f32 %v2609_v4, %v7577_v23  ;;  %9763 = vst [vmem:[#allocation138_spill] sm:$0xff] %v7974_v42  ;;  %v156_v27 = vld [vmem:[%s9497_s0 + $0x438] sm:$0xff] }
 0x148   :  { %9764 = vst [vmem:[#allocation139_spill] sm:$0xff] %v7976_v24  ;;  %v2611_v50 = vpop.f32.mrf.mxu0 }
 0x149   :  { %9762 = vst [vmem:[#allocation137_spill] sm:$0xff] %v7971_v35  ;;  %v2834_v57 = vpop.f32.mrf.mxu1  ;;  %v7978_v33 = vadd.f32 %v2832_v15, %v2610_v34  ;;  %v2612_v48 = vadd.f32 %v2611_v50, %v7591_v51  ;;  %v151_v34 = vld [vmem:[%s9497_s0 + $0x410] sm:$0xff] }
 0x14a   :  { %v2615_v14 = vpop.f32.mrf.mxu0  ;;  %3110 = vmatmul.mubr.bf16.gmra.mxu0 %v7967_v9  ;;  %v155_v50 = vld [vmem:[%s9497_s0 + $0x430] sm:$0xff] }
 0x14b   :  { %9765 = vst [vmem:[#allocation140_spill] sm:$0xff] %v7978_v33  ;;  %v2838_v56 = vpop.f32.mrf.mxu1  ;;  %3333 = vmatmul.mubr.bf16.gmra.mxu1 %v7969_v22  ;;  %v7983_v6 = vadd.f32 %v2834_v57, %v2612_v48  ;;  %v2616_v43 = vadd.f32 %v2615_v14, %v7577_v23  ;;  %3119 = vmatprep.mubr.bf16.mxu0 %v7974_v42  ;;  %v152_v57 = vld [vmem:[%s9497_s0 + $0x418] sm:$0xff] }
 0x14c   :  { %3342 = vmatprep.mubr.bf16.mxu1 %v7976_v24  ;;  %v2617_v58 = vpop.f32.mrf.mxu0  ;;  %v8003_v14 = vcombine.low %v143_v54, %v147_v26  ;;  %v8005_v24 = vcombine.low %v144_v52, %v148_v25  ;;  %v8010_v9 = vcombine.high %v151_v34, %v155_v50 }
 0x14d   :  { %9766 = vst [vmem:[#allocation141_spill] sm:$0xff] %v7983_v6  ;;  %v2840_v36 = vpop.f32.mrf.mxu1  ;;  %v8000_v37 = vadd.f32 %v2838_v56, %v2616_v43  ;;  %v2618_v4 = vadd.f32 %v2617_v58, %v7591_v51  ;;  %v8012_v6 = vcombine.high %v152_v57, %v156_v27 }
 0x14e   :  { %v2619_v15 = vpop.f32.mrf.mxu0  ;;  %9768 = vst [vmem:[#allocation143_spill] sm:$0xff] %v8003_v14  ;;  %9769 = vst [vmem:[#allocation144_spill] sm:$0xff] %v8005_v24 }
 0x14f   :  { %9767 = vst [vmem:[#allocation142_spill] sm:$0xff] %v8000_v37  ;;  %v2842_v48 = vpop.f32.mrf.mxu1  ;;  %v8007_v42 = vadd.f32 %v2840_v36, %v2618_v4  ;;  %v2620_v22 = vadd.f32 %v2619_v15, %v7577_v23  ;;  %9771 = vst [vmem:[#allocation146_spill] sm:$0xff] %v8010_v9  ;;  %v164_v36 = vld [vmem:[%s9497_s0 + $0x478] sm:$0xff] }
 0x150   :  { %9772 = vst [vmem:[#allocation147_spill] sm:$0xff] %v8012_v6  ;;  %v2621_v33 = vpop.f32.mrf.mxu0 }
 0x151   :  { %9770 = vst [vmem:[#allocation145_spill] sm:$0xff] %v8007_v42  ;;  %v2844_v35 = vpop.f32.mrf.mxu1  ;;  %v8014_v56 = vadd.f32 %v2842_v48, %v2620_v22  ;;  %v2622_v43 = vadd.f32 %v2621_v33, %v7591_v51  ;;  %v159_v22 = vld [vmem:[%s9497_s0 + $0x450] sm:$0xff] }
 0x152   :  { %v2625_v58 = vpop.f32.mrf.mxu0  ;;  %3120 = vmatmul.mubr.bf16.gmra.mxu0 %v8003_v14  ;;  %v163_v33 = vld [vmem:[%s9497_s0 + $0x470] sm:$0xff] }
 0x153   :  { %9773 = vst [vmem:[#allocation148_spill] sm:$0xff] %v8014_v56  ;;  %v2848_v37 = vpop.f32.mrf.mxu1  ;;  %3343 = vmatmul.mubr.bf16.gmra.mxu1 %v8005_v24  ;;  %v8019_v54 = vadd.f32 %v2844_v35, %v2622_v43  ;;  %v2626_v26 = vadd.f32 %v2625_v58, %v7577_v23  ;;  %3129 = vmatprep.mubr.bf16.mxu0 %v8010_v9  ;;  %v160_v35 = vld [vmem:[%s9497_s0 + $0x458] sm:$0xff] }
 0x154   :  { %3352 = vmatprep.mubr.bf16.mxu1 %v8012_v6  ;;  %v2627_v52 = vpop.f32.mrf.mxu0  ;;  %v8039_v58 = vcombine.low %v151_v34, %v155_v50  ;;  %v8041_v6 = vcombine.low %v152_v57, %v156_v27  ;;  %v8046_v14 = vcombine.high %v159_v22, %v163_v33 }
 0x155   :  { %9774 = vst [vmem:[#allocation149_spill] sm:$0xff] %v8019_v54  ;;  %v2850_v25 = vpop.f32.mrf.mxu1  ;;  %v8036_v4 = vadd.f32 %v2848_v37, %v2626_v26  ;;  %v2628_v15 = vadd.f32 %v2627_v52, %v7591_v51  ;;  %v8048_v54 = vcombine.high %v160_v35, %v164_v36 }
 0x156   :  { %v2629_v48 = vpop.f32.mrf.mxu0  ;;  %9776 = vst [vmem:[#allocation151_spill] sm:$0xff] %v8039_v58  ;;  %9777 = vst [vmem:[#allocation152_spill] sm:$0xff] %v8041_v6 }
 0x157   :  { %9775 = vst [vmem:[#allocation150_spill] sm:$0xff] %v8036_v4  ;;  %v2852_v43 = vpop.f32.mrf.mxu1  ;;  %v8043_v9 = vadd.f32 %v2850_v25, %v2628_v15  ;;  %v2630_v24 = vadd.f32 %v2629_v48, %v7577_v23  ;;  %9779 = vst [vmem:[#allocation154_spill] sm:$0xff] %v8046_v14  ;;  %v172_v25 = vld [vmem:[%s9497_s0 + $0x4b8] sm:$0xff] }
 0x158   :  { %9780 = vst [vmem:[#allocation155_spill] sm:$0xff] %v8048_v54  ;;  %v2631_v56 = vpop.f32.mrf.mxu0 }
 0x159   :  { %9778 = vst [vmem:[#allocation153_spill] sm:$0xff] %v8043_v9  ;;  %v2854_v42 = vpop.f32.mrf.mxu1  ;;  %v8050_v37 = vadd.f32 %v2852_v43, %v2630_v24  ;;  %v2632_v26 = vadd.f32 %v2631_v56, %v7591_v51  ;;  %v167_v24 = vld [vmem:[%s9497_s0 + $0x490] sm:$0xff] }
 0x15a   :  { %v2635_v52 = vpop.f32.mrf.mxu0  ;;  %3130 = vmatmul.mubr.bf16.gmra.mxu0 %v8039_v58  ;;  %v171_v56 = vld [vmem:[%s9497_s0 + $0x4b0] sm:$0xff] }
 0x15b   :  { %9781 = vst [vmem:[#allocation156_spill] sm:$0xff] %v8050_v37  ;;  %v2858_v4 = vpop.f32.mrf.mxu1  ;;  %3353 = vmatmul.mubr.bf16.gmra.mxu1 %v8041_v6  ;;  %v8055_v34 = vadd.f32 %v2854_v42, %v2632_v26  ;;  %v2636_v50 = vadd.f32 %v2635_v52, %v7577_v23  ;;  %3139 = vmatprep.mubr.bf16.mxu0 %v8046_v14  ;;  %v168_v42 = vld [vmem:[%s9497_s0 + $0x498] sm:$0xff] }
 0x15c   :  { %3362 = vmatprep.mubr.bf16.mxu1 %v8048_v54  ;;  %v2637_v57 = vpop.f32.mrf.mxu0  ;;  %v8075_v52 = vcombine.low %v159_v22, %v163_v33  ;;  %v8077_v54 = vcombine.low %v160_v35, %v164_v36  ;;  %v8082_v58 = vcombine.high %v167_v24, %v171_v56 }
 0x15d   :  { %9782 = vst [vmem:[#allocation157_spill] sm:$0xff] %v8055_v34  ;;  %v2860_v27 = vpop.f32.mrf.mxu1  ;;  %v8072_v15 = vadd.f32 %v2858_v4, %v2636_v50  ;;  %v2638_v48 = vadd.f32 %v2637_v57, %v7591_v51  ;;  %v8084_v34 = vcombine.high %v168_v42, %v172_v25 }
 0x15e   :  { %v2639_v43 = vpop.f32.mrf.mxu0  ;;  %9784 = vst [vmem:[#allocation159_spill] sm:$0xff] %v8075_v52  ;;  %9785 = vst [vmem:[#allocation160_spill] sm:$0xff] %v8077_v54 }
 0x15f   :  { %9783 = vst [vmem:[#allocation158_spill] sm:$0xff] %v8072_v15  ;;  %v2862_v26 = vpop.f32.mrf.mxu1  ;;  %v8079_v14 = vadd.f32 %v2860_v27, %v2638_v48  ;;  %v2640_v6 = vadd.f32 %v2639_v43, %v7577_v23  ;;  %9786 = vst [vmem:[#allocation161_spill] sm:$0xff] %v8082_v58  ;;  %v8099_v43 = vcombine.low %v167_v24, %v171_v56 }
 0x160   :  { %9787 = vst [vmem:[#allocation162_spill] sm:$0xff] %v8084_v34  ;;  %v2641_v37 = vpop.f32.mrf.mxu0 }
 0x161   :  { %v2864_v9 = vpop.f32.mrf.mxu1  ;;  %v8086_v4 = vadd.f32 %v2862_v26, %v2640_v6  ;;  %v2642_v50 = vadd.f32 %v2641_v37, %v7591_v51  ;;  %9788 = vst [vmem:[#allocation163_spill] sm:$0xff] %v8099_v43  ;;  %v8101_v26 = vcombine.low %v168_v42, %v172_v25 }
 0x162   :  { %v2645_v57 = vpop.f32.mrf.mxu0  ;;  %3140 = vmatmul.mubr.bf16.gmra.mxu0 %v8075_v52  ;;  %v6212_v52 = vld [vmem:[%s9498_s1 + $0x4a8] ss:$16 sps:$4 sm:$0xff]  }
 0x163   :  { %v2868_v15 = vpop.f32.mrf.mxu1  ;;  %3363 = vmatmul.mubr.bf16.gmra.mxu1 %v8077_v54  ;;  %v8091_v22 = vadd.f32 %v2864_v9, %v2642_v50  ;;  %v2646_v33 = vadd.f32 %v2645_v57, %v7577_v23  ;;  %3149 = vmatprep.mubr.bf16.mxu0 %v8082_v58  ;;  %9789 = vst [vmem:[#allocation164_spill] sm:$0xff] %v8101_v26 }
 0x164   :  { %3372 = vmatprep.mubr.bf16.mxu1 %v8084_v34  ;;  %v2647_v35 = vpop.f32.mrf.mxu0 }
 0x165   :  { %v2870_v36 = vpop.f32.mrf.mxu1  ;;  %v8096_v6 = vadd.f32 %v2868_v15, %v2646_v33  ;;  %v2648_v37 = vadd.f32 %v2647_v35, %v7591_v51 }
 0x166   :  { %v2649_v27 = vpop.f32.mrf.mxu0 }
 0x167   :  { %v2872_v48 = vpop.f32.mrf.mxu1  ;;  %v8103_v9 = vadd.f32 %v2870_v36, %v2648_v37  ;;  %v2650_v50 = vadd.f32 %v2649_v27, %v7577_v23 }
 0x168   :  { %v2651_v57 = vpop.f32.mrf.mxu0 }
 0x169   :  { %v2874_v58 = vpop.f32.mrf.mxu1  ;;  %v8106_v54 = vadd.f32 %v2872_v48, %v2650_v50  ;;  %v2652_v34 = vadd.f32 %v2651_v57, %v7591_v51 }
 0x16a   :  { %v2655_v15 = vpop.f32.mrf.mxu0  ;;  %3150 = vmatmul.mubr.bf16.gmra.mxu0 %v8099_v43 }
 0x16b   :  { %v2878_v33 = vpop.f32.mrf.mxu1  ;;  %3373 = vmatmul.mubr.bf16.gmra.mxu1 %v8101_v26  ;;  %v8111_v24 = vadd.f32 %v2874_v58, %v2652_v34  ;;  %v2656_v56 = vadd.f32 %v2655_v15, %v7577_v23  ;;  %3415 = vmatprep.mubr.bf16.mxu0 %v6607_v53  ;;  %v6200_v58 = vld [vmem:[%s9498_s1 + $0x4e8] ss:$16 sps:$4 sm:$0xff]  }
 0x16c   :  { %3638 = vmatprep.mubr.bf16.mxu1 %v6612_v55  ;;  %v2657_v42 = vpop.f32.mrf.mxu0  ;;  %v6203_v53 = vld [vmem:[%s9498_s1 + $0x6e8] ss:$16 sps:$4 sm:$0xff]  }
 0x16d   :  { %v2880_v25 = vpop.f32.mrf.mxu1  ;;  %v8116_v35 = vadd.f32 %v2878_v33, %v2656_v56  ;;  %v2658_v36 = vadd.f32 %v2657_v42, %v7591_v51  ;;  %v6208_v33 = vld [vmem:[%s9498_s1 + $0x4cc] ss:$16 sps:$4 sm:$0xff]  }
 0x16e   :  { %v2659_v37 = vpop.f32.mrf.mxu0  ;;  %v6211_v56 = vld [vmem:[%s9498_s1 + $0x6cc] ss:$16 sps:$4 sm:$0xff]  }
 0x16f   :  { %v2882_v27 = vpop.f32.mrf.mxu1  ;;  %v8119_v48 = vadd.f32 %v2880_v25, %v2658_v36  ;;  %v2660_v50 = vadd.f32 %v2659_v37, %v7577_v23 }
 0x170   :  { %v2661_v55 = vpop.f32.mrf.mxu0 }
 0x171   :  { %v2884_v34 = vpop.f32.mrf.mxu1  ;;  %v8128_v57 = vadd.f32 %v2882_v27, %v2660_v50  ;;  %v2662_v15 = vadd.f32 %v2661_v55, %v7591_v51  ;;  %v6206_v27 = vld [vmem:[%s9498_s1 + $0x4c8] ss:$16 sps:$4 sm:$0xff]  }
 0x172   :  { %v2665_v42 = vpop.f32.mrf.mxu0  ;;  %3416 = vmatmul.mubr.bf16.vlgmr.msra.gmra.mxu0 %v6676_v12  ;;  %v6209_v50 = vld [vmem:[%s9498_s1 + $0x6c8] ss:$16 sps:$4 sm:$0xff]   ;;  %v6214_v12 = vld [vmem:[%s9498_s1 + $0x4ac] ss:$16 sps:$4 sm:$0xff]  }
 0x173   :  { %v2888_v25 = vpop.f32.mrf.mxu1  ;;  %3639 = vmatmul.mubr.bf16.vlgmr.msra.gmra.mxu1 %v6678_v13  ;;  %v8139_v36 = vadd.f32 %v2884_v34, %v2662_v15  ;;  %v2666_v37 = vadd.f32 %v2665_v42, %v7577_v23  ;;  %3830 = vmatpush1.bf16.msra.mxu0 %v6200_v58  ;;  %v6217_v13 = vld [vmem:[%s9498_s1 + $0x6ac] ss:$16 sps:$4 sm:$0xff]  }
 0x174   :  { %4053 = vmatpush1.bf16.msra.mxu1 %v6203_v53  ;;  %v2667_v55 = vpop.f32.mrf.mxu0  ;;  %3425 = vmatprep.mubr.bf16.mxu0 %v6686_v16 }
 0x175   :  { %v2890_v26 = vpop.f32.mrf.mxu1  ;;  %3648 = vmatprep.mubr.bf16.mxu1 %v6688_v17  ;;  %v8156_v58 = vadd.f32 %v2888_v25, %v2666_v37  ;;  %v2668_v53 = vadd.f32 %v2667_v55, %v7591_v51  ;;  %3831 = vmatprep.subr.bf16.mxu0 %v6208_v33  ;;  %v6215_v33 = vld [vmem:[%s9498_s1 + $0x6a8] ss:$16 sps:$4 sm:$0xff]   ;;  %v6220_v25 = vld [vmem:[%s9498_s1 + $0x48c] ss:$16 sps:$4 sm:$0xff]  }
 0x176   :  { %4054 = vmatprep.subr.bf16.mxu1 %v6211_v56  ;;  %v2669_v34 = vpop.f32.mrf.mxu0  ;;  %v6223_v37 = vld [vmem:[%s9498_s1 + $0x68c] ss:$16 sps:$4 sm:$0xff]  }
 0x177   :  { %v2892_v15 = vpop.f32.mrf.mxu1  ;;  %v8159_v42 = vadd.f32 %v2890_v26, %v2668_v53  ;;  %v2670_v16 = vadd.f32 %v2669_v34, %v7577_v23  ;;  %3832 = vmatpush1.bf16.msra.mxu0 %v6206_v27  ;;  %v6218_v34 = vld [vmem:[%s9498_s1 + $0x488] ss:$16 sps:$4 sm:$0xff]  }
 0x178   :  { %4055 = vmatpush1.bf16.msra.mxu1 %v6209_v50  ;;  %v2671_v17 = vpop.f32.mrf.mxu0  ;;  %3833 = vmatprep.subr.bf16.mxu0 %v6214_v12 }
 0x179   :  { %v2894_v43 = vpop.f32.mrf.mxu1  ;;  %4056 = vmatprep.subr.bf16.mxu1 %v6217_v13  ;;  %v8168_v56 = vadd.f32 %v2892_v15, %v2670_v16  ;;  %v2672_v26 = vadd.f32 %v2671_v17, %v7591_v51 }
 0x17a   :  { %v2675_v27 = vpop.f32.mrf.mxu0  ;;  %3426 = vmatmul.mubr.bf16.gmra.mxu0 %v6724_v28  ;;  %v6221_v28 = vld [vmem:[%s9498_s1 + $0x688] ss:$16 sps:$4 sm:$0xff]  }
 0x17b   :  { %v2898_v50 = vpop.f32.mrf.mxu1  ;;  %3649 = vmatmul.mubr.bf16.gmra.mxu1 %v6726_v29  ;;  %v8179_v55 = vadd.f32 %v2894_v43, %v2672_v26  ;;  %v2676_v12 = vadd.f32 %v2675_v27, %v7577_v23  ;;  %3435 = vmatprep.mubr.bf16.mxu0 %v6728_v30  ;;  %v6226_v30 = vld [vmem:[%s9498_s1 + $0x46c] ss:$16 sps:$4 sm:$0xff]  }
 0x17c   :  { %3658 = vmatprep.mubr.bf16.mxu1 %v6730_v31  ;;  %v2677_v13 = vpop.f32.mrf.mxu0  ;;  %3834 = vmatpush1.bf16.msra.mxu0 %v6212_v52  ;;  %v6229_v31 = vld [vmem:[%s9498_s1 + $0x66c] ss:$16 sps:$4 sm:$0xff]  }
 0x17d   :  { %v2900_v53 = vpop.f32.mrf.mxu1  ;;  %4057 = vmatpush1.bf16.msra.mxu1 %v6215_v33  ;;  %v8190_v29 = vadd.f32 %v2898_v50, %v2676_v12  ;;  %v2678_v43 = vadd.f32 %v2677_v13, %v7591_v51  ;;  %3835 = vmatprep.subr.bf16.mxu0 %v6220_v25  ;;  %v6224_v25 = vld [vmem:[%s9498_s1 + $0x468] ss:$16 sps:$4 sm:$0xff]   ;;  %v6232_v12 = vld [vmem:[%s9498_s1 + $0x44c] ss:$16 sps:$4 sm:$0xff]  }
 0x17e   :  { %4058 = vmatprep.subr.bf16.mxu1 %v6223_v37  ;;  %v2679_v52 = vpop.f32.mrf.mxu0  ;;  %v6227_v37 = vld [vmem:[%s9498_s1 + $0x668] ss:$16 sps:$4 sm:$0xff]   ;;  %v6235_v13 = vld [vmem:[%s9498_s1 + $0x64c] ss:$16 sps:$4 sm:$0xff]  }
 0x17f   :  { %v2902_v15 = vpop.f32.mrf.mxu1  ;;  %v8199_v16 = vadd.f32 %v2900_v53, %v2678_v43  ;;  %v2680_v17 = vadd.f32 %v2679_v52, %v7577_v23  ;;  %v6230_v52 = vld [vmem:[%s9498_s1 + $0x448] ss:$16 sps:$4 sm:$0xff]  }
 0x180   :  { %v2681_v33 = vpop.f32.mrf.mxu0  ;;  %3836 = vmatpush1.bf16.msra.mxu0 %v6218_v34 }
 0x181   :  { %v2904_v26 = vpop.f32.mrf.mxu1  ;;  %4059 = vmatpush1.bf16.msra.mxu1 %v6221_v28  ;;  %v8208_v27 = vadd.f32 %v2902_v15, %v2680_v17  ;;  %v2682_v50 = vadd.f32 %v2681_v33, %v7591_v51  ;;  %3837 = vmatprep.subr.bf16.mxu0 %v6226_v30 }
 0x182   :  { %4060 = vmatprep.subr.bf16.mxu1 %v6229_v31  ;;  %v2685_v53 = vpop.f32.mrf.mxu0  ;;  %3436 = vmatmul.mubr.bf16.gmra.mxu0 %v6772_v44  ;;  %v6233_v44 = vld [vmem:[%s9498_s1 + $0x648] ss:$16 sps:$4 sm:$0xff]  }
 0x183   :  { %v2908_v34 = vpop.f32.mrf.mxu1  ;;  %3659 = vmatmul.mubr.bf16.gmra.mxu1 %v6774_v45  ;;  %v8219_v28 = vadd.f32 %v2904_v26, %v2682_v50  ;;  %v2686_v43 = vadd.f32 %v2685_v53, %v7577_v23  ;;  %3445 = vmatprep.mubr.bf16.mxu0 %v6776_v46  ;;  %v6238_v46 = vld [vmem:[%s9498_s1 + $0x42c] ss:$16 sps:$4 sm:$0xff]  }
 0x184   :  { %3668 = vmatprep.mubr.bf16.mxu1 %v6778_v47  ;;  %v2687_v30 = vpop.f32.mrf.mxu0  ;;  %3838 = vmatpush1.bf16.msra.mxu0 %v6224_v25  ;;  %v6241_v47 = vld [vmem:[%s9498_s1 + $0x62c] ss:$16 sps:$4 sm:$0xff]  }
 0x185   :  { %v2910_v31 = vpop.f32.mrf.mxu1  ;;  %4061 = vmatpush1.bf16.msra.mxu1 %v6227_v37  ;;  %v8230_v45 = vadd.f32 %v2908_v34, %v2686_v43  ;;  %v2688_v15 = vadd.f32 %v2687_v30, %v7591_v51  ;;  %3839 = vmatprep.subr.bf16.mxu0 %v6232_v12  ;;  %v6236_v12 = vld [vmem:[%s9498_s1 + $0x428] ss:$16 sps:$4 sm:$0xff]   ;;  %v6244_v43 = vld [vmem:[%s9498_s1 + $0x40c] ss:$16 sps:$4 sm:$0xff]  }
 0x186   :  { %4062 = vmatprep.subr.bf16.mxu1 %v6235_v13  ;;  %v2689_v17 = vpop.f32.mrf.mxu0  ;;  %v6239_v13 = vld [vmem:[%s9498_s1 + $0x628] ss:$16 sps:$4 sm:$0xff]   ;;  %v6247_v30 = vld [vmem:[%s9498_s1 + $0x60c] ss:$16 sps:$4 sm:$0xff]  }
 0x187   :  { %v2912_v33 = vpop.f32.mrf.mxu1  ;;  %v8239_v26 = vadd.f32 %v2910_v31, %v2688_v15  ;;  %v2690_v25 = vadd.f32 %v2689_v17, %v7577_v23  ;;  %v6242_v17 = vld [vmem:[%s9498_s1 + $0x408] ss:$16 sps:$4 sm:$0xff]  }
 0x188   :  { %v2691_v37 = vpop.f32.mrf.mxu0  ;;  %3840 = vmatpush1.bf16.msra.mxu0 %v6230_v52 }
 0x189   :  { %v2914_v50 = vpop.f32.mrf.mxu1  ;;  %4063 = vmatpush1.bf16.msra.mxu1 %v6233_v44  ;;  %v8248_v53 = vadd.f32 %v2912_v33, %v2690_v25  ;;  %v2692_v34 = vadd.f32 %v2691_v37, %v7591_v51  ;;  %3841 = vmatprep.subr.bf16.mxu0 %v6238_v46 }
 0x18a   :  { %4064 = vmatprep.subr.bf16.mxu1 %v6241_v47  ;;  %v2695_v31 = vpop.f32.mrf.mxu0  ;;  %3446 = vmatmul.mubr.bf16.gmra.mxu0 %v6820_v62  ;;  %v6245_v62 = vld [vmem:[%s9498_s1 + $0x608] ss:$16 sps:$4 sm:$0xff]  }
 0x18b   :  { %v2918_v52 = vpop.f32.mrf.mxu1  ;;  %3669 = vmatmul.mubr.bf16.gmra.mxu1 %v6822_v63  ;;  %v8259_v44 = vadd.f32 %v2914_v50, %v2692_v34  ;;  %v2696_v15 = vadd.f32 %v2695_v31, %v7577_v23  ;;  %3455 = vmatprep.mubr.bf16.mxu0 %v6824_v0  ;;  %v6250_v0 = vld [vmem:[%s9498_s1 + $0x5ec] ss:$16 sps:$4 sm:$0xff]  }
 0x18c   :  { %3678 = vmatprep.mubr.bf16.mxu1 %v6826_v1  ;;  %v2697_v46 = vpop.f32.mrf.mxu0  ;;  %3842 = vmatpush1.bf16.msra.mxu0 %v6236_v12  ;;  %v6253_v1 = vld [vmem:[%s9498_s1 + $0x7ec] ss:$16 sps:$4 sm:$0xff]  }
 0x18d   :  { %v2920_v47 = vpop.f32.mrf.mxu1  ;;  %4065 = vmatpush1.bf16.msra.mxu1 %v6239_v13  ;;  %v8270_v63 = vadd.f32 %v2918_v52, %v2696_v15  ;;  %v2698_v33 = vadd.f32 %v2697_v46, %v7591_v51  ;;  %3843 = vmatprep.subr.bf16.mxu0 %v6244_v43  ;;  %v6248_v43 = vld [vmem:[%s9498_s1 + $0x5e8] ss:$16 sps:$4 sm:$0xff]   ;;  %v6256_v15 = vld [vmem:[%s9498_s1 + $0x5cc] ss:$16 sps:$4 sm:$0xff]  }
 0x18e   :  { %4066 = vmatprep.subr.bf16.mxu1 %v6247_v30  ;;  %v2699_v25 = vpop.f32.mrf.mxu0  ;;  %v6251_v30 = vld [vmem:[%s9498_s1 + $0x7e8] ss:$16 sps:$4 sm:$0xff]   ;;  %v6259_v46 = vld [vmem:[%s9498_s1 + $0x7cc] ss:$16 sps:$4 sm:$0xff]  }
 0x18f   :  { %v2922_v37 = vpop.f32.mrf.mxu1  ;;  %v8279_v50 = vadd.f32 %v2920_v47, %v2698_v33  ;;  %v2700_v12 = vadd.f32 %v2699_v25, %v7577_v23  ;;  %v6254_v25 = vld [vmem:[%s9498_s1 + $0x5c8] ss:$16 sps:$4 sm:$0xff]  }
 0x190   :  { %v2701_v13 = vpop.f32.mrf.mxu0  ;;  %3844 = vmatpush1.bf16.msra.mxu0 %v6242_v17 }
 0x191   :  { %v2924_v34 = vpop.f32.mrf.mxu1  ;;  %4067 = vmatpush1.bf16.msra.mxu1 %v6245_v62  ;;  %v8288_v31 = vadd.f32 %v2922_v37, %v2700_v12  ;;  %v2702_v52 = vadd.f32 %v2701_v13, %v7591_v51  ;;  %3845 = vmatprep.subr.bf16.mxu0 %v6250_v0 }
 0x192   :  { %4068 = vmatprep.subr.bf16.mxu1 %v6253_v1  ;;  %v2705_v47 = vpop.f32.mrf.mxu0  ;;  %3456 = vmatmul.mubr.bf16.gmra.mxu0 %v6868_v18  ;;  %v6257_v18 = vld [vmem:[%s9498_s1 + $0x7c8] ss:$16 sps:$4 sm:$0xff]  }
 0x193   :  { %v2928_v17 = vpop.f32.mrf.mxu1  ;;  %3679 = vmatmul.mubr.bf16.gmra.mxu1 %v6870_v19  ;;  %v8299_v62 = vadd.f32 %v2924_v34, %v2702_v52  ;;  %v2706_v33 = vadd.f32 %v2705_v47, %v7577_v23  ;;  %3465 = vmatprep.mubr.bf16.mxu0 %v6872_v20  ;;  %v6262_v20 = vld [vmem:[%s9498_s1 + $0x5ac] ss:$16 sps:$4 sm:$0xff]  }
 0x194   :  { %3688 = vmatprep.mubr.bf16.mxu1 %v6874_v21  ;;  %v2707_v0 = vpop.f32.mrf.mxu0  ;;  %3846 = vmatpush2.bf16.msra.mxu0 %v6248_v43  ;;  %v6265_v21 = vld [vmem:[%s9498_s1 + $0x7ac] ss:$16 sps:$4 sm:$0xff]  }
 0x195   :  { %v2930_v1 = vpop.f32.mrf.mxu1  ;;  %4069 = vmatpush2.bf16.msra.mxu1 %v6251_v30  ;;  %v8310_v19 = vadd.f32 %v2928_v17, %v2706_v33  ;;  %v2708_v37 = vadd.f32 %v2707_v0, %v7591_v51  ;;  %3847 = vmatprep.subr.bf16.mxu0 %v6256_v15  ;;  %v6260_v15 = vld [vmem:[%s9498_s1 + $0x5a8] ss:$16 sps:$4 sm:$0xff]   ;;  %v6271_v33 = vld [vmem:[%s9498_s1 + $0x78c] ss:$16 sps:$4 sm:$0xff]  }
 0x196   :  { %4070 = vmatprep.subr.bf16.mxu1 %v6259_v46  ;;  %v2709_v12 = vpop.f32.mrf.mxu0  ;;  %v6263_v46 = vld [vmem:[%s9498_s1 + $0x7a8] ss:$16 sps:$4 sm:$0xff]  }
 0x197   :  { %v2932_v13 = vpop.f32.mrf.mxu1  ;;  %v8319_v34 = vadd.f32 %v2930_v1, %v2708_v37  ;;  %v2710_v43 = vadd.f32 %v2709_v12, %v7577_v23  ;;  %v6268_v23 = vld [vmem:[%s9498_s1 + $0x58c] ss:$16 sps:$4 sm:$0xff]  }
 0x198   :  { %v2711_v30 = vpop.f32.mrf.mxu0  ;;  %3848 = vmatpush2.bf16.msra.mxu0 %v6254_v25 }
 0x199   :  { %v2934_v52 = vpop.f32.mrf.mxu1  ;;  %4071 = vmatpush2.bf16.msra.mxu1 %v6257_v18  ;;  %v8328_v47 = vadd.f32 %v2932_v13, %v2710_v43  ;;  %v2712_v17 = vadd.f32 %v2711_v30, %v7591_v51  ;;  %3849 = vmatprep.subr.bf16.mxu0 %v6262_v20  ;;  %v6266_v20 = vld [vmem:[%s9498_s1 + $0x588] ss:$16 sps:$4 sm:$0xff]  }
 0x19a   :  { %4072 = vmatprep.subr.bf16.mxu1 %v6265_v21  ;;  %v2971_v0 = vpop.f32.mrf.mxu0  ;;  %3466 = vmatmul.mubr.bf16.gmra.mxu0 %v6916_v38  ;;  %v6269_v38 = vld [vmem:[%s9498_s1 + $0x788] ss:$16 sps:$4 sm:$0xff]  }
 0x19b   :  { %v3194_v1 = vpop.f32.mrf.mxu1  ;;  %3689 = vmatmul.mubr.bf16.gmra.mxu1 %v6918_v39  ;;  %v8339_v25 = vadd.f32 %v2934_v52, %v2712_v17  ;;  %v2972_v51 = vadd.f32 %v2971_v0, %v7622_v59  ;;  %3475 = vmatprep.mubr.bf16.mxu0 %v6920_v40  ;;  %v6274_v40 = vld [vmem:[%s9498_s1 + $0x56c] ss:$16 sps:$4 sm:$0xff]  }
 0x19c   :  { %3698 = vmatprep.mubr.bf16.mxu1 %v6922_v41  ;;  %v2973_v18 = vpop.f32.mrf.mxu0  ;;  %3850 = vmatpush2.bf16.msra.mxu0 %v6260_v15  ;;  %v6277_v41 = vld [vmem:[%s9498_s1 + $0x76c] ss:$16 sps:$4 sm:$0xff]   ;;  %v6275_v15 = vld [vmem:[%s9498_s1 + $0x768] ss:$16 sps:$4 sm:$0xff]  }
 0x19d   :  { %v3196_v37 = vpop.f32.mrf.mxu1  ;;  %4073 = vmatpush2.bf16.msra.mxu1 %v6263_v46  ;;  %v3195_v39 = vadd.f32 %v3194_v1, %v2972_v51  ;;  %v2974_v21 = vadd.f32 %v2973_v18, %v7635_v49  ;;  %3851 = vmatprep.subr.bf16.mxu0 %v6268_v23  ;;  %v6272_v49 = vld [vmem:[%s9498_s1 + $0x568] ss:$16 sps:$4 sm:$0xff]   ;;  %v6283_v23 = vld [vmem:[%s9498_s1 + $0x74c] ss:$16 sps:$4 sm:$0xff]  }
 0x19e   :  { %4074 = vmatprep.subr.bf16.mxu1 %v6271_v33  ;;  %v2975_v59 = vpop.f32.mrf.mxu0 }
 0x19f   :  { %v3198_v12 = vpop.f32.mrf.mxu1  ;;  %v3197_v13 = vadd.f32 %v3196_v37, %v2974_v21  ;;  %v2976_v43 = vadd.f32 %v2975_v59, %v7648_v32  ;;  %v6280_v32 = vld [vmem:[%s9498_s1 + $0x54c] ss:$16 sps:$4 sm:$0xff]   ;;  %v4275_v1 = vmax.f32 %v3195_v39, 0.0 }
 0x1a0   :  { %v2977_v30 = vpop.f32.mrf.mxu0  ;;  %3852 = vmatpush2.bf16.msra.mxu0 %v6266_v20 }
 0x1a1   :  { %v3200_v52 = vpop.f32.mrf.mxu1  ;;  %4075 = vmatpush2.bf16.msra.mxu1 %v6269_v38  ;;  %v3199_v46 = vadd.f32 %v3198_v12, %v2976_v43  ;;  %v2978_v17 = vadd.f32 %v2977_v30, %v7659_v8  ;;  %3853 = vmatprep.subr.bf16.mxu0 %v6274_v40  ;;  %v4276_v37 = vmax.f32 %v3197_v13, 0.0  ;;  %v6289_v40 = vld [vmem:[%s9498_s1 + $0x72c] ss:$16 sps:$4 sm:$0xff]  }
 0x1a2   :  { %4076 = vmatprep.subr.bf16.mxu1 %v6277_v41  ;;  %v2981_v33 = vpop.f32.mrf.mxu0  ;;  %3476 = vmatmul.mubr.bf16.gmra.mxu0 %v6964_v60  ;;  %v6278_v60 = vld [vmem:[%s9498_s1 + $0x548] ss:$16 sps:$4 sm:$0xff]  }
 0x1a3   :  { %v3204_v0 = vpop.f32.mrf.mxu1  ;;  %3699 = vmatmul.mubr.bf16.gmra.mxu1 %v6966_v61  ;;  %v4279_v51 = vmax.f32 %v3199_v46, 0.0  ;;  %v3201_v18 = vadd.f32 %v3200_v52, %v2978_v17  ;;  %v2982_v8 = vadd.f32 %v2981_v33, %v7682_v11  ;;  %3485 = vmatprep.mubr.bf16.mxu0 %v6968_v2  ;;  %v6281_v61 = vld [vmem:[%s9498_s1 + $0x748] ss:$16 sps:$4 sm:$0xff]   ;;  %v9791_v17 = vld [vmem:[#allocation87_spill] sm:$0xff]  ;;  %v6295_v33 = vld [vmem:[%s9498_s1 + $0x70c] ss:$16 sps:$4 sm:$0xff]  }
 0x1a4   :  { %3708 = vmatprep.mubr.bf16.mxu1 %v6970_v3  ;;  %v2983_v20 = vpop.f32.mrf.mxu0  ;;  %3854 = vmatpush2.bf16.msra.mxu0 %v6272_v49  ;;  %v6286_v3 = vld [vmem:[%s9498_s1 + $0x52c] ss:$16 sps:$4 sm:$0xff]  }
 0x1a5   :  { %v3206_v38 = vpop.f32.mrf.mxu1  ;;  %4077 = vmatpush2.bf16.msra.mxu1 %v6275_v15  ;;  %v8382_v39 = vpack.c.bf16 %v4279_v51, %v4275_v1  ;;  %v4280_v11 = vmax.f32 %v3201_v18, 0.0  ;;  %v3205_v21 = vadd.f32 %v3204_v0, %v2982_v8  ;;  %v2984_v2 = vadd.f32 %v2983_v20, %v7695_v10  ;;  %3855 = vmatprep.subr.bf16.mxu0 %v6280_v32  ;;  %v9790_v13 = vld [vmem:[#allocation86_spill] sm:$0xff]  ;;  %v9792_v51 = vld [vmem:[#allocation5_spill] sm:$0xff] }
 0x1a6   :  { %4078 = vmatprep.subr.bf16.mxu1 %v6283_v23  ;;  %v2985_v41 = vpop.f32.mrf.mxu0  ;;  %v6284_v10 = vld [vmem:[%s9498_s1 + $0x528] ss:$16 sps:$4 sm:$0xff]   ;;  %v6292_v23 = vld [vmem:[%s9498_s1 + $0x50c] ss:$16 sps:$4 sm:$0xff]  }
 0x1a7   :  { %v3208_v59 = vpop.f32.mrf.mxu1  ;;  %v3207_v12 = vadd.f32 %v3206_v38, %v2984_v2  ;;  %v2986_v43 = vadd.f32 %v2985_v41, %v9790_v13  ;;  %v8392_v30 = vpack.c.bf16 %v4280_v11, %v4276_v37  ;;  %v6287_v15 = vld [vmem:[%s9498_s1 + $0x728] ss:$16 sps:$4 sm:$0xff]   ;;  %v4283_v8 = vmax.f32 %v3205_v21, 0.0 }
 0x1a8   :  { %v2987_v52 = vpop.f32.mrf.mxu0  ;;  %3856 = vmatpush2.bf16.msra.mxu0 %v6278_v60  ;;  %v9793_v18 = vld [vmem:[#allocation6_spill] sm:$0xff]  ;;  %v9794_v38 = vld [vmem:[#allocation88_spill] sm:$0xff] }
 0x1a9   :  { %v3210_v49 = vpop.f32.mrf.mxu1  ;;  %4079 = vmatpush2.bf16.msra.mxu1 %v6281_v61  ;;  %v3209_v46 = vadd.f32 %v3208_v59, %v2986_v43  ;;  %v2988_v32 = vadd.f32 %v2987_v52, %v9791_v17  ;;  %3857 = vmatprep.subr.bf16.mxu0 %v6286_v3  ;;  %v9795_v61 = vld [vmem:[#allocation7_spill] sm:$0xff]  ;;  %v9796_v11 = vld [vmem:[#allocation8_spill] sm:$0xff]  ;;  %v4284_v52 = vmax.f32 %v3207_v12, 0.0 }
 0x1aa   :  { %4080 = vmatprep.subr.bf16.mxu1 %v6289_v40  ;;  %v2991_v0 = vpop.f32.mrf.mxu0  ;;  %3486 = vmatmul.mubr.bf16.gmra.mxu0 %v9792_v51  ;;  %v6290_v40 = vld [vmem:[%s9498_s1 + $0x508] ss:$16 sps:$4 sm:$0xff]  }
 0x1ab   :  { %v3214_v1 = vpop.f32.mrf.mxu1  ;;  %3709 = vmatmul.mubr.bf16.gmra.mxu1 %v9793_v18  ;;  %v4287_v37 = vmax.f32 %v3209_v46, 0.0  ;;  %v3211_v20 = vadd.f32 %v3210_v49, %v2988_v32  ;;  %v2992_v60 = vadd.f32 %v2991_v0, %v9794_v38  ;;  %3495 = vmatprep.mubr.bf16.mxu0 %v9795_v61  ;;  %v6293_v21 = vld [vmem:[%s9498_s1 + $0x708] ss:$16 sps:$4 sm:$0xff]   ;;  %v9797_v18 = vld [vmem:[#allocation93_spill] sm:$0xff] }
 0x1ac   :  { %3718 = vmatprep.mubr.bf16.mxu1 %v9796_v11  ;;  %v2993_v2 = vpop.f32.mrf.mxu0  ;;  %3858 = vmatpush2.bf16.msra.mxu0 %v6284_v10  ;;  %v9800_v38 = vld [vmem:[#allocation94_spill] sm:$0xff]  ;;  %v9802_v61 = vld [vmem:[#allocation12_spill] sm:$0xff] }
 0x1ad   :  { %v3216_v3 = vpop.f32.mrf.mxu1  ;;  %4081 = vmatpush2.bf16.msra.mxu1 %v6287_v15  ;;  %v8418_v41 = vpack.c.bf16 %v4287_v37, %v4283_v8  ;;  %v4288_v59 = vmax.f32 %v3211_v20, 0.0  ;;  %v3215_v13 = vadd.f32 %v3214_v1, %v2992_v60  ;;  %v2994_v43 = vadd.f32 %v2993_v2, %v7755_v5  ;;  %3859 = vmatprep.subr.bf16.mxu0 %v6292_v23  ;;  %v9798_v5 = vld [vmem:[#allocation9_spill] sm:$0xff]  ;;  %v9799_v23 = vld [vmem:[#allocation10_spill] sm:$0xff]  ;;  %v9801_v60 = vld [vmem:[#allocation11_spill] sm:$0xff] }
 0x1ae   :  { %4082 = vmatprep.subr.bf16.mxu1 %v6295_v33  ;;  %v2995_v49 = vpop.f32.mrf.mxu0 }
 0x1af   :  { %v3218_v10 = vpop.f32.mrf.mxu1  ;;  %v3217_v15 = vadd.f32 %v3216_v3, %v2994_v43  ;;  %v2996_v46 = vadd.f32 %v2995_v49, %v7762_v7  ;;  %v8422_v0 = vpack.c.bf16 %v4288_v59, %v4284_v52  ;;  %v4291_v12 = vmax.f32 %v3215_v13, 0.0  ;;  %v9803_v43 = vld [vmem:[#allocation97_spill] sm:$0xff] }
 0x1b0   :  { %v2997_v17 = vpop.f32.mrf.mxu0  ;;  %3860 = vmatpush2.bf16.msra.mxu0 %v6290_v40 }
 0x1b1   :  { %v3220_v32 = vpop.f32.mrf.mxu1  ;;  %4083 = vmatpush2.bf16.msra.mxu1 %v6293_v21  ;;  %v3219_v51 = vadd.f32 %v3218_v10, %v2996_v46  ;;  %v2998_v8 = vadd.f32 %v2997_v17, %v9797_v18  ;;  %v4292_v11 = vmax.f32 %v3217_v15, 0.0  ;;  %v9804_v46 = vld [vmem:[#allocation100_spill] sm:$0xff] }
 0x1b2   :  { %v3001_v1 = vpop.f32.mrf.mxu0  ;;  %3496 = vmatmul.mubr.bf16.gmra.mxu0 %v9798_v5 }
 0x1b3   :  { %v3224_v37 = vpop.f32.mrf.mxu1  ;;  %3719 = vmatmul.mubr.bf16.gmra.mxu1 %v9799_v23  ;;  %v4295_v33 = vmax.f32 %v3219_v51, 0.0  ;;  %v3221_v20 = vadd.f32 %v3220_v32, %v2998_v8  ;;  %v3002_v7 = vadd.f32 %v3001_v1, %v9800_v38  ;;  %3505 = vmatprep.mubr.bf16.mxu0 %v9801_v60  ;;  %v9805_v1 = vld [vmem:[#allocation101_spill] sm:$0xff] }
 0x1b4   :  { %3728 = vmatprep.mubr.bf16.mxu1 %v9802_v61  ;;  %v3003_v2 = vpop.f32.mrf.mxu0  ;;  %v9809_v61 = vld [vmem:[#allocation15_spill] sm:$0xff] }
 0x1b5   :  { %v3226_v3 = vpop.f32.mrf.mxu1  ;;  %v8430_v40 = vpack.c.bf16 %v4295_v33, %v4291_v12  ;;  %v4296_v21 = vmax.f32 %v3221_v20, 0.0  ;;  %v3225_v59 = vadd.f32 %v3224_v37, %v3002_v7  ;;  %v3004_v52 = vadd.f32 %v3003_v2, %v9803_v43  ;;  %v9806_v12 = vld [vmem:[#allocation13_spill] sm:$0xff]  ;;  %v9807_v33 = vld [vmem:[#allocation14_spill] sm:$0xff] }
 0x1b6   :  { %v3005_v49 = vpop.f32.mrf.mxu0  ;;  %v9808_v7 = vld [vmem:[#allocation102_spill] sm:$0xff] }
 0x1b7   :  { %v3228_v10 = vpop.f32.mrf.mxu1  ;;  %v3227_v13 = vadd.f32 %v3226_v3, %v3004_v52  ;;  %v3006_v17 = vadd.f32 %v3005_v49, %v9804_v46  ;;  %v8434_v32 = vpack.c.bf16 %v4296_v21, %v4292_v11  ;;  %v4299_v37 = vmax.f32 %v3225_v59, 0.0  ;;  %v9810_v11 = vld [vmem:[#allocation16_spill] sm:$0xff] }
 0x1b8   :  { %v3007_v51 = vpop.f32.mrf.mxu0 }
 0x1b9   :  { %v3230_v18 = vpop.f32.mrf.mxu1  ;;  %v3229_v8 = vadd.f32 %v3228_v10, %v3006_v17  ;;  %v3008_v15 = vadd.f32 %v3007_v51, %v9805_v1  ;;  %v4300_v2 = vmax.f32 %v3227_v13, 0.0  ;;  %v9812_v10 = vld [vmem:[#allocation105_spill] sm:$0xff] }
 0x1ba   :  { %v3011_v5 = vpop.f32.mrf.mxu0  ;;  %3506 = vmatmul.mubr.bf16.gmra.mxu0 %v9806_v12 }
 0x1bb   :  { %v3234_v23 = vpop.f32.mrf.mxu1  ;;  %3729 = vmatmul.mubr.bf16.gmra.mxu1 %v9807_v33  ;;  %v4303_v20 = vmax.f32 %v3229_v8, 0.0  ;;  %v3231_v38 = vadd.f32 %v3230_v18, %v3008_v15  ;;  %v3012_v60 = vadd.f32 %v3011_v5, %v9808_v7  ;;  %3515 = vmatprep.mubr.bf16.mxu0 %v9809_v61  ;;  %v9813_v8 = vld [vmem:[#allocation108_spill] sm:$0xff]  ;;  %v9814_v33 = vld [vmem:[#allocation109_spill] sm:$0xff] }
 0x1bc   :  { %3738 = vmatprep.mubr.bf16.mxu1 %v9810_v11  ;;  %v3013_v3 = vpop.f32.mrf.mxu0  ;;  %v9817_v11 = vld [vmem:[#allocation110_spill] sm:$0xff] }
 0x1bd   :  { %v3236_v21 = vpop.f32.mrf.mxu1  ;;  %v8442_v43 = vpack.c.bf16 %v4303_v20, %v4299_v37  ;;  %v4304_v52 = vmax.f32 %v3231_v38, 0.0  ;;  %v3235_v49 = vadd.f32 %v3234_v23, %v3012_v60  ;;  %v3014_v46 = vadd.f32 %v3013_v3, %v9812_v10  ;;  %v9815_v37 = vld [vmem:[#allocation17_spill] sm:$0xff]  ;;  %v9816_v20 = vld [vmem:[#allocation18_spill] sm:$0xff] }
 0x1be   :  { %v3015_v17 = vpop.f32.mrf.mxu0 }
 0x1bf   :  { %9811 = vst [vmem:[#allocation86_spill] sm:$0xff] %v8442_v43  ;;  %v3238_v51 = vpop.f32.mrf.mxu1  ;;  %v3237_v59 = vadd.f32 %v3236_v21, %v3014_v46  ;;  %v3016_v18 = vadd.f32 %v3015_v17, %v9813_v8  ;;  %v8446_v1 = vpack.c.bf16 %v4304_v52, %v4300_v2  ;;  %v4307_v23 = vmax.f32 %v3235_v49, 0.0  ;;  %v9818_v21 = vld [vmem:[#allocation19_spill] sm:$0xff]  ;;  %v9819_v2 = vld [vmem:[#allocation20_spill] sm:$0xff]  ;;  %v9821_v49 = vld [vmem:[#allocation113_spill] sm:$0xff] }
 0x1c0   :  { %v3017_v15 = vpop.f32.mrf.mxu0  ;;  %v6298_v52 = vld [vmem:[%s9500_s3 + $0x74] ss:$8 sps:$4 sm:$0xff]  }
 0x1c1   :  { %v3240_v5 = vpop.f32.mrf.mxu1  ;;  %v3239_v12 = vadd.f32 %v3238_v51, %v3016_v18  ;;  %v3018_v13 = vadd.f32 %v3017_v15, %v9814_v33  ;;  %v4308_v10 = vmax.f32 %v3237_v59, 0.0  ;;  %4899 = vmatprep.subr.bf16.mxu0 %v6298_v52 }
 0x1c2   :  { %v3021_v7 = vpop.f32.mrf.mxu0  ;;  %3516 = vmatmul.mubr.bf16.gmra.mxu0 %v9815_v37 }
 0x1c3   :  { %v3244_v61 = vpop.f32.mrf.mxu1  ;;  %3739 = vmatmul.mubr.bf16.gmra.mxu1 %v9816_v20  ;;  %v4311_v38 = vmax.f32 %v3239_v12, 0.0  ;;  %v3241_v60 = vadd.f32 %v3240_v5, %v3018_v13  ;;  %v3022_v3 = vadd.f32 %v3021_v7, %v9817_v11  ;;  %3525 = vmatprep.mubr.bf16.mxu0 %v9818_v21  ;;  %v6301_v5 = vld [vmem:[%s9500_s3 + $0x174] ss:$8 sps:$4 sm:$0xff]   ;;  %v9825_v21 = vld [vmem:[#allocation21_spill] sm:$0xff] }
 0x1c4   :  { %3748 = vmatprep.mubr.bf16.mxu1 %v9819_v2  ;;  %v3023_v46 = vpop.f32.mrf.mxu0  ;;  %v9822_v7 = vld [vmem:[#allocation116_spill] sm:$0xff]  ;;  %5122 = vmatprep.subr.bf16.mxu1 %v6301_v5  ;;  %v9826_v2 = vld [vmem:[#allocation22_spill] sm:$0xff] }
 0x1c5   :  { %v3246_v17 = vpop.f32.mrf.mxu1  ;;  %v8457_v51 = vpack.c.bf16 %v4311_v38, %v4307_v23  ;;  %v4312_v8 = vmax.f32 %v3241_v60, 0.0  ;;  %v3245_v18 = vadd.f32 %v3244_v61, %v3022_v3  ;;  %v3024_v15 = vadd.f32 %v3023_v46, %v9821_v49  ;;  %v9824_v60 = vld [vmem:[#allocation117_spill] sm:$0xff] }
 0x1c6   :  { %v3025_v12 = vpop.f32.mrf.mxu0 }
 0x1c7   :  { %9820 = vst [vmem:[#allocation87_spill] sm:$0xff] %v8457_v51  ;;  %v3248_v33 = vpop.f32.mrf.mxu1  ;;  %v3247_v13 = vadd.f32 %v3246_v17, %v3024_v15  ;;  %v3026_v37 = vadd.f32 %v3025_v12, %v9822_v7  ;;  %v8464_v59 = vpack.c.bf16 %v4312_v8, %v4308_v10  ;;  %v4315_v52 = vmax.f32 %v3245_v18, 0.0  ;;  %v9827_v17 = vld [vmem:[#allocation118_spill] sm:$0xff]  ;;  %v9828_v12 = vld [vmem:[#allocation23_spill] sm:$0xff]  ;;  %v9829_v10 = vld [vmem:[#allocation24_spill] sm:$0xff] }
 0x1c8   :  { %v3027_v20 = vpop.f32.mrf.mxu0 }
 0x1c9   :  { %9823 = vst [vmem:[#allocation5_spill] sm:$0xff] %v8464_v59  ;;  %v3250_v23 = vpop.f32.mrf.mxu1  ;;  %v3249_v38 = vadd.f32 %v3248_v33, %v3026_v37  ;;  %v3028_v61 = vadd.f32 %v3027_v20, %v9824_v60  ;;  %v4316_v8 = vmax.f32 %v3247_v13, 0.0  ;;  %v9831_v60 = vld [vmem:[#allocation121_spill] sm:$0xff] }
 0x1ca   :  { %v3031_v11 = vpop.f32.mrf.mxu0  ;;  %3526 = vmatmul.mubr.bf16.gmra.mxu0 %v9825_v21 }
 0x1cb   :  { %v3254_v3 = vpop.f32.mrf.mxu1  ;;  %3749 = vmatmul.mubr.bf16.gmra.mxu1 %v9826_v2  ;;  %v4319_v46 = vmax.f32 %v3249_v38, 0.0  ;;  %v3251_v49 = vadd.f32 %v3250_v23, %v3028_v61  ;;  %v3032_v15 = vadd.f32 %v3031_v11, %v9827_v17  ;;  %3535 = vmatprep.mubr.bf16.mxu0 %v9828_v12  ;;  %v9832_v38 = vld [vmem:[#allocation124_spill] sm:$0xff] }
 0x1cc   :  { %3758 = vmatprep.mubr.bf16.mxu1 %v9829_v10  ;;  %v3033_v5 = vpop.f32.mrf.mxu0  ;;  %v9834_v10 = vld [vmem:[#allocation125_spill] sm:$0xff] }
 0x1cd   :  { %v3256_v33 = vpop.f32.mrf.mxu1  ;;  %v8472_v7 = vpack.c.bf16 %v4319_v46, %v4315_v52  ;;  %v4320_v37 = vmax.f32 %v3251_v49, 0.0  ;;  %v3255_v20 = vadd.f32 %v3254_v3, %v3032_v15  ;;  %v3034_v21 = vadd.f32 %v3033_v5, %v9831_v60  ;;  %v9835_v52 = vld [vmem:[#allocation25_spill] sm:$0xff]  ;;  %v9836_v46 = vld [vmem:[#allocation26_spill] sm:$0xff]  ;;  %v9838_v60 = vld [vmem:[#allocation27_spill] sm:$0xff] }
 0x1ce   :  { %v3035_v51 = vpop.f32.mrf.mxu0  ;;  %v9837_v5 = vld [vmem:[#allocation126_spill] sm:$0xff] }
 0x1cf   :  { %9830 = vst [vmem:[#allocation6_spill] sm:$0xff] %v8472_v7  ;;  %v3258_v2 = vpop.f32.mrf.mxu1  ;;  %v3257_v18 = vadd.f32 %v3256_v33, %v3034_v21  ;;  %v3036_v23 = vadd.f32 %v3035_v51, %v9832_v38  ;;  %v8476_v61 = vpack.c.bf16 %v4320_v37, %v4316_v8  ;;  %v4323_v3 = vmax.f32 %v3255_v20, 0.0  ;;  %v9839_v51 = vld [vmem:[#allocation28_spill] sm:$0xff] }
 0x1d0   :  { %v3037_v11 = vpop.f32.mrf.mxu0 }
 0x1d1   :  { %9833 = vst [vmem:[#allocation88_spill] sm:$0xff] %v8476_v61  ;;  %v3260_v17 = vpop.f32.mrf.mxu1  ;;  %v3259_v12 = vadd.f32 %v3258_v2, %v3036_v23  ;;  %v3038_v13 = vadd.f32 %v3037_v11, %v9834_v10  ;;  %v4324_v8 = vmax.f32 %v3257_v18, 0.0  ;;  %v9841_v11 = vld [vmem:[#allocation129_spill] sm:$0xff] }
 0x1d2   :  { %v3041_v59 = vpop.f32.mrf.mxu0  ;;  %3536 = vmatmul.mubr.bf16.gmra.mxu0 %v9835_v52 }
 0x1d3   :  { %v3264_v43 = vpop.f32.mrf.mxu1  ;;  %3759 = vmatmul.mubr.bf16.gmra.mxu1 %v9836_v46  ;;  %v4327_v49 = vmax.f32 %v3259_v12, 0.0  ;;  %v3261_v15 = vadd.f32 %v3260_v17, %v3038_v13  ;;  %v3042_v33 = vadd.f32 %v3041_v59, %v9837_v5  ;;  %3545 = vmatprep.mubr.bf16.mxu0 %v9838_v60  ;;  %v9842_v12 = vld [vmem:[#allocation132_spill] sm:$0xff] }
 0x1d4   :  { %3768 = vmatprep.mubr.bf16.mxu1 %v9839_v51  ;;  %v3043_v37 = vpop.f32.mrf.mxu0  ;;  %v9844_v51 = vld [vmem:[#allocation133_spill] sm:$0xff] }
 0x1d5   :  { %v3266_v21 = vpop.f32.mrf.mxu1  ;;  %v8484_v2 = vpack.c.bf16 %v4327_v49, %v4323_v3  ;;  %v4328_v38 = vmax.f32 %v3261_v15, 0.0  ;;  %v3265_v23 = vadd.f32 %v3264_v43, %v3042_v33  ;;  %v3044_v10 = vadd.f32 %v3043_v37, %v9841_v11  ;;  %v9845_v3 = vld [vmem:[#allocation29_spill] sm:$0xff]  ;;  %v9846_v49 = vld [vmem:[#allocation30_spill] sm:$0xff]  ;;  %v9848_v11 = vld [vmem:[#allocation31_spill] sm:$0xff] }
 0x1d6   :  { %v3045_v52 = vpop.f32.mrf.mxu0  ;;  %v9847_v37 = vld [vmem:[#allocation134_spill] sm:$0xff] }
 0x1d7   :  { %9840 = vst [vmem:[#allocation7_spill] sm:$0xff] %v8484_v2  ;;  %v3268_v46 = vpop.f32.mrf.mxu1  ;;  %v3267_v20 = vadd.f32 %v3266_v21, %v3044_v10  ;;  %v3046_v17 = vadd.f32 %v3045_v52, %v9842_v12  ;;  %v8488_v13 = vpack.c.bf16 %v4328_v38, %v4324_v8  ;;  %v4331_v43 = vmax.f32 %v3265_v23, 0.0  ;;  %v9849_v8 = vld [vmem:[#allocation32_spill] sm:$0xff] }
 0x1d8   :  { %v3047_v59 = vpop.f32.mrf.mxu0 }
 0x1d9   :  { %9843 = vst [vmem:[#allocation8_spill] sm:$0xff] %v8488_v13  ;;  %v3270_v5 = vpop.f32.mrf.mxu1  ;;  %v3269_v60 = vadd.f32 %v3268_v46, %v3046_v17  ;;  %v3048_v18 = vadd.f32 %v3047_v59, %v9844_v51  ;;  %v4332_v38 = vmax.f32 %v3267_v20, 0.0  ;;  %v9851_v59 = vld [vmem:[#allocation137_spill] sm:$0xff] }
 0x1da   :  { %v3051_v7 = vpop.f32.mrf.mxu0  ;;  %3546 = vmatmul.mubr.bf16.gmra.mxu0 %v9845_v3 }
 0x1db   :  { %v3274_v61 = vpop.f32.mrf.mxu1  ;;  %3769 = vmatmul.mubr.bf16.gmra.mxu1 %v9846_v49  ;;  %v4335_v15 = vmax.f32 %v3269_v60, 0.0  ;;  %v3271_v33 = vadd.f32 %v3270_v5, %v3048_v18  ;;  %v3052_v21 = vadd.f32 %v3051_v7, %v9847_v37  ;;  %3555 = vmatprep.mubr.bf16.mxu0 %v9848_v11  ;;  %v9852_v60 = vld [vmem:[#allocation140_spill] sm:$0xff] }
 0x1dc   :  { %3778 = vmatprep.mubr.bf16.mxu1 %v9849_v8  ;;  %v3053_v10 = vpop.f32.mrf.mxu0  ;;  %v9854_v8 = vld [vmem:[#allocation141_spill] sm:$0xff] }
 0x1dd   :  { %v3276_v52 = vpop.f32.mrf.mxu1  ;;  %v8496_v46 = vpack.c.bf16 %v4335_v15, %v4331_v43  ;;  %v4336_v12 = vmax.f32 %v3271_v33, 0.0  ;;  %v3275_v17 = vadd.f32 %v3274_v61, %v3052_v21  ;;  %v3054_v51 = vadd.f32 %v3053_v10, %v9851_v59  ;;  %v9855_v43 = vld [vmem:[#allocation33_spill] sm:$0xff]  ;;  %v9856_v15 = vld [vmem:[#allocation34_spill] sm:$0xff]  ;;  %v9858_v59 = vld [vmem:[#allocation35_spill] sm:$0xff] }
 0x1de   :  { %v3055_v3 = vpop.f32.mrf.mxu0  ;;  %v9857_v10 = vld [vmem:[#allocation142_spill] sm:$0xff] }
 0x1df   :  { %9850 = vst [vmem:[#allocation93_spill] sm:$0xff] %v8496_v46  ;;  %v3278_v49 = vpop.f32.mrf.mxu1  ;;  %v3277_v23 = vadd.f32 %v3276_v52, %v3054_v51  ;;  %v3056_v5 = vadd.f32 %v3055_v3, %v9852_v60  ;;  %v8500_v18 = vpack.c.bf16 %v4336_v12, %v4332_v38  ;;  %v4339_v61 = vmax.f32 %v3275_v17, 0.0  ;;  %v9859_v38 = vld [vmem:[#allocation36_spill] sm:$0xff] }
 0x1e0   :  { %v3057_v7 = vpop.f32.mrf.mxu0 }
 0x1e1   :  { %9853 = vst [vmem:[#allocation9_spill] sm:$0xff] %v8500_v18  ;;  %v3280_v37 = vpop.f32.mrf.mxu1  ;;  %v3279_v11 = vadd.f32 %v3278_v49, %v3056_v5  ;;  %v3058_v20 = vadd.f32 %v3057_v7, %v9854_v8  ;;  %v4340_v12 = vmax.f32 %v3277_v23, 0.0  ;;  %v9861_v7 = vld [vmem:[#allocation145_spill] sm:$0xff] }
 0x1e2   :  { %v3061_v2 = vpop.f32.mrf.mxu0  ;;  %3556 = vmatmul.mubr.bf16.gmra.mxu0 %v9855_v43 }
 0x1e3   :  { %v3284_v13 = vpop.f32.mrf.mxu1  ;;  %3779 = vmatmul.mubr.bf16.gmra.mxu1 %v9856_v15  ;;  %v4343_v33 = vmax.f32 %v3279_v11, 0.0  ;;  %v3281_v21 = vadd.f32 %v3280_v37, %v3058_v20  ;;  %v3062_v52 = vadd.f32 %v3061_v2, %v9857_v10  ;;  %3565 = vmatprep.mubr.bf16.mxu0 %v9858_v59  ;;  %v9862_v11 = vld [vmem:[#allocation148_spill] sm:$0xff] }
 0x1e4   :  { %3788 = vmatprep.mubr.bf16.mxu1 %v9859_v38  ;;  %v3063_v51 = vpop.f32.mrf.mxu0  ;;  %v9864_v38 = vld [vmem:[#allocation149_spill] sm:$0xff] }
 0x1e5   :  { %v3286_v3 = vpop.f32.mrf.mxu1  ;;  %v8508_v49 = vpack.c.bf16 %v4343_v33, %v4339_v61  ;;  %v4344_v60 = vmax.f32 %v3281_v21, 0.0  ;;  %v3285_v5 = vadd.f32 %v3284_v13, %v3062_v52  ;;  %v3064_v8 = vadd.f32 %v3063_v51, %v9861_v7  ;;  %v9865_v61 = vld [vmem:[#allocation37_spill] sm:$0xff]  ;;  %v9866_v33 = vld [vmem:[#allocation38_spill] sm:$0xff]  ;;  %v9868_v7 = vld [vmem:[#allocation39_spill] sm:$0xff] }
 0x1e6   :  { %v3065_v43 = vpop.f32.mrf.mxu0  ;;  %v9867_v51 = vld [vmem:[#allocation150_spill] sm:$0xff] }
 0x1e7   :  { %9860 = vst [vmem:[#allocation10_spill] sm:$0xff] %v8508_v49  ;;  %v3288_v15 = vpop.f32.mrf.mxu1  ;;  %v3287_v17 = vadd.f32 %v3286_v3, %v3064_v8  ;;  %v3066_v37 = vadd.f32 %v3065_v43, %v9862_v11  ;;  %v8512_v20 = vpack.c.bf16 %v4344_v60, %v4340_v12  ;;  %v4347_v13 = vmax.f32 %v3285_v5, 0.0  ;;  %v9869_v12 = vld [vmem:[#allocation40_spill] sm:$0xff] }
 0x1e8   :  { %v3067_v2 = vpop.f32.mrf.mxu0 }
 0x1e9   :  { %9863 = vst [vmem:[#allocation94_spill] sm:$0xff] %v8512_v20  ;;  %v3290_v10 = vpop.f32.mrf.mxu1  ;;  %v3289_v59 = vadd.f32 %v3288_v15, %v3066_v37  ;;  %v3068_v23 = vadd.f32 %v3067_v2, %v9864_v38  ;;  %v4348_v60 = vmax.f32 %v3287_v17, 0.0  ;;  %v9870_v2 = vld [vmem:[#allocation153_spill] sm:$0xff] }
 0x1ea   :  { %v3071_v46 = vpop.f32.mrf.mxu0  ;;  %3566 = vmatmul.mubr.bf16.gmra.mxu0 %v9865_v61 }
 0x1eb   :  { %v3294_v18 = vpop.f32.mrf.mxu1  ;;  %3789 = vmatmul.mubr.bf16.gmra.mxu1 %v9866_v33  ;;  %v4351_v21 = vmax.f32 %v3289_v59, 0.0  ;;  %v3291_v52 = vadd.f32 %v3290_v10, %v3068_v23  ;;  %v3072_v3 = vadd.f32 %v3071_v46, %v9867_v51  ;;  %3575 = vmatprep.mubr.bf16.mxu0 %v9868_v7  ;;  %v9871_v59 = vld [vmem:[#allocation156_spill] sm:$0xff] }
 0x1ec   :  { %3798 = vmatprep.mubr.bf16.mxu1 %v9869_v12  ;;  %v3073_v8 = vpop.f32.mrf.mxu0  ;;  %v9872_v12 = vld [vmem:[#allocation157_spill] sm:$0xff] }
 0x1ed   :  { %v3296_v43 = vpop.f32.mrf.mxu1  ;;  %v8520_v15 = vpack.c.bf16 %v4351_v21, %v4347_v13  ;;  %v4352_v11 = vmax.f32 %v3291_v52, 0.0  ;;  %v3295_v37 = vadd.f32 %v3294_v18, %v3072_v3  ;;  %v3074_v38 = vadd.f32 %v3073_v8, %v9870_v2  ;;  %v9873_v13 = vld [vmem:[#allocation41_spill] sm:$0xff]  ;;  %v9874_v21 = vld [vmem:[#allocation42_spill] sm:$0xff]  ;;  %v9876_v2 = vld [vmem:[#allocation43_spill] sm:$0xff] }
 0x1ee   :  { %v3075_v61 = vpop.f32.mrf.mxu0  ;;  %v9875_v8 = vld [vmem:[#allocation158_spill] sm:$0xff] }
 0x1ef   :  { %v3298_v33 = vpop.f32.mrf.mxu1  ;;  %v3297_v5 = vadd.f32 %v3296_v43, %v3074_v38  ;;  %v3076_v10 = vadd.f32 %v3075_v61, %v9871_v59  ;;  %v8524_v23 = vpack.c.bf16 %v4352_v11, %v4348_v60  ;;  %v4355_v18 = vmax.f32 %v3295_v37, 0.0  ;;  %v9877_v60 = vld [vmem:[#allocation44_spill] sm:$0xff] }
 0x1f0   :  { %v3077_v46 = vpop.f32.mrf.mxu0 }
 0x1f1   :  { %v3300_v51 = vpop.f32.mrf.mxu1  ;;  %v3299_v7 = vadd.f32 %v3298_v33, %v3076_v10  ;;  %v3078_v17 = vadd.f32 %v3077_v46, %v9872_v12  ;;  %v4356_v11 = vmax.f32 %v3297_v5, 0.0 }
 0x1f2   :  { %v3081_v49 = vpop.f32.mrf.mxu0  ;;  %3576 = vmatmul.mubr.bf16.gmra.mxu0 %v9873_v13 }
 0x1f3   :  { %v3304_v20 = vpop.f32.mrf.mxu1  ;;  %3799 = vmatmul.mubr.bf16.gmra.mxu1 %v9874_v21  ;;  %v4359_v52 = vmax.f32 %v3299_v7, 0.0  ;;  %v3301_v3 = vadd.f32 %v3300_v51, %v3078_v17  ;;  %v3082_v43 = vadd.f32 %v3081_v49, %v9875_v8  ;;  %3585 = vmatprep.mubr.bf16.mxu0 %v9876_v2 }
 0x1f4   :  { %3808 = vmatprep.mubr.bf16.mxu1 %v9877_v60  ;;  %v3083_v38 = vpop.f32.mrf.mxu0  ;;  %v9880_v60 = vld [vmem:[#allocation47_spill] sm:$0xff] }
 0x1f5   :  { %v3306_v61 = vpop.f32.mrf.mxu1  ;;  %v8532_v33 = vpack.c.bf16 %v4359_v52, %v4355_v18  ;;  %v4360_v59 = vmax.f32 %v3301_v3, 0.0  ;;  %v3305_v10 = vadd.f32 %v3304_v20, %v3082_v43  ;;  %v3084_v46 = vadd.f32 %v3083_v38, %v8079_v14  ;;  %v9878_v18 = vld [vmem:[#allocation45_spill] sm:$0xff]  ;;  %v9879_v52 = vld [vmem:[#allocation46_spill] sm:$0xff] }
 0x1f6   :  { %v3085_v12 = vpop.f32.mrf.mxu0 }
 0x1f7   :  { %v3308_v13 = vpop.f32.mrf.mxu1  ;;  %v3307_v37 = vadd.f32 %v3306_v61, %v3084_v46  ;;  %v3086_v51 = vadd.f32 %v3085_v12, %v8086_v4  ;;  %v8536_v7 = vpack.c.bf16 %v4360_v59, %v4356_v11  ;;  %v4363_v20 = vmax.f32 %v3305_v10, 0.0  ;;  %v9881_v4 = vld [vmem:[#allocation48_spill] sm:$0xff] }
 0x1f8   :  { %v3087_v49 = vpop.f32.mrf.mxu0 }
 0x1f9   :  { %v3310_v17 = vpop.f32.mrf.mxu1  ;;  %v3309_v21 = vadd.f32 %v3308_v13, %v3086_v51  ;;  %v3088_v5 = vadd.f32 %v3087_v49, %v8091_v22  ;;  %v4364_v11 = vmax.f32 %v3307_v37, 0.0 }
 0x1fa   :  { %v3091_v8 = vpop.f32.mrf.mxu0  ;;  %3586 = vmatmul.mubr.bf16.gmra.mxu0 %v9878_v18 }
 0x1fb   :  { %v3314_v2 = vpop.f32.mrf.mxu1  ;;  %3809 = vmatmul.mubr.bf16.gmra.mxu1 %v9879_v52  ;;  %v4367_v14 = vmax.f32 %v3309_v21, 0.0  ;;  %v3311_v3 = vadd.f32 %v3310_v17, %v3088_v5  ;;  %v3092_v43 = vadd.f32 %v3091_v8, %v8096_v6  ;;  %3595 = vmatprep.mubr.bf16.mxu0 %v9880_v60  ;;  %v9882_v52 = vld [vmem:[#allocation49_spill] sm:$0xff] }
 0x1fc   :  { %3818 = vmatprep.mubr.bf16.mxu1 %v9881_v4  ;;  %v3093_v38 = vpop.f32.mrf.mxu0 }
 0x1fd   :  { %v3316_v61 = vpop.f32.mrf.mxu1  ;;  %v8544_v59 = vpack.c.bf16 %v4367_v14, %v4363_v20  ;;  %v4368_v22 = vmax.f32 %v3311_v3, 0.0  ;;  %v3315_v46 = vadd.f32 %v3314_v2, %v3092_v43  ;;  %v3094_v12 = vadd.f32 %v3093_v38, %v8103_v9  ;;  %v9883_v20 = vld [vmem:[#allocation50_spill] sm:$0xff]  ;;  %v9884_v43 = vld [vmem:[#allocation51_spill] sm:$0xff] }
 0x1fe   :  { %v3095_v13 = vpop.f32.mrf.mxu0 }
 0x1ff   :  { %v3318_v51 = vpop.f32.mrf.mxu1  ;;  %v3317_v10 = vadd.f32 %v3316_v61, %v3094_v12  ;;  %v3096_v49 = vadd.f32 %v3095_v13, %v8106_v54  ;;  %v8548_v17 = vpack.c.bf16 %v4368_v22, %v4364_v11  ;;  %v4371_v2 = vmax.f32 %v3315_v46, 0.0  ;;  %v9885_v54 = vld [vmem:[#allocation52_spill] sm:$0xff] }
 0x200   :  { %v3097_v6 = vpop.f32.mrf.mxu0 }
 0x201   :  { %v3320_v21 = vpop.f32.mrf.mxu1  ;;  %v3319_v5 = vadd.f32 %v3318_v51, %v3096_v49  ;;  %v3098_v37 = vadd.f32 %v3097_v6, %v8111_v24  ;;  %v4372_v60 = vmax.f32 %v3317_v10, 0.0  ;;  %v6296_v10 = vld [vmem:[%s9500_s3 + $0x70] ss:$8 sps:$4 sm:$0xff]  }
 0x202   :  { %v3101_v8 = vpop.f32.mrf.mxu0  ;;  %3596 = vmatmul.mubr.bf16.gmra.mxu0 %v9882_v52  ;;  %v9886_v52 = vld [vmem:[#allocation53_spill] sm:$0xff] }
 0x203   :  { %v3324_v18 = vpop.f32.mrf.mxu1  ;;  %3819 = vmatmul.mubr.bf16.gmra.mxu1 %v9883_v20  ;;  %v4375_v9 = vmax.f32 %v3319_v5, 0.0  ;;  %v3321_v14 = vadd.f32 %v3320_v21, %v3098_v37  ;;  %v3102_v3 = vadd.f32 %v3101_v8, %v8116_v35  ;;  %3861 = vmatprep.mubr.bf16.mxu0 %v9884_v43  ;;  %v6299_v21 = vld [vmem:[%s9500_s3 + $0x170] ss:$8 sps:$4 sm:$0xff]   ;;  %v6304_v37 = vld [vmem:[%s9500_s3 + $0x64] ss:$8 sps:$4 sm:$0xff]  }
 0x204   :  { %4084 = vmatprep.mubr.bf16.mxu1 %v9885_v54  ;;  %v3103_v4 = vpop.f32.mrf.mxu0  ;;  %v9887_v20 = vld [vmem:[#allocation54_spill] sm:$0xff]  ;;  %v9889_v43 = vld [vmem:[#allocation56_spill] sm:$0xff] }
 0x205   :  { %v3326_v11 = vpop.f32.mrf.mxu1  ;;  %v8556_v38 = vpack.c.bf16 %v4375_v9, %v4371_v2  ;;  %v4376_v24 = vmax.f32 %v3321_v14, 0.0  ;;  %v3325_v61 = vadd.f32 %v3324_v18, %v3102_v3  ;;  %v3104_v22 = vadd.f32 %v3103_v4, %v8119_v48 }
 0x206   :  { %v3105_v12 = vpop.f32.mrf.mxu0 }
 0x207   :  { %v3328_v13 = vpop.f32.mrf.mxu1  ;;  %v3327_v46 = vadd.f32 %v3326_v11, %v3104_v22  ;;  %v3106_v51 = vadd.f32 %v3105_v12, %v8128_v57  ;;  %v8560_v49 = vpack.c.bf16 %v4376_v24, %v4372_v60  ;;  %v6307_v57 = vld [vmem:[%s9500_s3 + $0x164] ss:$8 sps:$4 sm:$0xff]   ;;  %v4379_v2 = vmax.f32 %v3325_v61, 0.0  ;;  %v6302_v11 = vld [vmem:[%s9500_s3 + $0x60] ss:$8 sps:$4 sm:$0xff]  }
 0x208   :  { %v3107_v35 = vpop.f32.mrf.mxu0  ;;  %v6305_v24 = vld [vmem:[%s9500_s3 + $0x160] ss:$8 sps:$4 sm:$0xff]  }
 0x209   :  { %v3330_v6 = vpop.f32.mrf.mxu1  ;;  %v3329_v5 = vadd.f32 %v3328_v13, %v3106_v51  ;;  %v3108_v48 = vadd.f32 %v3107_v35, %v8139_v36  ;;  %v9888_v36 = vld [vmem:[#allocation55_spill] sm:$0xff]  ;;  %v4380_v54 = vmax.f32 %v3327_v46, 0.0 }
 0x20a   :  { %v3111_v8 = vpop.f32.mrf.mxu0  ;;  %3862 = vmatmul.mubr.bf16.vlgmr.msra.gmra.mxu0 %v9886_v52  ;;  %v6310_v13 = vld [vmem:[%s9500_s3 + $0x54] ss:$8 sps:$4 sm:$0xff]  }
 0x20b   :  { %v3334_v18 = vpop.f32.mrf.mxu1  ;;  %4085 = vmatmul.mubr.bf16.vlgmr.msra.gmra.mxu1 %v9887_v20  ;;  %v4383_v9 = vmax.f32 %v3329_v5, 0.0  ;;  %v3331_v14 = vadd.f32 %v3330_v6, %v3108_v48  ;;  %v3112_v3 = vadd.f32 %v3111_v8, %v8156_v58  ;;  %3871 = vmatprep.mubr.bf16.mxu0 %v9888_v36  ;;  %v6313_v46 = vld [vmem:[%s9500_s3 + $0x154] ss:$8 sps:$4 sm:$0xff]  }
 0x20c   :  { %4094 = vmatprep.mubr.bf16.mxu1 %v9889_v43  ;;  %v3113_v60 = vpop.f32.mrf.mxu0  ;;  %4900 = vmatpush1.bf16.msra.mxu0 %v6296_v10  ;;  %v9893_v43 = vld [vmem:[#allocation59_spill] sm:$0xff] }
 0x20d   :  { %v3336_v4 = vpop.f32.mrf.mxu1  ;;  %5123 = vmatpush1.bf16.msra.mxu1 %v6299_v21  ;;  %v8586_v61 = vpack.c.bf16 %v4383_v9, %v4379_v2  ;;  %v4384_v58 = vmax.f32 %v3331_v14, 0.0  ;;  %v3335_v22 = vadd.f32 %v3334_v18, %v3112_v3  ;;  %v3114_v12 = vadd.f32 %v3113_v60, %v8159_v42  ;;  %4901 = vmatprep.subr.bf16.mxu0 %v6304_v37  ;;  %v6308_v42 = vld [vmem:[%s9500_s3 + $0x50] ss:$8 sps:$4 sm:$0xff]   ;;  %v6319_v18 = vld [vmem:[%s9500_s3 + $0x144] ss:$8 sps:$4 sm:$0xff]  }
 0x20e   :  { %5124 = vmatprep.subr.bf16.mxu1 %v6307_v57  ;;  %v3115_v51 = vpop.f32.mrf.mxu0  ;;  %v6311_v37 = vld [vmem:[%s9500_s3 + $0x150] ss:$8 sps:$4 sm:$0xff]   ;;  %v9891_v2 = vld [vmem:[#allocation57_spill] sm:$0xff]  ;;  %v9892_v9 = vld [vmem:[#allocation58_spill] sm:$0xff] }
 0x20f   :  { %9890 = vst [vmem:[#allocation11_spill] sm:$0xff] %v8586_v61  ;;  %v3338_v35 = vpop.f32.mrf.mxu1  ;;  %v3337_v6 = vadd.f32 %v3336_v4, %v3114_v12  ;;  %v3116_v10 = vadd.f32 %v3115_v51, %v8168_v56  ;;  %v8596_v21 = vpack.c.bf16 %v4384_v58, %v4380_v54  ;;  %v6316_v56 = vld [vmem:[%s9500_s3 + $0x44] ss:$8 sps:$4 sm:$0xff]   ;;  %v4387_v14 = vmax.f32 %v3335_v22, 0.0  ;;  %v9894_v54 = vld [vmem:[#allocation60_spill] sm:$0xff] }
 0x210   :  { %v3117_v5 = vpop.f32.mrf.mxu0  ;;  %4902 = vmatpush1.bf16.msra.mxu0 %v6302_v11  ;;  %v6317_v58 = vld [vmem:[%s9500_s3 + $0x140] ss:$8 sps:$4 sm:$0xff]   ;;  %v6325_v51 = vld [vmem:[%s9500_s3 + $0x134] ss:$8 sps:$4 sm:$0xff]  }
 0x211   :  { %v3340_v48 = vpop.f32.mrf.mxu1  ;;  %5125 = vmatpush1.bf16.msra.mxu1 %v6305_v24  ;;  %v3339_v57 = vadd.f32 %v3338_v35, %v3116_v10  ;;  %v3118_v8 = vadd.f32 %v3117_v5, %v8179_v55  ;;  %4903 = vmatprep.subr.bf16.mxu0 %v6310_v13  ;;  %v4388_v60 = vmax.f32 %v3337_v6, 0.0  ;;  %v6314_v24 = vld [vmem:[%s9500_s3 + $0x40] ss:$8 sps:$4 sm:$0xff]  }
 0x212   :  { %5126 = vmatprep.subr.bf16.mxu1 %v6313_v46  ;;  %v3121_v52 = vpop.f32.mrf.mxu0  ;;  %3872 = vmatmul.mubr.bf16.gmra.mxu0 %v9891_v2  ;;  %v6322_v46 = vld [vmem:[%s9500_s3 + $0x34] ss:$8 sps:$4 sm:$0xff]   ;;  %v9897_v2 = vld [vmem:[#allocation61_spill] sm:$0xff] }
 0x213   :  { %v3344_v20 = vpop.f32.mrf.mxu1  ;;  %4095 = vmatmul.mubr.bf16.gmra.mxu1 %v9892_v9  ;;  %v4391_v3 = vmax.f32 %v3339_v57, 0.0  ;;  %v3341_v36 = vadd.f32 %v3340_v48, %v3118_v8  ;;  %v3122_v55 = vadd.f32 %v3121_v52, %v8190_v29  ;;  %3881 = vmatprep.mubr.bf16.mxu0 %v9893_v43  ;;  %v6323_v57 = vld [vmem:[%s9500_s3 + $0x130] ss:$8 sps:$4 sm:$0xff]   ;;  %v9898_v9 = vld [vmem:[#allocation62_spill] sm:$0xff] }
 0x214   :  { %4104 = vmatprep.mubr.bf16.mxu1 %v9894_v54  ;;  %v3123_v4 = vpop.f32.mrf.mxu0  ;;  %4904 = vmatpush1.bf16.msra.mxu0 %v6308_v42  ;;  %v9900_v43 = vld [vmem:[#allocation64_spill] sm:$0xff] }
 0x215   :  { %v3346_v11 = vpop.f32.mrf.mxu1  ;;  %5127 = vmatpush1.bf16.msra.mxu1 %v6311_v37  ;;  %v8622_v22 = vpack.c.bf16 %v4391_v3, %v4387_v14  ;;  %v4392_v29 = vmax.f32 %v3341_v36, 0.0  ;;  %v3345_v12 = vadd.f32 %v3344_v20, %v3122_v55  ;;  %v3124_v13 = vadd.f32 %v3123_v4, %v8199_v16  ;;  %4905 = vmatprep.subr.bf16.mxu0 %v6316_v56  ;;  %v6320_v16 = vld [vmem:[%s9500_s3 + $0x30] ss:$8 sps:$4 sm:$0xff]  }
 0x216   :  { %5128 = vmatprep.subr.bf16.mxu1 %v6319_v18  ;;  %v3125_v35 = vpop.f32.mrf.mxu0  ;;  %v6331_v18 = vld [vmem:[%s9500_s3 + $0x124] ss:$8 sps:$4 sm:$0xff]   ;;  %v9899_v55 = vld [vmem:[#allocation63_spill] sm:$0xff] }
 0x217   :  { %9895 = vst [vmem:[#allocation12_spill] sm:$0xff] %v8622_v22  ;;  %v3348_v6 = vpop.f32.mrf.mxu1  ;;  %v3347_v10 = vadd.f32 %v3346_v11, %v3124_v13  ;;  %v3126_v5 = vadd.f32 %v3125_v35, %v8208_v27  ;;  %v8632_v48 = vpack.c.bf16 %v4392_v29, %v4388_v60  ;;  %v6328_v27 = vld [vmem:[%s9500_s3 + $0x24] ss:$8 sps:$4 sm:$0xff]   ;;  %v4395_v14 = vmax.f32 %v3345_v12, 0.0  ;;  %v6326_v11 = vld [vmem:[%s9500_s3 + $0x20] ss:$8 sps:$4 sm:$0xff]  }
 0x218   :  { %v3127_v42 = vpop.f32.mrf.mxu0  ;;  %4906 = vmatpush1.bf16.msra.mxu0 %v6314_v24  ;;  %v6329_v24 = vld [vmem:[%s9500_s3 + $0x120] ss:$8 sps:$4 sm:$0xff]   ;;  %v6334_v13 = vld [vmem:[%s9500_s3 + $0x14] ss:$8 sps:$4 sm:$0xff]  }
 0x219   :  { %9896 = vst [vmem:[#allocation97_spill] sm:$0xff] %v8632_v48  ;;  %v3350_v37 = vpop.f32.mrf.mxu1  ;;  %5129 = vmatpush1.bf16.msra.mxu1 %v6317_v58  ;;  %v3349_v8 = vadd.f32 %v3348_v6, %v3126_v5  ;;  %v3128_v56 = vadd.f32 %v3127_v42, %v8219_v28  ;;  %4907 = vmatprep.subr.bf16.mxu0 %v6322_v46  ;;  %v4396_v54 = vmax.f32 %v3347_v10, 0.0  ;;  %v6337_v46 = vld [vmem:[%s9500_s3 + $0x114] ss:$8 sps:$4 sm:$0xff]  }
 0x21a   :  { %5130 = vmatprep.subr.bf16.mxu1 %v6325_v51  ;;  %v3131_v52 = vpop.f32.mrf.mxu0  ;;  %3882 = vmatmul.mubr.bf16.gmra.mxu0 %v9897_v2  ;;  %v9952_v48 = vld [vmem:[#allocation127_spill] sm:$0xff] }
 0x21b   :  { %v3354_v20 = vpop.f32.mrf.mxu1  ;;  %4105 = vmatmul.mubr.bf16.gmra.mxu1 %v9898_v9  ;;  %v4399_v3 = vmax.f32 %v3349_v8, 0.0  ;;  %v3351_v36 = vadd.f32 %v3350_v37, %v3128_v56  ;;  %v3132_v28 = vadd.f32 %v3131_v52, %v8230_v45  ;;  %3891 = vmatprep.mubr.bf16.mxu0 %v9899_v55  ;;  %v6346_v56 = vld [vmem:[%s9500_s3 + $0x104] ss:$8 sps:$4 sm:$0xff]  }
 0x21c   :  { %4114 = vmatprep.mubr.bf16.mxu1 %v9900_v43  ;;  %v3133_v60 = vpop.f32.mrf.mxu0  ;;  %4908 = vmatpush1.bf16.msra.mxu0 %v6320_v16  ;;  %v6335_v16 = vld [vmem:[%s9500_s3 + $0x110] ss:$8 sps:$4 sm:$0xff]   ;;  %v9903_v52 = vld [vmem:[#allocation65_spill] sm:$0xff] }
 0x21d   :  { %v3356_v4 = vpop.f32.mrf.mxu1  ;;  %5131 = vmatpush1.bf16.msra.mxu1 %v6323_v57  ;;  %v8658_v58 = vpack.c.bf16 %v4399_v3, %v4395_v14  ;;  %v4400_v45 = vmax.f32 %v3351_v36, 0.0  ;;  %v3355_v29 = vadd.f32 %v3354_v20, %v3132_v28  ;;  %v3134_v12 = vadd.f32 %v3133_v60, %v8239_v26  ;;  %4909 = vmatprep.subr.bf16.mxu0 %v6328_v27  ;;  %v6332_v26 = vld [vmem:[%s9500_s3 + $0x10] ss:$8 sps:$4 sm:$0xff]   ;;  %v9904_v20 = vld [vmem:[#allocation66_spill] sm:$0xff] }
 0x21e   :  { %5132 = vmatprep.subr.bf16.mxu1 %v6331_v18  ;;  %v3135_v51 = vpop.f32.mrf.mxu0  ;;  %v9905_v3 = vld [vmem:[#allocation67_spill] sm:$0xff]  ;;  %v9906_v36 = vld [vmem:[#allocation68_spill] sm:$0xff]  ;;  %v6344_v60 = vld [vmem:[%s9500_s3 + $0x100] ss:$8 sps:$4 sm:$0xff]  }
 0x21f   :  { %9901 = vst [vmem:[#allocation100_spill] sm:$0xff] %v8658_v58  ;;  %v3358_v35 = vpop.f32.mrf.mxu1  ;;  %v3357_v6 = vadd.f32 %v3356_v4, %v3134_v12  ;;  %v3136_v10 = vadd.f32 %v3135_v51, %v8248_v53  ;;  %v8668_v5 = vpack.c.bf16 %v4400_v45, %v4396_v54  ;;  %v6340_v53 = vld [vmem:[%s9500_s3 + $0x4] ss:$8 sps:$4 sm:$0xff]   ;;  %v4403_v2 = vmax.f32 %v3355_v29, 0.0  ;;  %v6338_v54 = vld [vmem:[%s9500_s3] ss:$8 sps:$4 sm:$0xff]  }
 0x220   :  { %v3137_v42 = vpop.f32.mrf.mxu0  ;;  %4910 = vmatpush1.bf16.msra.mxu0 %v6326_v11  ;;  %v6343_v45 = vld [vmem:[%s9500_s3 + $0xf4] ss:$8 sps:$4 sm:$0xff]  }
 0x221   :  { %9902 = vst [vmem:[#allocation101_spill] sm:$0xff] %v8668_v5  ;;  %v3360_v37 = vpop.f32.mrf.mxu1  ;;  %5133 = vmatpush1.bf16.msra.mxu1 %v6329_v24  ;;  %v3359_v57 = vadd.f32 %v3358_v35, %v3136_v10  ;;  %v3138_v8 = vadd.f32 %v3137_v42, %v8259_v44  ;;  %4911 = vmatprep.subr.bf16.mxu0 %v6334_v13  ;;  %v4404_v28 = vmax.f32 %v3357_v6, 0.0  ;;  %v6358_v29 = vld [vmem:[%s9500_s3 + $0x1f4] ss:$8 sps:$4 sm:$0xff]   ;;  %v6356_v42 = vld [vmem:[%s9500_s3 + $0x1f0] ss:$8 sps:$4 sm:$0xff]  }
 0x222   :  { %5134 = vmatprep.subr.bf16.mxu1 %v6337_v46  ;;  %v3141_v27 = vpop.f32.mrf.mxu0  ;;  %3892 = vmatmul.mubr.bf16.gmra.mxu0 %v9903_v52 }
 0x223   :  { %v3364_v18 = vpop.f32.mrf.mxu1  ;;  %4115 = vmatmul.mubr.bf16.gmra.mxu1 %v9904_v20  ;;  %v4407_v9 = vmax.f32 %v3359_v57, 0.0  ;;  %v3361_v14 = vadd.f32 %v3360_v37, %v3138_v8  ;;  %v3142_v44 = vadd.f32 %v3141_v27, %v8270_v63  ;;  %3901 = vmatprep.mubr.bf16.mxu0 %v9905_v3  ;;  %v9911_v27 = vld [vmem:[#allocation73_spill] sm:$0xff] }
 0x224   :  { %4124 = vmatprep.mubr.bf16.mxu1 %v9906_v36  ;;  %v3143_v55 = vpop.f32.mrf.mxu0  ;;  %4912 = vmatpush1.bf16.msra.mxu0 %v6332_v26 }
 0x225   :  { %v3366_v43 = vpop.f32.mrf.mxu1  ;;  %5135 = vmatpush1.bf16.msra.mxu1 %v6335_v16  ;;  %v8694_v4 = vpack.c.bf16 %v4407_v9, %v4403_v2  ;;  %v4408_v63 = vmax.f32 %v3361_v14, 0.0  ;;  %v3365_v11 = vadd.f32 %v3364_v18, %v3142_v44  ;;  %v3144_v24 = vadd.f32 %v3143_v55, %v8279_v50  ;;  %4913 = vmatprep.subr.bf16.mxu0 %v6340_v53  ;;  %v6341_v50 = vld [vmem:[%s9500_s3 + $0xf0] ss:$8 sps:$4 sm:$0xff]   ;;  %v6367_v16 = vld [vmem:[%s9500_s3 + $0x1e4] ss:$8 sps:$4 sm:$0xff]  }
 0x226   :  { %5136 = vmatprep.subr.bf16.mxu1 %v6346_v56  ;;  %v3145_v12 = vpop.f32.mrf.mxu0  ;;  %v9909_v53 = vld [vmem:[#allocation69_spill] sm:$0xff]  ;;  %v9910_v56 = vld [vmem:[#allocation70_spill] sm:$0xff]  ;;  %v441_v18 = vsub.s32 2, %v9911_v27  ;;  %v9912_v9 = vld [vmem:[#allocation71_spill] sm:$0xff] }
 0x227   :  { %9907 = vst [vmem:[#allocation13_spill] sm:$0xff] %v8694_v4  ;;  %v3368_v13 = vpop.f32.mrf.mxu1  ;;  %v3367_v46 = vadd.f32 %v3366_v43, %v3144_v24  ;;  %v3146_v51 = vadd.f32 %v3145_v12, %v8288_v31  ;;  %v8704_v35 = vpack.c.bf16 %v4408_v63, %v4404_v28  ;;  %v6349_v31 = vld [vmem:[%s9500_s3 + $0xe4] ss:$8 sps:$4 sm:$0xff]   ;;  %v4411_v52 = vmax.f32 %v3365_v11, 0.0  ;;  %v9913_v14 = vld [vmem:[#allocation72_spill] sm:$0xff] }
 0x228   :  { %v3147_v6 = vpop.f32.mrf.mxu0  ;;  %4914 = vmatpush1.bf16.msra.mxu0 %v6338_v54  ;;  %v445_v28 = vsub.s32 3, %v9911_v27  ;;  %v6347_v55 = vld [vmem:[%s9500_s3 + $0xe0] ss:$8 sps:$4 sm:$0xff]   ;;  %v6352_v11 = vld [vmem:[%s9500_s3 + $0xd4] ss:$8 sps:$4 sm:$0xff]  }
 0x229   :  { %9908 = vst [vmem:[#allocation14_spill] sm:$0xff] %v8704_v35  ;;  %v3370_v10 = vpop.f32.mrf.mxu1  ;;  %5137 = vmatpush1.bf16.msra.mxu1 %v6344_v60  ;;  %v3369_v37 = vadd.f32 %v3368_v13, %v3146_v51  ;;  %v3148_v26 = vadd.f32 %v3147_v6, %v8299_v62  ;;  %4915 = vmatprep.subr.bf16.mxu0 %v6343_v45  ;;  %v4412_v44 = vmax.f32 %v3367_v46, 0.0  ;;  %v6365_v43 = vld [vmem:[%s9500_s3 + $0x1e0] ss:$8 sps:$4 sm:$0xff]   ;;  %v6376_v24 = vld [vmem:[%s9500_s3 + $0x1d4] ss:$8 sps:$4 sm:$0xff]  }
 0x22a   :  { %5138 = vmatprep.subr.bf16.mxu1 %v6358_v29  ;;  %v3151_v57 = vpop.f32.mrf.mxu0  ;;  %3902 = vmatmul.mubr.bf16.gmra.mxu0 %v9909_v53  ;;  %v6392_v46 = vld [vmem:[%s9499_s2] sm:$0xf]  ;;  %v9916_v53 = vld [vmem:[#allocation74_spill] sm:$0xff]  ;;  %v9946_v35 = vld [vmem:[#allocation119_spill] sm:$0xff] }
 0x22b   :  { %v3374_v8 = vpop.f32.mrf.mxu1  ;;  %4125 = vmatmul.mubr.bf16.gmra.mxu1 %v9910_v56  ;;  %v4415_v62 = vmax.f32 %v3369_v37, 0.0  ;;  %v3371_v20 = vadd.f32 %v3370_v10, %v3148_v26  ;;  %v3152_v2 = vadd.f32 %v3151_v57, %v8310_v19  ;;  %3911 = vmatprep.mubr.bf16.mxu0 %v9912_v9  ;;  %v8756_v26 = vrot.slane %v6392_v46, %v445_v28  ;;  %v9917_v56 = vld [vmem:[#allocation75_spill] sm:$0xff] }
 0x22c   :  { %4134 = vmatprep.mubr.bf16.mxu1 %v9913_v14  ;;  %v3153_v3 = vpop.f32.mrf.mxu0  ;;  %4916 = vmatpush2.bf16.msra.mxu0 %v6341_v50  ;;  %v6350_v50 = vld [vmem:[%s9500_s3 + $0xd0] ss:$8 sps:$4 sm:$0xff]  }
 0x22d   :  { %v3376_v36 = vpop.f32.mrf.mxu1  ;;  %5139 = vmatpush2.bf16.msra.mxu1 %v6356_v42  ;;  %v8732_v19 = vpack.c.bf16 %v4415_v62, %v4411_v52  ;;  %v4416_v54 = vmax.f32 %v3371_v20, 0.0  ;;  %v3375_v60 = vadd.f32 %v3374_v8, %v3152_v2  ;;  %v3154_v63 = vadd.f32 %v3153_v3, %v8319_v34  ;;  %4917 = vmatprep.subr.bf16.mxu0 %v6349_v31  ;;  %v6355_v31 = vld [vmem:[%s9500_s3 + $0xc4] ss:$8 sps:$4 sm:$0xff]   ;;  %v9918_v20 = vld [vmem:[#allocation76_spill] sm:$0xff]  ;;  %v6353_v3 = vld [vmem:[%s9500_s3 + $0xc0] ss:$8 sps:$4 sm:$0xff]  }
 0x22e   :  { %5140 = vmatprep.subr.bf16.mxu1 %v6367_v16  ;;  %v3155_v45 = vpop.f32.mrf.mxu0  ;;  %v8745_v34 = vrot.slane %v6392_v46, %v441_v18  ;;  %v6379_v16 = vld [vmem:[%s9500_s3 + $0x1c4] ss:$8 sps:$4 sm:$0xff]  }
 0x22f   :  { %9914 = vst [vmem:[#allocation102_spill] sm:$0xff] %v8732_v19  ;;  %v3378_v29 = vpop.f32.mrf.mxu1  ;;  %v3377_v12 = vadd.f32 %v3376_v36, %v3154_v63  ;;  %v3156_v13 = vadd.f32 %v3155_v45, %v8328_v47  ;;  %v8747_v51 = vpack.c.bf16 %v4416_v54, %v4412_v44  ;;  %v6374_v47 = vld [vmem:[%s9500_s3 + $0x1d0] ss:$8 sps:$4 sm:$0xff]   ;;  %v4419_v18 = vmax.f32 %v3375_v60, 0.0  ;;  %v9919_v2 = vld [vmem:[#allocation77_spill] sm:$0xff] }
 0x230   :  { %v3157_v6 = vpop.f32.mrf.mxu0  ;;  %4918 = vmatpush2.bf16.msra.mxu0 %v6347_v55  ;;  %v6377_v36 = vld [vmem:[%s9500_s3 + $0x1c0] ss:$8 sps:$4 sm:$0xff]   ;;  %v6361_v60 = vld [vmem:[%s9500_s3 + $0xb4] ss:$8 sps:$4 sm:$0xff]  }
 0x231   :  { %9915 = vst [vmem:[#allocation15_spill] sm:$0xff] %v8747_v51  ;;  %v3380_v10 = vpop.f32.mrf.mxu1  ;;  %5141 = vmatpush2.bf16.msra.mxu1 %v6365_v43  ;;  %v3379_v42 = vadd.f32 %v3378_v29, %v3156_v13  ;;  %v3158_v37 = vadd.f32 %v3157_v6, %v8339_v25  ;;  %4919 = vmatprep.subr.bf16.mxu0 %v6352_v11  ;;  %v4420_v9 = vmax.f32 %v3377_v12, 0.0  ;;  %v6382_v29 = vld [vmem:[%s9500_s3 + $0x1b4] ss:$8 sps:$4 sm:$0xff]   ;;  %v6359_v6 = vld [vmem:[%s9500_s3 + $0xb0] ss:$8 sps:$4 sm:$0xff]  }
 0x232   :  { %5142 = vmatprep.subr.bf16.mxu1 %v6376_v24  ;;  %v3417_v57 = vpop.f32.mrf.mxu0  ;;  %3912 = vmatmul.mubr.bf16.gmra.mxu0 %v9916_v53 }
 0x233   :  { %v3640_v8 = vpop.f32.mrf.mxu1  ;;  %4135 = vmatmul.mubr.bf16.gmra.mxu1 %v9917_v56  ;;  %v4423_v25 = vmax.f32 %v3379_v42, 0.0  ;;  %v3381_v52 = vadd.f32 %v3380_v10, %v3158_v37  ;;  %v3418_v62 = vadd.f32 %v3417_v57, %v8745_v34  ;;  %3921 = vmatprep.mubr.bf16.mxu0 %v9918_v20  ;;  %v6380_v10 = vld [vmem:[%s9500_s3 + $0x1b0] ss:$8 sps:$4 sm:$0xff]   ;;  %v6364_v42 = vld [vmem:[%s9500_s3 + $0xa4] ss:$8 sps:$4 sm:$0xff]  }
 0x234   :  { %4144 = vmatprep.mubr.bf16.mxu1 %v9919_v2  ;;  %v3419_v14 = vpop.f32.mrf.mxu0  ;;  %4920 = vmatpush2.bf16.msra.mxu0 %v6350_v50  ;;  %v9923_v57 = vld [vmem:[#allocation79_spill] sm:$0xff]  ;;  %v9924_v56 = vld [vmem:[#allocation80_spill] sm:$0xff] }
 0x235   :  { %v3642_v44 = vpop.f32.mrf.mxu1  ;;  %5143 = vmatpush2.bf16.msra.mxu1 %v6374_v47  ;;  %v8775_v28 = vpack.c.bf16 %v4423_v25, %v4419_v18  ;;  %v4424_v55 = vmax.f32 %v3381_v52, 0.0  ;;  %v8777_v43 = vadd.f32 %v3640_v8, %v3418_v62  ;;  %v3420_v54 = vadd.f32 %v3419_v14, %v8756_v26  ;;  %4921 = vmatprep.subr.bf16.mxu0 %v6355_v31  ;;  %v9925_v18 = vld [vmem:[#allocation81_spill] sm:$0xff] }
 0x236   :  { %5144 = vmatprep.subr.bf16.mxu1 %v6379_v16  ;;  %v3421_v63 = vpop.f32.mrf.mxu0  ;;  %v9922_v16 = vld [vmem:[#allocation78_spill] sm:$0xff] }
 0x237   :  { %9920 = vst [vmem:[#allocation16_spill] sm:$0xff] %v8775_v28  ;;  %v3644_v11 = vpop.f32.mrf.mxu1  ;;  %v8783_v24 = vadd.f32 %v3642_v44, %v3420_v54  ;;  %v3422_v45 = vadd.f32 %v3421_v63, %v8745_v34  ;;  %v8789_v12 = vpack.c.bf16 %v4424_v55, %v4420_v9  ;;  %v6362_v62 = vld [vmem:[%s9500_s3 + $0xa0] ss:$8 sps:$4 sm:$0xff]   ;;  %v6370_v9 = vld [vmem:[%s9500_s3 + $0x94] ss:$8 sps:$4 sm:$0xff]  }
 0x238   :  { %v3423_v13 = vpop.f32.mrf.mxu0  ;;  %4922 = vmatpush2.bf16.msra.mxu0 %v6353_v3 }
 0x239   :  { %9921 = vst [vmem:[#allocation105_spill] sm:$0xff] %v8789_v12  ;;  %v3646_v46 = vpop.f32.mrf.mxu1  ;;  %5145 = vmatpush2.bf16.msra.mxu1 %v6377_v36  ;;  %v8797_v50 = vadd.f32 %v3644_v11, %v3422_v45  ;;  %v3424_v47 = vadd.f32 %v3423_v13, %v8756_v26  ;;  %4923 = vmatprep.subr.bf16.mxu0 %v6361_v60  ;;  %v6368_v60 = vld [vmem:[%s9500_s3 + $0x90] ss:$8 sps:$4 sm:$0xff]   ;;  %v6373_v45 = vld [vmem:[%s9500_s3 + $0x84] ss:$8 sps:$4 sm:$0xff]  }
 0x23a   :  { %5146 = vmatprep.subr.bf16.mxu1 %v6382_v29  ;;  %v3427_v37 = vpop.f32.mrf.mxu0  ;;  %3922 = vmatmul.mubr.bf16.gmra.mxu0 %v9922_v16  ;;  %v6383_v29 = vld [vmem:[%s9500_s3 + $0x1a0] ss:$8 sps:$4 sm:$0xff]   ;;  %v6385_v13 = vld [vmem:[%s9500_s3 + $0x1a4] ss:$8 sps:$4 sm:$0xff]   ;;  %v9942_v12 = vld [vmem:[#allocation111_spill] sm:$0xff] }
 0x23b   :  { %v3650_v31 = vpop.f32.mrf.mxu1  ;;  %4145 = vmatmul.mubr.bf16.gmra.mxu1 %v9923_v57  ;;  %v8805_v8 = vadd.f32 %v3646_v46, %v3424_v47  ;;  %v3428_v53 = vadd.f32 %v3427_v37, %v8745_v34  ;;  %3931 = vmatprep.mubr.bf16.mxu0 %v9924_v56  ;;  %v9927_v47 = vld [vmem:[#allocation83_spill] sm:$0xff]  ;;  %v9929_v16 = vld [vmem:[#allocation85_spill] sm:$0xff] }
 0x23c   :  { %4154 = vmatprep.mubr.bf16.mxu1 %v9925_v18  ;;  %v3429_v25 = vpop.f32.mrf.mxu0  ;;  %4924 = vmatpush2.bf16.msra.mxu0 %v6359_v6  ;;  %v6371_v56 = vld [vmem:[%s9500_s3 + $0x80] ss:$8 sps:$4 sm:$0xff]  }
 0x23d   :  { %v3652_v52 = vpop.f32.mrf.mxu1  ;;  %5147 = vmatpush2.bf16.msra.mxu1 %v6380_v10  ;;  %v8813_v20 = vadd.f32 %v3650_v31, %v3428_v53  ;;  %v3430_v2 = vadd.f32 %v3429_v25, %v8756_v26  ;;  %4925 = vmatprep.subr.bf16.mxu0 %v6364_v42  ;;  %v9926_v10 = vld [vmem:[#allocation82_spill] sm:$0xff]  ;;  %v9928_v31 = vld [vmem:[#allocation84_spill] sm:$0xff] }
 0x23e   :  { %v3431_v14 = vpop.f32.mrf.mxu0  ;;  %5148 = vmatprep.subr.bf16.mxu1 %v6385_v13  ;;  %v9931_v13 = vld [vmem:[#allocation90_spill] sm:$0xff] }
 0x23f   :  { %v3654_v44 = vpop.f32.mrf.mxu1  ;;  %v8819_v3 = vadd.f32 %v3652_v52, %v3430_v2  ;;  %v3432_v36 = vadd.f32 %v3431_v14, %v8745_v34 }
 0x240   :  { %v3433_v55 = vpop.f32.mrf.mxu0  ;;  %4926 = vmatpush2.bf16.msra.mxu0 %v6362_v62 }
 0x241   :  { %v3656_v54 = vpop.f32.mrf.mxu1  ;;  %v8825_v63 = vadd.f32 %v3654_v44, %v3432_v36  ;;  %v3434_v11 = vadd.f32 %v3433_v55, %v8756_v26  ;;  %4927 = vmatprep.subr.bf16.mxu0 %v6370_v9  ;;  %5149 = vmatpush2.bf16.msra.mxu1 %v6383_v29  ;;  %v9930_v29 = vld [vmem:[#allocation89_spill] sm:$0xff] }
 0x242   :  { %v3437_v46 = vpop.f32.mrf.mxu0  ;;  %3932 = vmatmul.mubr.bf16.gmra.mxu0 %v9926_v10  ;;  %v9932_v10 = vld [vmem:[#allocation91_spill] sm:$0xff] }
 0x243   :  { %v3660_v6 = vpop.f32.mrf.mxu1  ;;  %4155 = vmatmul.mubr.bf16.gmra.mxu1 %v9927_v47  ;;  %v8839_v42 = vadd.f32 %v3656_v54, %v3434_v11  ;;  %v3438_v37 = vadd.f32 %v3437_v46, %v8745_v34  ;;  %3941 = vmatprep.mubr.bf16.mxu0 %v9928_v31  ;;  %v6386_v54 = vld [vmem:[%s9500_s3 + $0x190] ss:$8 sps:$4 sm:$0xff]  }
 0x244   :  { %4164 = vmatprep.mubr.bf16.mxu1 %v9929_v16  ;;  %v3439_v57 = vpop.f32.mrf.mxu0  ;;  %4928 = vmatpush2.bf16.msra.mxu0 %v6368_v60  ;;  %v6388_v60 = vld [vmem:[%s9500_s3 + $0x194] ss:$8 sps:$4 sm:$0xff]  }
 0x245   :  { %v3662_v53 = vpop.f32.mrf.mxu1  ;;  %v8847_v18 = vadd.f32 %v3660_v6, %v3438_v37  ;;  %v3440_v25 = vadd.f32 %v3439_v57, %v8756_v26  ;;  %4929 = vmatprep.subr.bf16.mxu0 %v6373_v45  ;;  %v9933_v47 = vld [vmem:[#allocation92_spill] sm:$0xff]  ;;  %5150 = vmatprep.subr.bf16.mxu1 %v6388_v60  ;;  %v9934_v60 = vld [vmem:[#allocation95_spill] sm:$0xff] }
 0x246   :  { %v3441_v52 = vpop.f32.mrf.mxu0  ;;  %5151 = vmatpush2.bf16.msra.mxu1 %v6386_v54 }
 0x247   :  { %v3664_v62 = vpop.f32.mrf.mxu1  ;;  %v8850_v2 = vadd.f32 %v3662_v53, %v3440_v25  ;;  %v3442_v9 = vadd.f32 %v3441_v52, %v8745_v34 }
 0x248   :  { %v3443_v14 = vpop.f32.mrf.mxu0  ;;  %4930 = vmatpush2.bf16.msra.mxu0 %v6371_v56 }
 0x249   :  { %v3666_v44 = vpop.f32.mrf.mxu1  ;;  %v8853_v36 = vadd.f32 %v3664_v62, %v3442_v9  ;;  %v3444_v55 = vadd.f32 %v3443_v14, %v8756_v26 }
 0x24a   :  { %v3447_v11 = vpop.f32.mrf.mxu0  ;;  %3942 = vmatmul.mubr.bf16.gmra.mxu0 %v9930_v29 }
 0x24b   :  { %v3670_v45 = vpop.f32.mrf.mxu1  ;;  %4165 = vmatmul.mubr.bf16.gmra.mxu1 %v9931_v13  ;;  %v8864_v46 = vadd.f32 %v3666_v44, %v3444_v55  ;;  %v3448_v6 = vadd.f32 %v3447_v11, %v8745_v34  ;;  %3951 = vmatprep.mubr.bf16.mxu0 %v9932_v10  ;;  %v9936_v13 = vld [vmem:[#allocation98_spill] sm:$0xff] }
 0x24c   :  { %4174 = vmatprep.mubr.bf16.mxu1 %v9933_v47  ;;  %v3449_v37 = vpop.f32.mrf.mxu0 }
 0x24d   :  { %v3672_v31 = vpop.f32.mrf.mxu1  ;;  %v8869_v16 = vadd.f32 %v3670_v45, %v3448_v6  ;;  %v3450_v57 = vadd.f32 %v3449_v37, %v8756_v26  ;;  %v9935_v45 = vld [vmem:[#allocation96_spill] sm:$0xff]  ;;  %v9937_v6 = vld [vmem:[#allocation99_spill] sm:$0xff] }
 0x24e   :  { %v3451_v53 = vpop.f32.mrf.mxu0 }
 0x24f   :  { %v3674_v56 = vpop.f32.mrf.mxu1  ;;  %v8872_v25 = vadd.f32 %v3672_v31, %v3450_v57  ;;  %v3452_v52 = vadd.f32 %v3451_v53, %v8745_v34  ;;  %v6389_v57 = vld [vmem:[%s9500_s3 + $0x180] ss:$8 sps:$4 sm:$0xff]   ;;  %v6391_v53 = vld [vmem:[%s9500_s3 + $0x184] ss:$8 sps:$4 sm:$0xff]  }
 0x250   :  { %v3453_v62 = vpop.f32.mrf.mxu0  ;;  %5152 = vmatprep.subr.bf16.mxu1 %v6391_v53  ;;  %v9941_v53 = vld [vmem:[#allocation107_spill] sm:$0xff] }
 0x251   :  { %v3676_v9 = vpop.f32.mrf.mxu1  ;;  %v8875_v14 = vadd.f32 %v3674_v56, %v3452_v52  ;;  %v3454_v44 = vadd.f32 %v3453_v62, %v8756_v26  ;;  %5153 = vmatpush2.bf16.msra.mxu1 %v6389_v57 }
 0x252   :  { %v3457_v55 = vpop.f32.mrf.mxu0  ;;  %3952 = vmatmul.mubr.bf16.gmra.mxu0 %v9934_v60 }
 0x253   :  { %v3680_v11 = vpop.f32.mrf.mxu1  ;;  %4175 = vmatmul.mubr.bf16.gmra.mxu1 %v9935_v45  ;;  %v8880_v29 = vadd.f32 %v3676_v9, %v3454_v44  ;;  %v3458_v54 = vadd.f32 %v3457_v55, %v8745_v34  ;;  %3961 = vmatprep.mubr.bf16.mxu0 %v9936_v13  ;;  %v9938_v13 = vld [vmem:[#allocation103_spill] sm:$0xff] }
 0x254   :  { %4184 = vmatprep.mubr.bf16.mxu1 %v9937_v6  ;;  %v3459_v10 = vpop.f32.mrf.mxu0  ;;  %v9939_v6 = vld [vmem:[#allocation104_spill] sm:$0xff] }
 0x255   :  { %v3682_v47 = vpop.f32.mrf.mxu1  ;;  %v8885_v37 = vadd.f32 %v3680_v11, %v3458_v54  ;;  %v3460_v31 = vadd.f32 %v3459_v10, %v8756_v26 }
 0x256   :  { %v3461_v56 = vpop.f32.mrf.mxu0 }
 0x257   :  { %v3684_v52 = vpop.f32.mrf.mxu1  ;;  %v8894_v62 = vadd.f32 %v3682_v47, %v3460_v31  ;;  %v3462_v9 = vadd.f32 %v3461_v56, %v8745_v34  ;;  %v9940_v31 = vld [vmem:[#allocation106_spill] sm:$0xff] }
 0x258   :  { %v3463_v44 = vpop.f32.mrf.mxu0 }
 0x259   :  { %v3686_v55 = vpop.f32.mrf.mxu1  ;;  %v8897_v11 = vadd.f32 %v3684_v52, %v3462_v9  ;;  %v3464_v60 = vadd.f32 %v3463_v44, %v8756_v26 }
 0x25a   :  { %v3467_v45 = vpop.f32.mrf.mxu0  ;;  %3962 = vmatmul.mubr.bf16.gmra.mxu0 %v9938_v13 }
 0x25b   :  { %v3690_v54 = vpop.f32.mrf.mxu1  ;;  %4185 = vmatmul.mubr.bf16.gmra.mxu1 %v9939_v6  ;;  %v8902_v10 = vadd.f32 %v3686_v55, %v3464_v60  ;;  %v3468_v47 = vadd.f32 %v3467_v45, %v8745_v34  ;;  %3971 = vmatprep.mubr.bf16.mxu0 %v9940_v31 }
 0x25c   :  { %4194 = vmatprep.mubr.bf16.mxu1 %v9941_v53  ;;  %v3469_v56 = vpop.f32.mrf.mxu0 }
 0x25d   :  { %v3692_v57 = vpop.f32.mrf.mxu1  ;;  %v8907_v52 = vadd.f32 %v3690_v54, %v3468_v47  ;;  %v3470_v9 = vadd.f32 %v3469_v56, %v8756_v26  ;;  %v9943_v54 = vld [vmem:[#allocation112_spill] sm:$0xff] }
 0x25e   :  { %v3471_v44 = vpop.f32.mrf.mxu0 }
 0x25f   :  { %v3694_v27 = vpop.f32.mrf.mxu1  ;;  %v8910_v28 = vadd.f32 %v3692_v57, %v3470_v9  ;;  %v3472_v13 = vadd.f32 %v3471_v44, %v8745_v34  ;;  %v9944_v57 = vld [vmem:[#allocation114_spill] sm:$0xff]  ;;  %v9945_v9 = vld [vmem:[#allocation115_spill] sm:$0xff] }
 0x260   :  { %v3473_v55 = vpop.f32.mrf.mxu0 }
 0x261   :  { %v3696_v60 = vpop.f32.mrf.mxu1  ;;  %v8913_v6 = vadd.f32 %v3694_v27, %v3472_v13  ;;  %v3474_v45 = vadd.f32 %v3473_v55, %v8756_v26 }
 0x262   :  { %v3477_v31 = vpop.f32.mrf.mxu0  ;;  %3972 = vmatmul.mubr.bf16.gmra.mxu0 %v9942_v12 }
 0x263   :  { %v3700_v53 = vpop.f32.mrf.mxu1  ;;  %4195 = vmatmul.mubr.bf16.gmra.mxu1 %v9943_v54  ;;  %v8918_v47 = vadd.f32 %v3696_v60, %v3474_v45  ;;  %v3478_v56 = vadd.f32 %v3477_v31, %v8745_v34  ;;  %3981 = vmatprep.mubr.bf16.mxu0 %v9944_v57 }
 0x264   :  { %4204 = vmatprep.mubr.bf16.mxu1 %v9945_v9  ;;  %v3479_v44 = vpop.f32.mrf.mxu0 }
 0x265   :  { %v3702_v19 = vpop.f32.mrf.mxu1  ;;  %v8923_v27 = vadd.f32 %v3700_v53, %v3478_v56  ;;  %v3480_v13 = vadd.f32 %v3479_v44, %v8756_v26  ;;  %v9947_v53 = vld [vmem:[#allocation120_spill] sm:$0xff] }
 0x266   :  { %v3481_v55 = vpop.f32.mrf.mxu0 }
 0x267   :  { %v3704_v51 = vpop.f32.mrf.mxu1  ;;  %v8926_v4 = vadd.f32 %v3702_v19, %v3480_v13  ;;  %v3482_v12 = vadd.f32 %v3481_v55, %v8745_v34  ;;  %v9948_v19 = vld [vmem:[#allocation122_spill] sm:$0xff]  ;;  %v9949_v13 = vld [vmem:[#allocation123_spill] sm:$0xff] }
 0x268   :  { %v3483_v60 = vpop.f32.mrf.mxu0 }
 0x269   :  { %v3706_v45 = vpop.f32.mrf.mxu1  ;;  %v8929_v54 = vadd.f32 %v3704_v51, %v3482_v12  ;;  %v3484_v31 = vadd.f32 %v3483_v60, %v8756_v26 }
 0x26a   :  { %v3487_v57 = vpop.f32.mrf.mxu0  ;;  %3982 = vmatmul.mubr.bf16.gmra.mxu0 %v9946_v35 }
 0x26b   :  { %v3710_v9 = vpop.f32.mrf.mxu1  ;;  %4205 = vmatmul.mubr.bf16.gmra.mxu1 %v9947_v53  ;;  %v8934_v56 = vadd.f32 %v3706_v45, %v3484_v31  ;;  %v3488_v44 = vadd.f32 %v3487_v57, %v8745_v34  ;;  %3991 = vmatprep.mubr.bf16.mxu0 %v9948_v19 }
 0x26c   :  { %4214 = vmatprep.mubr.bf16.mxu1 %v9949_v13  ;;  %v3489_v55 = vpop.f32.mrf.mxu0 }
 0x26d   :  { %v3712_v58 = vpop.f32.mrf.mxu1  ;;  %v8939_v51 = vadd.f32 %v3710_v9, %v3488_v44  ;;  %v3490_v12 = vadd.f32 %v3489_v55, %v8756_v26  ;;  %v9953_v9 = vld [vmem:[#allocation128_spill] sm:$0xff] }
 0x26e   :  { %v3491_v60 = vpop.f32.mrf.mxu0 }
 0x26f   :  { %v3714_v5 = vpop.f32.mrf.mxu1  ;;  %v8942_v22 = vadd.f32 %v3712_v58, %v3490_v12  ;;  %v3492_v35 = vadd.f32 %v3491_v60, %v8745_v34  ;;  %v9955_v58 = vld [vmem:[#allocation130_spill] sm:$0xff]  ;;  %v9956_v12 = vld [vmem:[#allocation131_spill] sm:$0xff] }
 0x270   :  { %v3493_v45 = vpop.f32.mrf.mxu0 }
 0x271   :  { %9950 = vst [vmem:[#allocation108_spill] sm:$0xff] %v8942_v22  ;;  %v3716_v31 = vpop.f32.mrf.mxu1  ;;  %v8945_v53 = vadd.f32 %v3714_v5, %v3492_v35  ;;  %v3494_v57 = vadd.f32 %v3493_v45, %v8756_v26 }
 0x272   :  { %v3497_v19 = vpop.f32.mrf.mxu0  ;;  %3992 = vmatmul.mubr.bf16.gmra.mxu0 %v9952_v48 }
 0x273   :  { %9951 = vst [vmem:[#allocation109_spill] sm:$0xff] %v8945_v53  ;;  %v3720_v13 = vpop.f32.mrf.mxu1  ;;  %4215 = vmatmul.mubr.bf16.gmra.mxu1 %v9953_v9  ;;  %v8950_v44 = vadd.f32 %v3716_v31, %v3494_v57  ;;  %v3498_v55 = vadd.f32 %v3497_v19, %v8745_v34  ;;  %4001 = vmatprep.mubr.bf16.mxu0 %v9955_v58 }
 0x274   :  { %4224 = vmatprep.mubr.bf16.mxu1 %v9956_v12  ;;  %v3499_v60 = vpop.f32.mrf.mxu0 }
 0x275   :  { %9954 = vst [vmem:[#allocation17_spill] sm:$0xff] %v8950_v44  ;;  %v3722_v61 = vpop.f32.mrf.mxu1  ;;  %v8955_v5 = vadd.f32 %v3720_v13, %v3498_v55  ;;  %v3500_v35 = vadd.f32 %v3499_v60, %v8756_v26  ;;  %v9960_v44 = vld [vmem:[#allocation135_spill] sm:$0xff]  ;;  %v9961_v13 = vld [vmem:[#allocation136_spill] sm:$0xff] }
 0x276   :  { %v3501_v45 = vpop.f32.mrf.mxu0 }
 0x277   :  { %9957 = vst [vmem:[#allocation18_spill] sm:$0xff] %v8955_v5  ;;  %v3724_v53 = vpop.f32.mrf.mxu1  ;;  %v8958_v22 = vadd.f32 %v3722_v61, %v3500_v35  ;;  %v3502_v48 = vadd.f32 %v3501_v45, %v8745_v34  ;;  %v9963_v61 = vld [vmem:[#allocation138_spill] sm:$0xff]  ;;  %v9964_v35 = vld [vmem:[#allocation139_spill] sm:$0xff] }
 0x278   :  { %v3503_v31 = vpop.f32.mrf.mxu0 }
 0x279   :  { %9958 = vst [vmem:[#allocation110_spill] sm:$0xff] %v8958_v22  ;;  %v3726_v57 = vpop.f32.mrf.mxu1  ;;  %v8961_v9 = vadd.f32 %v3724_v53, %v3502_v48  ;;  %v3504_v19 = vadd.f32 %v3503_v31, %v8756_v26 }
 0x27a   :  { %v3507_v58 = vpop.f32.mrf.mxu0  ;;  %4002 = vmatmul.mubr.bf16.gmra.mxu0 %v9960_v44 }
 0x27b   :  { %9959 = vst [vmem:[#allocation19_spill] sm:$0xff] %v8961_v9  ;;  %v3730_v12 = vpop.f32.mrf.mxu1  ;;  %4225 = vmatmul.mubr.bf16.gmra.mxu1 %v9961_v13  ;;  %v8966_v55 = vadd.f32 %v3726_v57, %v3504_v19  ;;  %v3508_v60 = vadd.f32 %v3507_v58, %v8745_v34  ;;  %4011 = vmatprep.mubr.bf16.mxu0 %v9963_v61 }
 0x27c   :  { %4234 = vmatprep.mubr.bf16.mxu1 %v9964_v35  ;;  %v3509_v45 = vpop.f32.mrf.mxu0 }
 0x27d   :  { %9962 = vst [vmem:[#allocation20_spill] sm:$0xff] %v8966_v55  ;;  %v3732_v22 = vpop.f32.mrf.mxu1  ;;  %v8971_v53 = vadd.f32 %v3730_v12, %v3508_v60  ;;  %v3510_v48 = vadd.f32 %v3509_v45, %v8756_v26  ;;  %v9968_v55 = vld [vmem:[#allocation143_spill] sm:$0xff]  ;;  %v9969_v12 = vld [vmem:[#allocation144_spill] sm:$0xff] }
 0x27e   :  { %v3511_v31 = vpop.f32.mrf.mxu0 }
 0x27f   :  { %9965 = vst [vmem:[#allocation113_spill] sm:$0xff] %v8971_v53  ;;  %v3734_v9 = vpop.f32.mrf.mxu1  ;;  %v8974_v5 = vadd.f32 %v3732_v22, %v3510_v48  ;;  %v3512_v44 = vadd.f32 %v3511_v31, %v8745_v34  ;;  %v9970_v22 = vld [vmem:[#allocation146_spill] sm:$0xff]  ;;  %v9971_v48 = vld [vmem:[#allocation147_spill] sm:$0xff] }
 0x280   :  { %v3513_v57 = vpop.f32.mrf.mxu0 }
 0x281   :  { %9966 = vst [vmem:[#allocation116_spill] sm:$0xff] %v8974_v5  ;;  %v3736_v19 = vpop.f32.mrf.mxu1  ;;  %v8977_v13 = vadd.f32 %v3734_v9, %v3512_v44  ;;  %v3514_v58 = vadd.f32 %v3513_v57, %v8756_v26 }
 0x282   :  { %v3517_v61 = vpop.f32.mrf.mxu0  ;;  %4012 = vmatmul.mubr.bf16.gmra.mxu0 %v9968_v55 }
 0x283   :  { %9967 = vst [vmem:[#allocation117_spill] sm:$0xff] %v8977_v13  ;;  %v3740_v35 = vpop.f32.mrf.mxu1  ;;  %4235 = vmatmul.mubr.bf16.gmra.mxu1 %v9969_v12  ;;  %v8982_v60 = vadd.f32 %v3736_v19, %v3514_v58  ;;  %v3518_v45 = vadd.f32 %v3517_v61, %v8745_v34  ;;  %4021 = vmatprep.mubr.bf16.mxu0 %v9970_v22 }
 0x284   :  { %4244 = vmatprep.mubr.bf16.mxu1 %v9971_v48  ;;  %v3519_v31 = vpop.f32.mrf.mxu0  ;;  %v9977_v48 = vld [vmem:[#allocation151_spill] sm:$0xff] }
 0x285   :  { %v3742_v5 = vpop.f32.mrf.mxu1  ;;  %v8987_v9 = vadd.f32 %v3740_v35, %v3518_v45  ;;  %v3520_v44 = vadd.f32 %v3519_v31, %v8756_v26  ;;  %v9978_v35 = vld [vmem:[#allocation152_spill] sm:$0xff]  ;;  %v9979_v31 = vld [vmem:[#allocation154_spill] sm:$0xff] }
 0x286   :  { %v3521_v57 = vpop.f32.mrf.mxu0 }
 0x287   :  { %9972 = vst [vmem:[#allocation21_spill] sm:$0xff] %v8987_v9  ;;  %v3744_v13 = vpop.f32.mrf.mxu1  ;;  %v8990_v53 = vadd.f32 %v3742_v5, %v3520_v44  ;;  %v3522_v55 = vadd.f32 %v3521_v57, %v8745_v34  ;;  %v9980_v5 = vld [vmem:[#allocation155_spill] sm:$0xff] }
 0x288   :  { %v8993_v19 = vpop.f32.mrf.mxu0 }
 0x289   :  { %9973 = vst [vmem:[#allocation22_spill] sm:$0xff] %v8990_v53  ;;  %9974 = vst [vmem:[#allocation118_spill] sm:$0xff] %v8993_v19  ;;  %v8995_v58 = vpop.f32.mrf.mxu1  ;;  %v8997_v61 = vadd.f32 %v3744_v13, %v3522_v55  ;;  %v9986_v19 = vld [vmem:[#allocation159_spill] sm:$0xff] }
 0x28a   :  { %9975 = vst [vmem:[#allocation23_spill] sm:$0xff] %v8995_v58  ;;  %v3527_v12 = vpop.f32.mrf.mxu0  ;;  %4022 = vmatmul.mubr.bf16.gmra.mxu0 %v9977_v48 }
 0x28b   :  { %9976 = vst [vmem:[#allocation24_spill] sm:$0xff] %v8997_v61  ;;  %v3750_v22 = vpop.f32.mrf.mxu1  ;;  %4245 = vmatmul.mubr.bf16.gmra.mxu1 %v9978_v35  ;;  %v3528_v45 = vadd.f32 %v3527_v12, %v8745_v34  ;;  %4031 = vmatprep.mubr.bf16.mxu0 %v9979_v31 }
 0x28c   :  { %4254 = vmatprep.mubr.bf16.mxu1 %v9980_v5  ;;  %v3529_v44 = vpop.f32.mrf.mxu0 }
 0x28d   :  { %v3752_v57 = vpop.f32.mrf.mxu1  ;;  %v9004_v53 = vadd.f32 %v3750_v22, %v3528_v45  ;;  %v3530_v58 = vadd.f32 %v3529_v44, %v8756_v26  ;;  %v9987_v22 = vld [vmem:[#allocation160_spill] sm:$0xff]  ;;  %v9988_v44 = vld [vmem:[#allocation161_spill] sm:$0xff] }
 0x28e   :  { %v3531_v13 = vpop.f32.mrf.mxu0 }
 0x28f   :  { %9981 = vst [vmem:[#allocation121_spill] sm:$0xff] %v9004_v53  ;;  %v3754_v55 = vpop.f32.mrf.mxu1  ;;  %v9007_v61 = vadd.f32 %v3752_v57, %v3530_v58  ;;  %v3532_v48 = vadd.f32 %v3531_v13, %v8745_v34  ;;  %v9989_v58 = vld [vmem:[#allocation162_spill] sm:$0xff] }
 0x290   :  { %v9010_v9 = vpop.f32.mrf.mxu0 }
 0x291   :  { %9982 = vst [vmem:[#allocation124_spill] sm:$0xff] %v9007_v61  ;;  %9983 = vst [vmem:[#allocation125_spill] sm:$0xff] %v9010_v9  ;;  %v9012_v35 = vpop.f32.mrf.mxu1  ;;  %v9014_v12 = vadd.f32 %v3754_v55, %v3532_v48  ;;  %v9993_v9 = vld [vmem:[#allocation163_spill] sm:$0xff] }
 0x292   :  { %9984 = vst [vmem:[#allocation25_spill] sm:$0xff] %v9012_v35  ;;  %v3537_v31 = vpop.f32.mrf.mxu0  ;;  %4032 = vmatmul.mubr.bf16.gmra.mxu0 %v9986_v19 }
 0x293   :  { %9985 = vst [vmem:[#allocation26_spill] sm:$0xff] %v9014_v12  ;;  %v3760_v5 = vpop.f32.mrf.mxu1  ;;  %4255 = vmatmul.mubr.bf16.gmra.mxu1 %v9987_v22  ;;  %v3538_v45 = vadd.f32 %v3537_v31, %v8745_v34  ;;  %4041 = vmatprep.mubr.bf16.mxu0 %v9988_v44 }
 0x294   :  { %4264 = vmatprep.mubr.bf16.mxu1 %v9989_v58  ;;  %v3539_v57 = vpop.f32.mrf.mxu0 }
 0x295   :  { %v3762_v13 = vpop.f32.mrf.mxu1  ;;  %v9021_v61 = vadd.f32 %v3760_v5, %v3538_v45  ;;  %v3540_v35 = vadd.f32 %v3539_v57, %v8756_v26  ;;  %v9994_v5 = vld [vmem:[#allocation164_spill] sm:$0xff] }
 0x296   :  { %v3541_v55 = vpop.f32.mrf.mxu0 }
 0x297   :  { %v3764_v48 = vpop.f32.mrf.mxu1  ;;  %v9024_v12 = vadd.f32 %v3762_v13, %v3540_v35  ;;  %v3542_v19 = vadd.f32 %v3541_v55, %v8745_v34 }
 0x298   :  { %v9027_v53 = vpop.f32.mrf.mxu0 }
 0x299   :  { %9990 = vst [vmem:[#allocation126_spill] sm:$0xff] %v9024_v12  ;;  %v9029_v22 = vpop.f32.mrf.mxu1  ;;  %v9031_v31 = vadd.f32 %v3764_v48, %v3542_v19 }
 0x29a   :  { %9991 = vst [vmem:[#allocation27_spill] sm:$0xff] %v9029_v22  ;;  %v3547_v44 = vpop.f32.mrf.mxu0  ;;  %4042 = vmatmul.mubr.bf16.gmra.mxu0 %v9993_v9 }
 0x29b   :  { %9992 = vst [vmem:[#allocation28_spill] sm:$0xff] %v9031_v31  ;;  %v3770_v58 = vpop.f32.mrf.mxu1  ;;  %4265 = vmatmul.mubr.bf16.gmra.mxu1 %v9994_v5  ;;  %v3548_v45 = vadd.f32 %v3547_v44, %v8745_v34  ;;  %4931 = vmatprep.mubr.bf16.mxu0 %v8392_v30 }
 0x29c   :  { %v3549_v35 = vpop.f32.mrf.mxu0 }
 0x29d   :  { %v3772_v57 = vpop.f32.mrf.mxu1  ;;  %v9037_v13 = vadd.f32 %v3770_v58, %v3548_v45  ;;  %v3550_v55 = vadd.f32 %v3549_v35, %v8756_v26 }
 0x29e   :  { %v3551_v12 = vpop.f32.mrf.mxu0 }
 0x29f   :  { %9995 = vst [vmem:[#allocation129_spill] sm:$0xff] %v9037_v13  ;;  %v3774_v22 = vpop.f32.mrf.mxu1  ;;  %v9040_v48 = vadd.f32 %v3772_v57, %v3550_v55  ;;  %v3552_v19 = vadd.f32 %v3551_v12, %v8745_v34 }
 0x2a0   :  { %v9043_v31 = vpop.f32.mrf.mxu0 }
 0x2a1   :  { %9996 = vst [vmem:[#allocation132_spill] sm:$0xff] %v9040_v48  ;;  %v9045_v9 = vpop.f32.mrf.mxu1  ;;  %v9047_v5 = vadd.f32 %v3774_v22, %v3552_v19 }
 0x2a2   :  { %v3557_v44 = vpop.f32.mrf.mxu0  ;;  %4932 = vmatmul.mubr.bf16.vlgmr.msra.gmra.mxu0 %v8382_v39 }
 0x2a3   :  { %9997 = vst [vmem:[#allocation133_spill] sm:$0xff] %v9047_v5  ;;  %v3780_v30 = vpop.f32.mrf.mxu1  ;;  %v3558_v58 = vadd.f32 %v3557_v44, %v8745_v34  ;;  %4941 = vmatprep.mubr.bf16.mxu0 %v8422_v0 }
 0x2a4   :  { %v3559_v45 = vpop.f32.mrf.mxu0 }
 0x2a5   :  { %v3782_v35 = vpop.f32.mrf.mxu1  ;;  %v9052_v57 = vadd.f32 %v3780_v30, %v3558_v58  ;;  %v3560_v12 = vadd.f32 %v3559_v45, %v8756_v26 }
 0x2a6   :  { %v3561_v55 = vpop.f32.mrf.mxu0 }
 0x2a7   :  { %9998 = vst [vmem:[#allocation29_spill] sm:$0xff] %v9052_v57  ;;  %v3784_v48 = vpop.f32.mrf.mxu1  ;;  %v9055_v13 = vadd.f32 %v3782_v35, %v3560_v12  ;;  %v3562_v22 = vadd.f32 %v3561_v55, %v8745_v34 }
 0x2a8   :  { %v9058_v19 = vpop.f32.mrf.mxu0 }
 0x2a9   :  { %9999 = vst [vmem:[#allocation30_spill] sm:$0xff] %v9055_v13  ;;  %10000 = vst [vmem:[#allocation134_spill] sm:$0xff] %v9058_v19  ;;  %v9060_v5 = vpop.f32.mrf.mxu1  ;;  %v9062_v39 = vadd.f32 %v3784_v48, %v3562_v22 }
 0x2aa   :  { %10001 = vst [vmem:[#allocation31_spill] sm:$0xff] %v9060_v5  ;;  %v3567_v44 = vpop.f32.mrf.mxu0  ;;  %4942 = vmatmul.mubr.bf16.gmra.mxu0 %v8418_v41 }
 0x2ab   :  { %10002 = vst [vmem:[#allocation32_spill] sm:$0xff] %v9062_v39  ;;  %v3790_v0 = vpop.f32.mrf.mxu1  ;;  %v3568_v30 = vadd.f32 %v3567_v44, %v8745_v34  ;;  %4951 = vmatprep.mubr.bf16.mxu0 %v8434_v32 }
 0x2ac   :  { %v3569_v58 = vpop.f32.mrf.mxu0 }
 0x2ad   :  { %v3792_v45 = vpop.f32.mrf.mxu1  ;;  %v9067_v35 = vadd.f32 %v3790_v0, %v3568_v30  ;;  %v3570_v12 = vadd.f32 %v3569_v58, %v8756_v26 }
 0x2ae   :  { %v3571_v55 = vpop.f32.mrf.mxu0 }
 0x2af   :  { %10003 = vst [vmem:[#allocation137_spill] sm:$0xff] %v9067_v35  ;;  %v3794_v13 = vpop.f32.mrf.mxu1  ;;  %v9070_v57 = vadd.f32 %v3792_v45, %v3570_v12  ;;  %v3572_v48 = vadd.f32 %v3571_v55, %v8745_v34 }
 0x2b0   :  { %v9073_v22 = vpop.f32.mrf.mxu0 }
 0x2b1   :  { %10004 = vst [vmem:[#allocation140_spill] sm:$0xff] %v9070_v57  ;;  %10005 = vst [vmem:[#allocation141_spill] sm:$0xff] %v9073_v22  ;;  %v9075_v39 = vpop.f32.mrf.mxu1  ;;  %v9077_v41 = vadd.f32 %v3794_v13, %v3572_v48 }
 0x2b2   :  { %10006 = vst [vmem:[#allocation33_spill] sm:$0xff] %v9075_v39  ;;  %v3577_v44 = vpop.f32.mrf.mxu0  ;;  %4952 = vmatmul.mubr.bf16.gmra.mxu0 %v8430_v40  ;;  %v10013_v39 = vld [vmem:[#allocation86_spill] sm:$0xff] }
 0x2b3   :  { %10007 = vst [vmem:[#allocation34_spill] sm:$0xff] %v9077_v41  ;;  %v3800_v32 = vpop.f32.mrf.mxu1  ;;  %v3578_v0 = vadd.f32 %v3577_v44, %v8745_v34  ;;  %4961 = vmatprep.mubr.bf16.mxu0 %v8446_v1 }
 0x2b4   :  { %v3579_v30 = vpop.f32.mrf.mxu0 }
 0x2b5   :  { %v3802_v58 = vpop.f32.mrf.mxu1  ;;  %v9082_v45 = vadd.f32 %v3800_v32, %v3578_v0  ;;  %v3580_v12 = vadd.f32 %v3579_v30, %v8756_v26  ;;  %v10014_v0 = vld [vmem:[#allocation5_spill] sm:$0xff] }
 0x2b6   :  { %v3581_v55 = vpop.f32.mrf.mxu0 }
 0x2b7   :  { %10008 = vst [vmem:[#allocation142_spill] sm:$0xff] %v9082_v45  ;;  %v3804_v57 = vpop.f32.mrf.mxu1  ;;  %v9085_v35 = vadd.f32 %v3802_v58, %v3580_v12  ;;  %v3582_v13 = vadd.f32 %v3581_v55, %v8745_v34 }
 0x2b8   :  { %v9088_v48 = vpop.f32.mrf.mxu0 }
 0x2b9   :  { %10009 = vst [vmem:[#allocation35_spill] sm:$0xff] %v9085_v35  ;;  %10010 = vst [vmem:[#allocation36_spill] sm:$0xff] %v9088_v48  ;;  %v9090_v41 = vpop.f32.mrf.mxu1  ;;  %v9092_v40 = vadd.f32 %v3804_v57, %v3582_v13 }
 0x2ba   :  { %10011 = vst [vmem:[#allocation145_spill] sm:$0xff] %v9090_v41  ;;  %v3587_v44 = vpop.f32.mrf.mxu0  ;;  %4962 = vmatmul.mubr.bf16.gmra.mxu0 %v10013_v39  ;;  %v10020_v41 = vld [vmem:[#allocation87_spill] sm:$0xff] }
 0x2bb   :  { %10012 = vst [vmem:[#allocation148_spill] sm:$0xff] %v9092_v40  ;;  %v3810_v1 = vpop.f32.mrf.mxu1  ;;  %v3588_v32 = vadd.f32 %v3587_v44, %v8745_v34  ;;  %4971 = vmatprep.mubr.bf16.mxu0 %v10014_v0 }
 0x2bc   :  { %v3589_v30 = vpop.f32.mrf.mxu0 }
 0x2bd   :  { %v3812_v45 = vpop.f32.mrf.mxu1  ;;  %v9097_v58 = vadd.f32 %v3810_v1, %v3588_v32  ;;  %v3590_v12 = vadd.f32 %v3589_v30, %v8756_v26  ;;  %v10021_v32 = vld [vmem:[#allocation88_spill] sm:$0xff] }
 0x2be   :  { %v3591_v55 = vpop.f32.mrf.mxu0 }
 0x2bf   :  { %10015 = vst [vmem:[#allocation149_spill] sm:$0xff] %v9097_v58  ;;  %v3814_v35 = vpop.f32.mrf.mxu1  ;;  %v9100_v48 = vadd.f32 %v3812_v45, %v3590_v12  ;;  %v3592_v57 = vadd.f32 %v3591_v55, %v8745_v34 }
 0x2c0   :  { %v9103_v13 = vpop.f32.mrf.mxu0 }
 0x2c1   :  { %10016 = vst [vmem:[#allocation37_spill] sm:$0xff] %v9100_v48  ;;  %10017 = vst [vmem:[#allocation38_spill] sm:$0xff] %v9103_v13  ;;  %v9105_v40 = vpop.f32.mrf.mxu1  ;;  %v9107_v39 = vadd.f32 %v3814_v35, %v3592_v57 }
 0x2c2   :  { %10018 = vst [vmem:[#allocation150_spill] sm:$0xff] %v9105_v40  ;;  %v3597_v44 = vpop.f32.mrf.mxu0  ;;  %4972 = vmatmul.mubr.bf16.gmra.mxu0 %v10020_v41  ;;  %v10027_v40 = vld [vmem:[#allocation6_spill] sm:$0xff] }
 0x2c3   :  { %10019 = vst [vmem:[#allocation39_spill] sm:$0xff] %v9107_v39  ;;  %v3820_v0 = vpop.f32.mrf.mxu1  ;;  %v3598_v1 = vadd.f32 %v3597_v44, %v8745_v34  ;;  %4981 = vmatprep.mubr.bf16.mxu0 %v10021_v32 }
 0x2c4   :  { %v3599_v30 = vpop.f32.mrf.mxu0 }
 0x2c5   :  { %v3822_v58 = vpop.f32.mrf.mxu1  ;;  %v9112_v45 = vadd.f32 %v3820_v0, %v3598_v1  ;;  %v3600_v12 = vadd.f32 %v3599_v30, %v8756_v26  ;;  %v10028_v1 = vld [vmem:[#allocation8_spill] sm:$0xff] }
 0x2c6   :  { %v3601_v55 = vpop.f32.mrf.mxu0 }
 0x2c7   :  { %10022 = vst [vmem:[#allocation40_spill] sm:$0xff] %v9112_v45  ;;  %v3824_v48 = vpop.f32.mrf.mxu1  ;;  %v9115_v13 = vadd.f32 %v3822_v58, %v3600_v12  ;;  %v3602_v35 = vadd.f32 %v3601_v55, %v8745_v34 }
 0x2c8   :  { %v9118_v57 = vpop.f32.mrf.mxu0 }
 0x2c9   :  { %10023 = vst [vmem:[#allocation153_spill] sm:$0xff] %v9115_v13  ;;  %10024 = vst [vmem:[#allocation156_spill] sm:$0xff] %v9118_v57  ;;  %v9120_v39 = vpop.f32.mrf.mxu1  ;;  %v9122_v41 = vadd.f32 %v3824_v48, %v3602_v35 }
 0x2ca   :  { %10025 = vst [vmem:[#allocation157_spill] sm:$0xff] %v9120_v39  ;;  %v3863_v44 = vpop.f32.mrf.mxu0  ;;  %4982 = vmatmul.mubr.bf16.gmra.mxu0 %v10027_v40 }
 0x2cb   :  { %10026 = vst [vmem:[#allocation41_spill] sm:$0xff] %v9122_v41  ;;  %v4086_v32 = vpop.f32.mrf.mxu1  ;;  %v3864_v0 = vadd.f32 %v3863_v44, %v8777_v43  ;;  %4991 = vmatprep.mubr.bf16.mxu0 %v10028_v1  ;;  %v10029_v43 = vld [vmem:[#allocation7_spill] sm:$0xff] }
 0x2cc   :  { %v3865_v30 = vpop.f32.mrf.mxu0 }
 0x2cd   :  { %v4088_v45 = vpop.f32.mrf.mxu1  ;;  %v3866_v58 = vadd.f32 %v3865_v30, %v8783_v24  ;;  %v4087_v55 = vadd.f32 %v4086_v32, %v3864_v0  ;;  %v10030_v30 = vld [vmem:[#allocation9_spill] sm:$0xff] }
 0x2ce   :  { %v3867_v12 = vpop.f32.mrf.mxu0 }
 0x2cf   :  { %v4090_v34 = vpop.f32.mrf.mxu1  ;;  %v3868_v13 = vadd.f32 %v3867_v12, %v8797_v50  ;;  %v4089_v35 = vadd.f32 %v4088_v45, %v3866_v58  ;;  %v4277_v44 = vmax.f32 %v4087_v55, 0.0 }
 0x2d0   :  { %v3869_v39 = vpop.f32.mrf.mxu0 }
 0x2d1   :  { %v4092_v48 = vpop.f32.mrf.mxu1  ;;  %v4091_v41 = vadd.f32 %v4090_v34, %v3868_v13  ;;  %v3870_v57 = vadd.f32 %v3869_v39, %v8805_v8  ;;  %v4278_v50 = vmax.f32 %v4089_v35, 0.0  ;;  %v10031_v35 = vld [vmem:[#allocation93_spill] sm:$0xff] }
 0x2d2   :  { %v3873_v40 = vpop.f32.mrf.mxu0  ;;  %4992 = vmatmul.mubr.bf16.gmra.mxu0 %v10029_v43 }
 0x2d3   :  { %v4096_v22 = vpop.f32.mrf.mxu1  ;;  %v4281_v1 = vmax.f32 %v4091_v41, 0.0  ;;  %v4093_v5 = vadd.f32 %v4092_v48, %v3870_v57  ;;  %v3874_v24 = vadd.f32 %v3873_v40, %v8813_v20  ;;  %5001 = vmatprep.mubr.bf16.mxu0 %v10030_v30 }
 0x2d4   :  { %v3875_v32 = vpop.f32.mrf.mxu0 }
 0x2d5   :  { %v4098_v0 = vpop.f32.mrf.mxu1  ;;  %v4429_v12 = vpack.c.bf16 %v4281_v1, %v4277_v44  ;;  %v4282_v19 = vmax.f32 %v4093_v5, 0.0  ;;  %v3876_v13 = vadd.f32 %v3875_v32, %v8819_v3  ;;  %v4097_v39 = vadd.f32 %v4096_v22, %v3874_v24  ;;  %v10032_v1 = vld [vmem:[#allocation94_spill] sm:$0xff] }
 0x2d6   :  { %v3877_v45 = vpop.f32.mrf.mxu0 }
 0x2d7   :  { %v4100_v8 = vpop.f32.mrf.mxu1  ;;  %v3878_v58 = vadd.f32 %v3877_v45, %v8825_v63  ;;  %v4430_v34 = vpack.c.bf16 %v4282_v19, %v4278_v50  ;;  %v4099_v57 = vadd.f32 %v4098_v0, %v3876_v13  ;;  %v4285_v5 = vmax.f32 %v4097_v39, 0.0 }
 0x2d8   :  { %v3879_v55 = vpop.f32.mrf.mxu0 }
 0x2d9   :  { %v4102_v41 = vpop.f32.mrf.mxu1  ;;  %v4101_v48 = vadd.f32 %v4100_v8, %v3878_v58  ;;  %v3880_v20 = vadd.f32 %v3879_v55, %v8839_v42  ;;  %5154 = vmatprep.mubr.bf16.mxu1 %v4430_v34  ;;  %v4286_v24 = vmax.f32 %v4099_v57, 0.0  ;;  %v10033_v57 = vld [vmem:[#allocation10_spill] sm:$0xff] }
 0x2da   :  { %v3883_v40 = vpop.f32.mrf.mxu0  ;;  %5002 = vmatmul.mubr.bf16.gmra.mxu0 %v10031_v35  ;;  %5155 = vmatmul.mubr.bf16.vlgmr.msra.gmra.mxu1 %v4429_v12 }
 0x2db   :  { %v4106_v43 = vpop.f32.mrf.mxu1  ;;  %v4289_v3 = vmax.f32 %v4101_v48, 0.0  ;;  %v4103_v44 = vadd.f32 %v4102_v41, %v3880_v20  ;;  %v3884_v22 = vadd.f32 %v3883_v40, %v8847_v18  ;;  %5011 = vmatprep.mubr.bf16.mxu0 %v10032_v1 }
 0x2dc   :  { %v3885_v63 = vpop.f32.mrf.mxu0 }
 0x2dd   :  { %v4108_v19 = vpop.f32.mrf.mxu1  ;;  %v4433_v30 = vpack.c.bf16 %v4289_v3, %v4285_v5  ;;  %v4290_v32 = vmax.f32 %v4103_v44, 0.0  ;;  %v3886_v42 = vadd.f32 %v3885_v63, %v8850_v2  ;;  %v4107_v13 = vadd.f32 %v4106_v43, %v3884_v22 }
 0x2de   :  { %v3887_v0 = vpop.f32.mrf.mxu0 }
 0x2df   :  { %v4110_v50 = vpop.f32.mrf.mxu1  ;;  %v3888_v45 = vadd.f32 %v3887_v0, %v8853_v36  ;;  %v4434_v12 = vpack.c.bf16 %v4290_v32, %v4286_v24  ;;  %v4109_v58 = vadd.f32 %v4108_v19, %v3886_v42  ;;  %v4293_v48 = vmax.f32 %v4107_v13, 0.0 }
 0x2e0   :  { %v3889_v8 = vpop.f32.mrf.mxu0 }
 0x2e1   :  { %v4112_v39 = vpop.f32.mrf.mxu1  ;;  %v4111_v34 = vadd.f32 %v4110_v50, %v3888_v45  ;;  %v3890_v18 = vadd.f32 %v3889_v8, %v8864_v46  ;;  %5164 = vmatprep.mubr.bf16.mxu1 %v4434_v12  ;;  %v4294_v35 = vmax.f32 %v4109_v58, 0.0 }
 0x2e2   :  { %v3893_v55 = vpop.f32.mrf.mxu0  ;;  %5012 = vmatmul.mubr.bf16.gmra.mxu0 %v10033_v57  ;;  %5165 = vmatmul.mubr.bf16.gmra.mxu1 %v4433_v30 }
 0x2e3   :  { %v4116_v41 = vpop.f32.mrf.mxu1  ;;  %v4297_v2 = vmax.f32 %v4111_v34, 0.0  ;;  %v4113_v20 = vadd.f32 %v4112_v39, %v3890_v18  ;;  %v3894_v40 = vadd.f32 %v3893_v55, %v8869_v16  ;;  %5021 = vmatprep.mubr.bf16.mxu0 %v8524_v23 }
 0x2e4   :  { %v3895_v36 = vpop.f32.mrf.mxu0 }
 0x2e5   :  { %v4118_v43 = vpop.f32.mrf.mxu1  ;;  %v4437_v5 = vpack.c.bf16 %v4297_v2, %v4293_v48  ;;  %v4298_v3 = vmax.f32 %v4113_v20, 0.0  ;;  %v3896_v46 = vadd.f32 %v3895_v36, %v8872_v25  ;;  %v4117_v1 = vadd.f32 %v4116_v41, %v3894_v40 }
 0x2e6   :  { %v3897_v44 = vpop.f32.mrf.mxu0 }
 0x2e7   :  { %v4120_v22 = vpop.f32.mrf.mxu1  ;;  %v3898_v63 = vadd.f32 %v3897_v44, %v8875_v14  ;;  %v4438_v19 = vpack.c.bf16 %v4298_v3, %v4294_v35  ;;  %v4119_v32 = vadd.f32 %v4118_v43, %v3896_v46  ;;  %v4301_v50 = vmax.f32 %v4117_v1, 0.0 }
 0x2e8   :  { %v3899_v24 = vpop.f32.mrf.mxu0 }
 0x2e9   :  { %v4122_v30 = vpop.f32.mrf.mxu1  ;;  %v4121_v42 = vadd.f32 %v4120_v22, %v3898_v63  ;;  %v3900_v16 = vadd.f32 %v3899_v24, %v8880_v29  ;;  %5174 = vmatprep.mubr.bf16.mxu1 %v4438_v19  ;;  %v4302_v8 = vmax.f32 %v4119_v32, 0.0 }
 0x2ea   :  { %v3903_v23 = vpop.f32.mrf.mxu0  ;;  %5022 = vmatmul.mubr.bf16.gmra.mxu0 %v8520_v15  ;;  %5175 = vmatmul.mubr.bf16.gmra.mxu1 %v4437_v5 }
 0x2eb   :  { %v4126_v0 = vpop.f32.mrf.mxu1  ;;  %v4305_v25 = vmax.f32 %v4121_v42, 0.0  ;;  %v4123_v13 = vadd.f32 %v4122_v30, %v3900_v16  ;;  %v3904_v45 = vadd.f32 %v3903_v23, %v8885_v37  ;;  %5031 = vmatprep.mubr.bf16.mxu0 %v8536_v7 }
 0x2ec   :  { %v3905_v14 = vpop.f32.mrf.mxu0 }
 0x2ed   :  { %v4128_v12 = vpop.f32.mrf.mxu1  ;;  %v4441_v39 = vpack.c.bf16 %v4305_v25, %v4301_v50  ;;  %v4306_v58 = vmax.f32 %v4123_v13, 0.0  ;;  %v3906_v29 = vadd.f32 %v3905_v14, %v8894_v62  ;;  %v4127_v55 = vadd.f32 %v4126_v0, %v3904_v45 }
 0x2ee   :  { %v3907_v34 = vpop.f32.mrf.mxu0 }
 0x2ef   :  { %v4130_v18 = vpop.f32.mrf.mxu1  ;;  %v3908_v15 = vadd.f32 %v3907_v34, %v8897_v11  ;;  %v4442_v41 = vpack.c.bf16 %v4306_v58, %v4302_v8  ;;  %v4129_v2 = vadd.f32 %v4128_v12, %v3906_v29  ;;  %v4309_v36 = vmax.f32 %v4127_v55, 0.0 }
 0x2f0   :  { %v3909_v57 = vpop.f32.mrf.mxu0 }
 0x2f1   :  { %v4132_v48 = vpop.f32.mrf.mxu1  ;;  %v4131_v20 = vadd.f32 %v4130_v18, %v3908_v15  ;;  %v3910_v37 = vadd.f32 %v3909_v57, %v8902_v10  ;;  %5184 = vmatprep.mubr.bf16.mxu1 %v4442_v41  ;;  %v4310_v3 = vmax.f32 %v4129_v2, 0.0 }
 0x2f2   :  { %v3913_v7 = vpop.f32.mrf.mxu0  ;;  %5032 = vmatmul.mubr.bf16.gmra.mxu0 %v8532_v33  ;;  %5185 = vmatmul.mubr.bf16.gmra.mxu1 %v4441_v39 }
 0x2f3   :  { %v4136_v40 = vpop.f32.mrf.mxu1  ;;  %v4313_v62 = vmax.f32 %v4131_v20, 0.0  ;;  %v4133_v43 = vadd.f32 %v4132_v48, %v3910_v37  ;;  %v3914_v35 = vadd.f32 %v3913_v7, %v8907_v52  ;;  %5041 = vmatprep.mubr.bf16.mxu0 %v8548_v17 }
 0x2f4   :  { %v3915_v11 = vpop.f32.mrf.mxu0 }
 0x2f5   :  { %v4138_v5 = vpop.f32.mrf.mxu1  ;;  %v4445_v46 = vpack.c.bf16 %v4313_v62, %v4309_v36  ;;  %v4314_v44 = vmax.f32 %v4133_v43, 0.0  ;;  %v3916_v10 = vadd.f32 %v3915_v11, %v8910_v28  ;;  %v4137_v63 = vadd.f32 %v4136_v40, %v3914_v35  ;;  %v10034_v40 = vld [vmem:[#allocation108_spill] sm:$0xff]  ;;  %v10035_v35 = vld [vmem:[#allocation109_spill] sm:$0xff] }
 0x2f6   :  { %v3917_v22 = vpop.f32.mrf.mxu0 }
 0x2f7   :  { %v4140_v1 = vpop.f32.mrf.mxu1  ;;  %v3918_v33 = vadd.f32 %v3917_v22, %v8913_v6  ;;  %v4446_v19 = vpack.c.bf16 %v4314_v44, %v4310_v3  ;;  %v4139_v32 = vadd.f32 %v4138_v5, %v3916_v10  ;;  %v4317_v23 = vmax.f32 %v4137_v63, 0.0 }
 0x2f8   :  { %v3919_v24 = vpop.f32.mrf.mxu0 }
 0x2f9   :  { %v4142_v30 = vpop.f32.mrf.mxu1  ;;  %v4141_v42 = vadd.f32 %v4140_v1, %v3918_v33  ;;  %v3920_v52 = vadd.f32 %v3919_v24, %v8918_v47  ;;  %5194 = vmatprep.mubr.bf16.mxu1 %v4446_v19  ;;  %v4318_v13 = vmax.f32 %v4139_v32, 0.0  ;;  %v10037_v1 = vld [vmem:[#allocation11_spill] sm:$0xff]  ;;  %v10038_v24 = vld [vmem:[#allocation18_spill] sm:$0xff]  ;;  %v10039_v32 = vld [vmem:[#allocation97_spill] sm:$0xff] }
 0x2fa   :  { %v3923_v17 = vpop.f32.mrf.mxu0  ;;  %5042 = vmatmul.mubr.bf16.gmra.mxu0 %v8544_v59  ;;  %5195 = vmatmul.mubr.bf16.gmra.mxu1 %v4445_v46 }
 0x2fb   :  { %v4146_v16 = vpop.f32.mrf.mxu1  ;;  %v4321_v28 = vmax.f32 %v4141_v42, 0.0  ;;  %v4143_v0 = vadd.f32 %v4142_v30, %v3920_v52  ;;  %v3924_v50 = vadd.f32 %v3923_v17, %v8923_v27  ;;  %5051 = vmatprep.mubr.bf16.mxu0 %v8560_v49 }
 0x2fc   :  { %v3925_v6 = vpop.f32.mrf.mxu0 }
 0x2fd   :  { %v4148_v25 = vpop.f32.mrf.mxu1  ;;  %v4449_v45 = vpack.c.bf16 %v4321_v28, %v4317_v23  ;;  %v4322_v14 = vmax.f32 %v4143_v0, 0.0  ;;  %v3926_v47 = vadd.f32 %v3925_v6, %v8926_v4  ;;  %v4147_v39 = vadd.f32 %v4146_v16, %v3924_v50  ;;  %v10040_v28 = vld [vmem:[#allocation110_spill] sm:$0xff] }
 0x2fe   :  { %v3927_v12 = vpop.f32.mrf.mxu0 }
 0x2ff   :  { %v4150_v8 = vpop.f32.mrf.mxu1  ;;  %v3928_v59 = vadd.f32 %v3927_v12, %v8929_v54  ;;  %v4450_v58 = vpack.c.bf16 %v4322_v14, %v4318_v13  ;;  %v4149_v18 = vadd.f32 %v4148_v25, %v3926_v47  ;;  %v4325_v41 = vmax.f32 %v4147_v39, 0.0  ;;  %v10041_v13 = vld [vmem:[#allocation19_spill] sm:$0xff] }
 0x300   :  { %v3929_v29 = vpop.f32.mrf.mxu0 }
 0x301   :  { %v4152_v34 = vpop.f32.mrf.mxu1  ;;  %v4151_v55 = vadd.f32 %v4150_v8, %v3928_v59  ;;  %v3930_v27 = vadd.f32 %v3929_v29, %v8934_v56  ;;  %5204 = vmatprep.mubr.bf16.mxu1 %v4450_v58  ;;  %v4326_v20 = vmax.f32 %v4149_v18, 0.0  ;;  %v10042_v59 = vld [vmem:[#allocation20_spill] sm:$0xff] }
 0x302   :  { %v3933_v49 = vpop.f32.mrf.mxu0  ;;  %5052 = vmatmul.mubr.bf16.gmra.mxu0 %v8556_v38  ;;  %5205 = vmatmul.mubr.bf16.gmra.mxu1 %v4449_v45  ;;  %v10043_v18 = vld [vmem:[#allocation12_spill] sm:$0xff] }
 0x303   :  { %v4156_v15 = vpop.f32.mrf.mxu1  ;;  %v4329_v4 = vmax.f32 %v4151_v55, 0.0  ;;  %v4153_v57 = vadd.f32 %v4152_v34, %v3930_v27  ;;  %v3934_v48 = vadd.f32 %v3933_v49, %v8939_v51  ;;  %5061 = vmatprep.mubr.bf16.mxu0 %v8596_v21  ;;  %v10036_v51 = vld [vmem:[#allocation17_spill] sm:$0xff] }
 0x304   :  { %v3935_v54 = vpop.f32.mrf.mxu0 }
 0x305   :  { %v4158_v2 = vpop.f32.mrf.mxu1  ;;  %v4453_v37 = vpack.c.bf16 %v4329_v4, %v4325_v41  ;;  %v4330_v7 = vmax.f32 %v4153_v57, 0.0  ;;  %v3936_v56 = vadd.f32 %v3935_v54, %v10034_v40  ;;  %v4157_v43 = vadd.f32 %v4156_v15, %v3934_v48  ;;  %v10044_v15 = vld [vmem:[#allocation113_spill] sm:$0xff] }
 0x306   :  { %v3937_v36 = vpop.f32.mrf.mxu0  ;;  %v10045_v4 = vld [vmem:[#allocation101_spill] sm:$0xff] }
 0x307   :  { %v4160_v62 = vpop.f32.mrf.mxu1  ;;  %v3938_v38 = vadd.f32 %v3937_v36, %v10035_v35  ;;  %v4454_v11 = vpack.c.bf16 %v4330_v7, %v4326_v20  ;;  %v4159_v46 = vadd.f32 %v4158_v2, %v3936_v56  ;;  %v4333_v63 = vmax.f32 %v4157_v43, 0.0 }
 0x308   :  { %v3939_v5 = vpop.f32.mrf.mxu0 }
 0x309   :  { %v4162_v3 = vpop.f32.mrf.mxu1  ;;  %v4161_v44 = vadd.f32 %v4160_v62, %v3938_v38  ;;  %v3940_v10 = vadd.f32 %v3939_v5, %v10036_v51  ;;  %5214 = vmatprep.mubr.bf16.mxu1 %v4454_v11  ;;  %v4334_v17 = vmax.f32 %v4159_v46, 0.0  ;;  %v10047_v62 = vld [vmem:[#allocation117_spill] sm:$0xff] }
 0x30a   :  { %v3943_v21 = vpop.f32.mrf.mxu0  ;;  %5062 = vmatmul.mubr.bf16.gmra.mxu0 %v10037_v1  ;;  %5215 = vmatmul.mubr.bf16.gmra.mxu1 %v4453_v37  ;;  %v10046_v37 = vld [vmem:[#allocation116_spill] sm:$0xff] }
 0x30b   :  { %v4166_v22 = vpop.f32.mrf.mxu1  ;;  %v4337_v33 = vmax.f32 %v4161_v44, 0.0  ;;  %v4163_v19 = vadd.f32 %v4162_v3, %v3940_v10  ;;  %v3944_v30 = vadd.f32 %v3943_v21, %v10038_v24  ;;  %5071 = vmatprep.mubr.bf16.mxu0 %v10039_v32  ;;  %v10048_v44 = vld [vmem:[#allocation118_spill] sm:$0xff] }
 0x30c   :  { %v3945_v42 = vpop.f32.mrf.mxu0  ;;  %v3524_v51 = vadd.f32 %v10048_v44, %v8756_v26 }
 0x30d   :  { %v4168_v52 = vpop.f32.mrf.mxu1  ;;  %v4457_v16 = vpack.c.bf16 %v4337_v33, %v4333_v63  ;;  %v4338_v23 = vmax.f32 %v4163_v19, 0.0  ;;  %v3946_v0 = vadd.f32 %v3945_v42, %v10040_v28  ;;  %v4167_v25 = vadd.f32 %v4166_v22, %v3944_v30  ;;  %v10049_v22 = vld [vmem:[#allocation100_spill] sm:$0xff]  ;;  %v10050_v19 = vld [vmem:[#allocation21_spill] sm:$0xff]  ;;  %v10051_v30 = vld [vmem:[#allocation14_spill] sm:$0xff] }
 0x30e   :  { %v3947_v50 = vpop.f32.mrf.mxu0 }
 0x30f   :  { %v4170_v6 = vpop.f32.mrf.mxu1  ;;  %v3948_v45 = vadd.f32 %v3947_v50, %v10041_v13  ;;  %v4458_v14 = vpack.c.bf16 %v4338_v23, %v4334_v17  ;;  %v4169_v8 = vadd.f32 %v4168_v52, %v3946_v0  ;;  %v4341_v55 = vmax.f32 %v4167_v25, 0.0  ;;  %v10053_v50 = vld [vmem:[#allocation23_spill] sm:$0xff]  ;;  %v10054_v13 = vld [vmem:[#allocation24_spill] sm:$0xff] }
 0x310   :  { %v3949_v47 = vpop.f32.mrf.mxu0 }
 0x311   :  { %v4172_v12 = vpop.f32.mrf.mxu1  ;;  %v4171_v39 = vadd.f32 %v4170_v6, %v3948_v45  ;;  %v3950_v58 = vadd.f32 %v3949_v47, %v10042_v59  ;;  %5224 = vmatprep.mubr.bf16.mxu1 %v4458_v14  ;;  %v4342_v54 = vmax.f32 %v4169_v8, 0.0  ;;  %v3747_v6 = vadd.f32 %v10053_v50, %v3524_v51  ;;  %v10065_v50 = vld [vmem:[#allocation27_spill] sm:$0xff] }
 0x312   :  { %v3953_v29 = vpop.f32.mrf.mxu0  ;;  %5072 = vmatmul.mubr.bf16.gmra.mxu0 %v10043_v18  ;;  %5225 = vmatmul.mubr.bf16.gmra.mxu1 %v4457_v16  ;;  %v10052_v16 = vld [vmem:[#allocation22_spill] sm:$0xff] }
 0x313   :  { %v4176_v34 = vpop.f32.mrf.mxu1  ;;  %v4345_v27 = vmax.f32 %v4171_v39, 0.0  ;;  %v4173_v49 = vadd.f32 %v4172_v12, %v3950_v58  ;;  %v3954_v41 = vadd.f32 %v3953_v29, %v10044_v15  ;;  %5081 = vmatprep.mubr.bf16.mxu0 %v10045_v4  ;;  %v10055_v58 = vld [vmem:[#allocation125_spill] sm:$0xff] }
 0x314   :  { %v3955_v57 = vpop.f32.mrf.mxu0  ;;  %v3534_v29 = vadd.f32 %v10055_v58, %v8756_v26 }
 0x315   :  { %v4178_v48 = vpop.f32.mrf.mxu1  ;;  %v4461_v2 = vpack.c.bf16 %v4345_v27, %v4341_v55  ;;  %v4346_v20 = vmax.f32 %v4173_v49, 0.0  ;;  %v3956_v7 = vadd.f32 %v3955_v57, %v10046_v37  ;;  %v4177_v36 = vadd.f32 %v4176_v34, %v3954_v41  ;;  %v10056_v55 = vld [vmem:[#allocation13_spill] sm:$0xff]  ;;  %v10058_v57 = vld [vmem:[#allocation15_spill] sm:$0xff] }
 0x316   :  { %v3957_v40 = vpop.f32.mrf.mxu0  ;;  %v10057_v41 = vld [vmem:[#allocation121_spill] sm:$0xff] }
 0x317   :  { %v4180_v56 = vpop.f32.mrf.mxu1  ;;  %v3958_v43 = vadd.f32 %v3957_v40, %v10047_v62  ;;  %v4462_v35 = vpack.c.bf16 %v4346_v20, %v4342_v54  ;;  %v4179_v5 = vadd.f32 %v4178_v48, %v3956_v7  ;;  %v4349_v1 = vmax.f32 %v4177_v36, 0.0  ;;  %v10059_v7 = vld [vmem:[#allocation124_spill] sm:$0xff]  ;;  %v10060_v62 = vld [vmem:[#allocation25_spill] sm:$0xff] }
 0x318   :  { %v3959_v38 = vpop.f32.mrf.mxu0 }
 0x319   :  { %v4182_v11 = vpop.f32.mrf.mxu1  ;;  %v4181_v3 = vadd.f32 %v4180_v56, %v3958_v43  ;;  %v3960_v46 = vadd.f32 %v3959_v38, %v8982_v60  ;;  %5234 = vmatprep.mubr.bf16.mxu1 %v4462_v35  ;;  %v4350_v52 = vmax.f32 %v4179_v5, 0.0  ;;  %v3757_v43 = vadd.f32 %v10060_v62, %v3534_v29 }
 0x31a   :  { %v3963_v10 = vpop.f32.mrf.mxu0  ;;  %5082 = vmatmul.mubr.bf16.gmra.mxu0 %v10049_v22  ;;  %5235 = vmatmul.mubr.bf16.gmra.mxu1 %v4461_v2 }
 0x31b   :  { %v4186_v21 = vpop.f32.mrf.mxu1  ;;  %v4353_v63 = vmax.f32 %v4181_v3, 0.0  ;;  %v4183_v33 = vadd.f32 %v4182_v11, %v3960_v46  ;;  %v3964_v24 = vadd.f32 %v3963_v10, %v10050_v19  ;;  %5091 = vmatprep.mubr.bf16.mxu0 %v10051_v30  ;;  %v10061_v11 = vld [vmem:[#allocation26_spill] sm:$0xff] }
 0x31c   :  { %v3965_v32 = vpop.f32.mrf.mxu0 }
 0x31d   :  { %v4188_v42 = vpop.f32.mrf.mxu1  ;;  %v4465_v60 = vpack.c.bf16 %v4353_v63, %v4349_v1  ;;  %v4354_v17 = vmax.f32 %v4183_v33, 0.0  ;;  %v3966_v23 = vadd.f32 %v3965_v32, %v10052_v16  ;;  %v4187_v25 = vadd.f32 %v4186_v21, %v3964_v24  ;;  %v10062_v63 = vld [vmem:[#allocation102_spill] sm:$0xff]  ;;  %v10063_v32 = vld [vmem:[#allocation105_spill] sm:$0xff] }
 0x31e   :  { %v3967_v28 = vpop.f32.mrf.mxu0  ;;  %v3544_v21 = vadd.f32 %v9027_v53, %v8756_v26 }
 0x31f   :  { %v4190_v0 = vpop.f32.mrf.mxu1  ;;  %v3968_v45 = vadd.f32 %v3967_v28, %v10054_v13  ;;  %v4466_v14 = vpack.c.bf16 %v4354_v17, %v4350_v52  ;;  %v4189_v8 = vadd.f32 %v4188_v42, %v3966_v23  ;;  %v4357_v27 = vmax.f32 %v4187_v25, 0.0  ;;  %v10064_v23 = vld [vmem:[#allocation126_spill] sm:$0xff] }
 0x320   :  { %v3969_v47 = vpop.f32.mrf.mxu0 }
 0x321   :  { %v4192_v12 = vpop.f32.mrf.mxu1  ;;  %v4191_v39 = vadd.f32 %v4190_v0, %v3968_v45  ;;  %v3970_v59 = vadd.f32 %v3969_v47, %v3747_v6  ;;  %5244 = vmatprep.mubr.bf16.mxu1 %v4466_v14  ;;  %v4358_v2 = vmax.f32 %v4189_v8, 0.0  ;;  %v3767_v6 = vadd.f32 %v10065_v50, %v3544_v21  ;;  %v10066_v45 = vld [vmem:[#allocation28_spill] sm:$0xff] }
 0x322   :  { %v3973_v34 = vpop.f32.mrf.mxu0  ;;  %5092 = vmatmul.mubr.bf16.gmra.mxu0 %v10056_v55  ;;  %5245 = vmatmul.mubr.bf16.gmra.mxu1 %v4465_v60 }
 0x323   :  { %v4196_v18 = vpop.f32.mrf.mxu1  ;;  %v4361_v49 = vmax.f32 %v4191_v39, 0.0  ;;  %v4193_v15 = vadd.f32 %v4192_v12, %v3970_v59  ;;  %v3974_v4 = vadd.f32 %v3973_v34, %v10057_v41  ;;  %5101 = vmatprep.mubr.bf16.mxu0 %v10058_v57  ;;  %v3554_v59 = vadd.f32 %v9043_v31, %v8756_v26  ;;  %v10067_v34 = vld [vmem:[#allocation16_spill] sm:$0xff] }
 0x324   :  { %v3975_v48 = vpop.f32.mrf.mxu0 }
 0x325   :  { %v4198_v54 = vpop.f32.mrf.mxu1  ;;  %v4469_v20 = vpack.c.bf16 %v4361_v49, %v4357_v27  ;;  %v4362_v37 = vmax.f32 %v4193_v15, 0.0  ;;  %v3976_v40 = vadd.f32 %v3975_v48, %v10059_v7  ;;  %v4197_v38 = vadd.f32 %v4196_v18, %v3974_v4  ;;  %v10068_v49 = vld [vmem:[#allocation129_spill] sm:$0xff] }
 0x326   :  { %v3977_v56 = vpop.f32.mrf.mxu0  ;;  %v3777_v31 = vadd.f32 %v9045_v9, %v3554_v59  ;;  %v10072_v9 = vld [vmem:[#allocation29_spill] sm:$0xff] }
 0x327   :  { %v4200_v36 = vpop.f32.mrf.mxu1  ;;  %v4470_v35 = vpack.c.bf16 %v4362_v37, %v4358_v2  ;;  %v3978_v5 = vadd.f32 %v3977_v56, %v10061_v11  ;;  %v4199_v44 = vadd.f32 %v4198_v54, %v3976_v40  ;;  %v4365_v33 = vmax.f32 %v4197_v38, 0.0  ;;  %v10069_v2 = vld [vmem:[#allocation132_spill] sm:$0xff] }
 0x328   :  { %v3979_v3 = vpop.f32.mrf.mxu0 }
 0x329   :  { %v4202_v46 = vpop.f32.mrf.mxu1  ;;  %v4201_v51 = vadd.f32 %v4200_v36, %v3978_v5  ;;  %v3980_v10 = vadd.f32 %v3979_v3, %v3757_v43  ;;  %5254 = vmatprep.mubr.bf16.mxu1 %v4470_v35  ;;  %v4366_v60 = vmax.f32 %v4199_v44, 0.0  ;;  %v10070_v36 = vld [vmem:[#allocation133_spill] sm:$0xff]  ;;  %v10071_v3 = vld [vmem:[#allocation134_spill] sm:$0xff] }
 0x32a   :  { %v3983_v22 = vpop.f32.mrf.mxu0  ;;  %5102 = vmatmul.mubr.bf16.gmra.mxu0 %v10062_v63  ;;  %5255 = vmatmul.mubr.bf16.gmra.mxu1 %v4469_v20 }
 0x32b   :  { %v4206_v1 = vpop.f32.mrf.mxu1  ;;  %v4369_v19 = vmax.f32 %v4201_v51, 0.0  ;;  %v4203_v24 = vadd.f32 %v4202_v46, %v3980_v10  ;;  %v3984_v30 = vadd.f32 %v3983_v22, %v9021_v61  ;;  %5111 = vmatprep.mubr.bf16.mxu0 %v10063_v32  ;;  %v3564_v46 = vadd.f32 %v10071_v3, %v8756_v26  ;;  %v10073_v32 = vld [vmem:[#allocation30_spill] sm:$0xff] }
 0x32c   :  { %v3985_v42 = vpop.f32.mrf.mxu0 }
 0x32d   :  { %v4208_v52 = vpop.f32.mrf.mxu1  ;;  %v4473_v17 = vpack.c.bf16 %v4369_v19, %v4365_v33  ;;  %v4370_v16 = vmax.f32 %v4203_v24, 0.0  ;;  %v3986_v28 = vadd.f32 %v3985_v42, %v10064_v23  ;;  %v4207_v13 = vadd.f32 %v4206_v1, %v3984_v30 }
 0x32e   :  { %v3987_v53 = vpop.f32.mrf.mxu0 }
 0x32f   :  { %v4210_v0 = vpop.f32.mrf.mxu1  ;;  %v4474_v25 = vpack.c.bf16 %v4370_v16, %v4366_v60  ;;  %v3988_v14 = vadd.f32 %v3987_v53, %v10066_v45  ;;  %v4209_v61 = vadd.f32 %v4208_v52, %v3986_v28  ;;  %v4373_v18 = vmax.f32 %v4207_v13, 0.0  ;;  %v10075_v53 = vld [vmem:[#allocation32_spill] sm:$0xff] }
 0x330   :  { %v3989_v47 = vpop.f32.mrf.mxu0 }
 0x331   :  { %v4212_v12 = vpop.f32.mrf.mxu1  ;;  %v4211_v8 = vadd.f32 %v4210_v0, %v3988_v14  ;;  %v3990_v39 = vadd.f32 %v3989_v47, %v3767_v6  ;;  %5264 = vmatprep.mubr.bf16.mxu1 %v4474_v25  ;;  %v4374_v57 = vmax.f32 %v4209_v61, 0.0  ;;  %v10076_v14 = vld [vmem:[#allocation141_spill] sm:$0xff] }
 0x332   :  { %v3993_v58 = vpop.f32.mrf.mxu0  ;;  %5112 = vmatmul.mubr.bf16.gmra.mxu0 %v10067_v34  ;;  %5265 = vmatmul.mubr.bf16.gmra.mxu1 %v4473_v17  ;;  %v10074_v17 = vld [vmem:[#allocation31_spill] sm:$0xff]  ;;  %v3574_v47 = vadd.f32 %v10076_v14, %v8756_v26 }
 0x333   :  { %v4216_v29 = vpop.f32.mrf.mxu1  ;;  %v4377_v55 = vmax.f32 %v4211_v8, 0.0  ;;  %v4213_v27 = vadd.f32 %v4212_v12, %v3990_v39  ;;  %v3994_v15 = vadd.f32 %v3993_v58, %v10068_v49  ;;  %v3787_v16 = vadd.f32 %v10074_v17, %v3564_v46  ;;  %v10077_v58 = vld [vmem:[#allocation137_spill] sm:$0xff] }
 0x334   :  { %v3995_v41 = vpop.f32.mrf.mxu0 }
 0x335   :  { %v4218_v4 = vpop.f32.mrf.mxu1  ;;  %v4477_v48 = vpack.c.bf16 %v4377_v55, %v4373_v18  ;;  %v4378_v54 = vmax.f32 %v4213_v27, 0.0  ;;  %v3996_v20 = vadd.f32 %v3995_v41, %v10069_v2  ;;  %v4217_v56 = vadd.f32 %v4216_v29, %v3994_v15  ;;  %v10078_v15 = vld [vmem:[#allocation140_spill] sm:$0xff] }
 0x336   :  { %v3997_v37 = vpop.f32.mrf.mxu0 }
 0x337   :  { %v4220_v7 = vpop.f32.mrf.mxu1  ;;  %v4478_v40 = vpack.c.bf16 %v4378_v54, %v4374_v57  ;;  %v3998_v62 = vadd.f32 %v3997_v37, %v10070_v36  ;;  %v4219_v38 = vadd.f32 %v4218_v4, %v3996_v20  ;;  %v4381_v10 = vmax.f32 %v4217_v56, 0.0  ;;  %v10080_v37 = vld [vmem:[#allocation34_spill] sm:$0xff] }
 0x338   :  { %v3999_v43 = vpop.f32.mrf.mxu0 }
 0x339   :  { %v4222_v35 = vpop.f32.mrf.mxu1  ;;  %v4221_v11 = vadd.f32 %v4220_v7, %v3998_v62  ;;  %v4000_v5 = vadd.f32 %v3999_v43, %v3777_v31  ;;  %5274 = vmatprep.mubr.bf16.mxu1 %v4478_v40  ;;  %v4382_v19 = vmax.f32 %v4219_v38, 0.0  ;;  %v10081_v43 = vld [vmem:[#allocation36_spill] sm:$0xff] }
 0x33a   :  { %v4003_v44 = vpop.f32.mrf.mxu0  ;;  %5275 = vmatmul.mubr.bf16.gmra.mxu1 %v4477_v48  ;;  %v10079_v48 = vld [vmem:[#allocation33_spill] sm:$0xff] }
 0x33b   :  { %v4226_v51 = vpop.f32.mrf.mxu1  ;;  %v4385_v21 = vmax.f32 %v4221_v11, 0.0  ;;  %v4223_v22 = vadd.f32 %v4222_v35, %v4000_v5  ;;  %v4004_v1 = vadd.f32 %v4003_v44, %v10072_v9  ;;  %v3797_v54 = vadd.f32 %v10079_v48, %v3574_v47  ;;  %v10082_v44 = vld [vmem:[#allocation142_spill] sm:$0xff] }
 0x33c   :  { %v4005_v63 = vpop.f32.mrf.mxu0  ;;  %v3584_v35 = vadd.f32 %v10081_v43, %v8756_v26 }
 0x33d   :  { %v4228_v33 = vpop.f32.mrf.mxu1  ;;  %v4481_v24 = vpack.c.bf16 %v4385_v21, %v4381_v10  ;;  %v4386_v30 = vmax.f32 %v4223_v22, 0.0  ;;  %v4006_v42 = vadd.f32 %v4005_v63, %v10073_v32  ;;  %v4227_v28 = vadd.f32 %v4226_v51, %v4004_v1  ;;  %v10083_v63 = vld [vmem:[#allocation35_spill] sm:$0xff] }
 0x33e   :  { %v4007_v52 = vpop.f32.mrf.mxu0 }
 0x33f   :  { %v4230_v60 = vpop.f32.mrf.mxu1  ;;  %v4482_v23 = vpack.c.bf16 %v4386_v30, %v4382_v19  ;;  %v4008_v0 = vadd.f32 %v4007_v52, %v10075_v53  ;;  %v4229_v25 = vadd.f32 %v4228_v33, %v4006_v42  ;;  %v4389_v8 = vmax.f32 %v4227_v28, 0.0  ;;  %v10084_v30 = vld [vmem:[#allocation145_spill] sm:$0xff] }
 0x340   :  { %v4009_v50 = vpop.f32.mrf.mxu0  ;;  %v3807_v32 = vadd.f32 %v10084_v30, %v3584_v35 }
 0x341   :  { %v4232_v6 = vpop.f32.mrf.mxu1  ;;  %v4231_v13 = vadd.f32 %v4230_v60, %v4008_v0  ;;  %v4010_v45 = vadd.f32 %v4009_v50, %v3787_v16  ;;  %5284 = vmatprep.mubr.bf16.mxu1 %v4482_v23  ;;  %v4390_v55 = vmax.f32 %v4229_v25, 0.0  ;;  %v10085_v60 = vld [vmem:[#allocation148_spill] sm:$0xff]  ;;  %v10086_v50 = vld [vmem:[#allocation38_spill] sm:$0xff] }
 0x342   :  { %v4013_v12 = vpop.f32.mrf.mxu0  ;;  %5285 = vmatmul.mubr.bf16.gmra.mxu1 %v4481_v24 }
 0x343   :  { %v4236_v61 = vpop.f32.mrf.mxu1  ;;  %v4393_v39 = vmax.f32 %v4231_v13, 0.0  ;;  %v4233_v59 = vadd.f32 %v4232_v6, %v4010_v45  ;;  %v4014_v29 = vadd.f32 %v4013_v12, %v10077_v58  ;;  %v3594_v6 = vadd.f32 %v10086_v50, %v8756_v26  ;;  %v10087_v12 = vld [vmem:[#allocation149_spill] sm:$0xff] }
 0x344   :  { %v4015_v34 = vpop.f32.mrf.mxu0 }
 0x345   :  { %v4238_v18 = vpop.f32.mrf.mxu1  ;;  %v4485_v27 = vpack.c.bf16 %v4393_v39, %v4389_v8  ;;  %v4394_v49 = vmax.f32 %v4233_v59, 0.0  ;;  %v4016_v41 = vadd.f32 %v4015_v34, %v10078_v15  ;;  %v4237_v20 = vadd.f32 %v4236_v61, %v4014_v29  ;;  %v10088_v34 = vld [vmem:[#allocation37_spill] sm:$0xff] }
 0x346   :  { %v4017_v4 = vpop.f32.mrf.mxu0 }
 0x347   :  { %v4240_v57 = vpop.f32.mrf.mxu1  ;;  %v4486_v2 = vpack.c.bf16 %v4394_v49, %v4390_v55  ;;  %v4018_v7 = vadd.f32 %v4017_v4, %v10080_v37  ;;  %v4239_v56 = vadd.f32 %v4238_v18, %v4016_v41  ;;  %v4397_v5 = vmax.f32 %v4237_v20, 0.0  ;;  %v10089_v49 = vld [vmem:[#allocation150_spill] sm:$0xff] }
 0x348   :  { %v4019_v31 = vpop.f32.mrf.mxu0  ;;  %v3817_v15 = vadd.f32 %v10089_v49, %v3594_v6 }
 0x349   :  { %v4242_v40 = vpop.f32.mrf.mxu1  ;;  %v4241_v36 = vadd.f32 %v4240_v57, %v4018_v7  ;;  %v4020_v62 = vadd.f32 %v4019_v31, %v3797_v54  ;;  %5294 = vmatprep.mubr.bf16.mxu1 %v4486_v2  ;;  %v4398_v22 = vmax.f32 %v4239_v56, 0.0  ;;  %v10090_v57 = vld [vmem:[#allocation39_spill] sm:$0xff]  ;;  %v10091_v31 = vld [vmem:[#allocation156_spill] sm:$0xff] }
 0x34a   :  { %v4023_v38 = vpop.f32.mrf.mxu0  ;;  %5295 = vmatmul.mubr.bf16.gmra.mxu1 %v4485_v27 }
 0x34b   :  { %v4246_v11 = vpop.f32.mrf.mxu1  ;;  %v4401_v3 = vmax.f32 %v4241_v36, 0.0  ;;  %v4243_v46 = vadd.f32 %v4242_v40, %v4020_v62  ;;  %v4024_v51 = vadd.f32 %v4023_v38, %v10082_v44  ;;  %v3604_v40 = vadd.f32 %v10091_v31, %v8756_v26  ;;  %v10092_v38 = vld [vmem:[#allocation40_spill] sm:$0xff] }
 0x34c   :  { %v4025_v10 = vpop.f32.mrf.mxu0 }
 0x34d   :  { %v4248_v21 = vpop.f32.mrf.mxu1  ;;  %v4489_v9 = vpack.c.bf16 %v4401_v3, %v4397_v5  ;;  %v4402_v1 = vmax.f32 %v4243_v46, 0.0  ;;  %v4026_v33 = vadd.f32 %v4025_v10, %v10083_v63  ;;  %v4247_v52 = vadd.f32 %v4246_v11, %v4024_v51  ;;  %v10093_v10 = vld [vmem:[#allocation153_spill] sm:$0xff] }
 0x34e   :  { %v4027_v19 = vpop.f32.mrf.mxu0 }
 0x34f   :  { %v4250_v24 = vpop.f32.mrf.mxu1  ;;  %v4490_v42 = vpack.c.bf16 %v4402_v1, %v4398_v22  ;;  %v4028_v17 = vadd.f32 %v4027_v19, %v10085_v60  ;;  %v4249_v28 = vadd.f32 %v4248_v21, %v4026_v33  ;;  %v4405_v45 = vmax.f32 %v4247_v52, 0.0  ;;  %v10094_v1 = vld [vmem:[#allocation157_spill] sm:$0xff] }
 0x350   :  { %v4029_v16 = vpop.f32.mrf.mxu0  ;;  %v3827_v63 = vadd.f32 %v10094_v1, %v3604_v40  ;;  %v10095_v19 = vld [vmem:[#allocation41_spill] sm:$0xff] }
 0x351   :  { %v4252_v23 = vpop.f32.mrf.mxu1  ;;  %v4251_v53 = vadd.f32 %v4250_v24, %v4028_v17  ;;  %v4030_v0 = vadd.f32 %v4029_v16, %v3807_v32  ;;  %5304 = vmatprep.mubr.bf16.mxu1 %v4490_v42  ;;  %v4406_v59 = vmax.f32 %v4249_v28, 0.0 }
 0x352   :  { %v4033_v25 = vpop.f32.mrf.mxu0  ;;  %5305 = vmatmul.mubr.bf16.gmra.mxu1 %v4489_v9 }
 0x353   :  { %v4256_v13 = vpop.f32.mrf.mxu1  ;;  %v4409_v14 = vmax.f32 %v4251_v53, 0.0  ;;  %v4253_v47 = vadd.f32 %v4252_v23, %v4030_v0  ;;  %v4034_v61 = vadd.f32 %v4033_v25, %v10087_v12 }
 0x354   :  { %v4035_v8 = vpop.f32.mrf.mxu0 }
 0x355   :  { %v4258_v39 = vpop.f32.mrf.mxu1  ;;  %v4493_v58 = vpack.c.bf16 %v4409_v14, %v4405_v45  ;;  %v4410_v29 = vmax.f32 %v4253_v47, 0.0  ;;  %v4036_v18 = vadd.f32 %v4035_v8, %v10088_v34  ;;  %v4257_v4 = vadd.f32 %v4256_v13, %v4034_v61 }
 0x356   :  { %v4037_v55 = vpop.f32.mrf.mxu0 }
 0x357   :  { %v4260_v27 = vpop.f32.mrf.mxu1  ;;  %v4494_v41 = vpack.c.bf16 %v4410_v29, %v4406_v59  ;;  %v4038_v48 = vadd.f32 %v4037_v55, %v10090_v57  ;;  %v4259_v20 = vadd.f32 %v4258_v39, %v4036_v18  ;;  %v4413_v62 = vmax.f32 %v4257_v4, 0.0 }
 0x358   :  { %v4039_v54 = vpop.f32.mrf.mxu0 }
 0x359   :  { %v4262_v2 = vpop.f32.mrf.mxu1  ;;  %v4261_v37 = vadd.f32 %v4260_v27, %v4038_v48  ;;  %v4040_v7 = vadd.f32 %v4039_v54, %v3817_v15  ;;  %5314 = vmatprep.mubr.bf16.mxu1 %v4494_v41  ;;  %v4414_v46 = vmax.f32 %v4259_v20, 0.0 }
 0x35a   :  { %v4043_v56 = vpop.f32.mrf.mxu0  ;;  %5315 = vmatmul.mubr.bf16.gmra.mxu1 %v4493_v58 }
 0x35b   :  { %v4266_v36 = vpop.f32.mrf.mxu1  ;;  %v4417_v43 = vmax.f32 %v4261_v37, 0.0  ;;  %v4263_v35 = vadd.f32 %v4262_v2, %v4040_v7  ;;  %v4044_v11 = vadd.f32 %v4043_v56, %v10092_v38  ;;  %v4567_v2 = vld [vmem:[%s9501_s4] sm:$0x3]  ;;  %s6415_s4 = smov [#allocation2]  }
 0x35c   :  { %v4045_v5 = vpop.f32.mrf.mxu0  ;;  %v10096_v7 = vld [vmem:[#allocation73_spill] sm:$0xff]  ;;  %s5426_s25 = sshll.u32 %s6415_s4, 4  ;;  %s5427_s25 = int_to_ptr.vmem [resolvable:$true] %s5426_s25 }
 0x35d   :  { %v4268_v3 = vpop.f32.mrf.mxu1  ;;  %v4497_v44 = vpack.c.bf16 %v4417_v43, %v4413_v62  ;;  %v4418_v51 = vmax.f32 %v4263_v35, 0.0  ;;  %v4046_v21 = vadd.f32 %v4045_v5, %v10093_v10  ;;  %v4267_v33 = vadd.f32 %v4266_v36, %v4044_v11  ;;  %s6393_s26 = scalar_lea.vmem %s5427_s25, 9728  ;;  %p6398_p1 = scmp.lt.s32.totalorder %s5427_s25, %s5427_s25 }
 0x35e   :  { %v4047_v22 = vpop.f32.mrf.mxu0  ;;  %v10097_v31 = vsub.s32 0, %v10096_v7  ;;  %v10098_v36 = vsub.s32 1, %v10096_v7  ;;  %p6394_p0 = scmp.ne.s32.totalorder %s5427_s25, %s6393_s26  ;;  %p6399_p2 = scmp.lt.s32.totalorder %s6393_s26, %s6393_s26 }
 0x35f   :  { %v4270_v9 = vpop.f32.mrf.mxu1  ;;  %v4498_v26 = vpack.c.bf16 %v4418_v51, %v4414_v46  ;;  %v4048_v24 = vadd.f32 %v4047_v22, %v10095_v19  ;;  %v4269_v32 = vadd.f32 %v4268_v3, %v4046_v21  ;;  %v4421_v16 = vmax.f32 %v4267_v33, 0.0 }
 0x360   :  { %v4049_v30 = vpop.f32.mrf.mxu0  ;;  %v9284_v40 = vrot.slane %v4567_v2, %v10097_v31  ;;  %v9290_v62 = vrot.slane %v4567_v2, %v10098_v36  ;;  %p6400_p3 = por %p6399_p2, %p6398_p1 }
 0x361   :  { %v4271_v42 = vadd.f32 %v4270_v9, %v4048_v24  ;;  %v4050_v52 = vadd.f32 %v4049_v30, %v3827_v63  ;;  %5324 = vmatprep.mubr.bf16.mxu1 %v4498_v26  ;;  %v4272_v60 = vpop.f32.mrf.mxu1  ;;  %v4422_v0 = vmax.f32 %v4269_v32, 0.0 }
 0x362   :  { %v4933_v17 = vpop.f32.mrf.mxu0  ;;  %5325 = vmatmul.mubr.bf16.gmra.mxu1 %v4497_v44  ;;  %p6401_p4 = pnand %p6400_p3, %p6394_p0 }
 0x363   :  { %v4425_v23 = vmax.f32 %v4271_v42, 0.0  ;;  %v4273_v28 = vadd.f32 %v4272_v60, %v4050_v52  ;;  %v4934_v35 = vadd.f32 %v4933_v17, %v9284_v40 }
 0x364   :  { %v4935_v53 = vpop.f32.mrf.mxu0 }
 0x365   :  { %v4501_v50 = vpack.c.bf16 %v4425_v23, %v4421_v16  ;;  %v4426_v6 = vmax.f32 %v4273_v28, 0.0  ;;  %v4936_v5 = vadd.f32 %v4935_v53, %v9290_v62 }
 0x366   :  { %v4937_v25 = vpop.f32.mrf.mxu0 }
 0x367   :  { %v4502_v13 = vpack.c.bf16 %v4426_v6, %v4422_v0  ;;  %v4938_v51 = vadd.f32 %v4937_v25, %v9284_v40 }
 0x368   :  { %v4939_v45 = vpop.f32.mrf.mxu0 }
 0x369   :  { %5334 = vmatprep.mubr.bf16.mxu1 %v4502_v13  ;;  %v4940_v9 = vadd.f32 %v4939_v45, %v9290_v62 }
 0x36a   :  { %v4943_v14 = vpop.f32.mrf.mxu0  ;;  %5335 = vmatmul.mubr.bf16.gmra.mxu1 %v4501_v50 }
 0x36b   :  { %v4944_v33 = vadd.f32 %v4943_v14, %v9284_v40 }
 0x36c   :  { %v4945_v47 = vpop.f32.mrf.mxu0 }
 0x36d   :  { %v4946_v32 = vadd.f32 %v4945_v47, %v9290_v62 }
 0x36e   :  { %v4947_v12 = vpop.f32.mrf.mxu0 }
 0x36f   :  { %v4948_v17 = vadd.f32 %v4947_v12, %v9284_v40 }
 0x370   :  { %v4949_v61 = vpop.f32.mrf.mxu0 }
 0x371   :  { %v4950_v53 = vadd.f32 %v4949_v61, %v9290_v62 }
 0x372   :  { %v4953_v8 = vpop.f32.mrf.mxu0 }
 0x373   :  { %v4954_v25 = vadd.f32 %v4953_v8, %v9284_v40 }
 0x374   :  { %v9245_v39 = vpop.f32.mrf.mxu0 }
 0x375   :  { %v4956_v47 = vadd.f32 %v9245_v39, %v9290_v62 }
 0x376   :  { %v9247_v59 = vpop.f32.mrf.mxu0 }
 0x377   :  { %v4958_v7 = vadd.f32 %v9247_v59, %v9284_v40 }
 0x378   :  { %v9249_v58 = vpop.f32.mrf.mxu0 }
 0x37a   :  { %v9251_v29 = vpop.f32.mrf.mxu0 }
 0x37c   :  { %v9253_v34 = vpop.f32.mrf.mxu0 }
 0x37e   :  { %v9255_v18 = vpop.f32.mrf.mxu0 }
 0x380   :  { %v9257_v55 = vpop.f32.mrf.mxu0 }
 0x382   :  { %v9259_v27 = vpop.f32.mrf.mxu0 }
 0x384   :  { %v9261_v49 = vpop.f32.mrf.mxu0 }
 0x386   :  { %v9263_v15 = vpop.f32.mrf.mxu0 }
 0x388   :  { %v9265_v41 = vpop.f32.mrf.mxu0 }
 0x38a   :  { %v9267_v4 = vpop.f32.mrf.mxu0 }
 0x38c   :  { %v9269_v57 = vpop.f32.mrf.mxu0 }
 0x38e   :  { %v9271_v48 = vpop.f32.mrf.mxu0 }
 0x390   :  { %v9273_v54 = vpop.f32.mrf.mxu0 }
 0x392   :  { %v9278_v20 = vpop.f32.mrf.mxu0 }
 0x394   :  { %v9280_v37 = vpop.f32.mrf.mxu0 }
 0x396   :  { %v9286_v56 = vpop.f32.mrf.mxu0 }
 0x398   :  { %v9292_v43 = vpop.f32.mrf.mxu0 }
 0x39a   :  { %v9295_v38 = vpop.f32.mrf.mxu0  ;;  %v5156_v11 = vpop.f32.mrf.mxu1 }
 0x39b   :  { %v5157_v3 = vadd.f32 %v5156_v11, %v4934_v35  ;;  %v4960_v35 = vadd.f32 %v9249_v58, %v9290_v62 }
 0x39c   :  { %v9298_v46 = vpop.f32.mrf.mxu0  ;;  %v5158_v44 = vpop.f32.mrf.mxu1 }
 0x39d   :  { %5345 = vst [vmem:[#allocation2] sm:$0xff] %v5157_v3  ;;  %v5159_v10 = vadd.f32 %v5158_v44, %v4936_v5  ;;  %v4964_v3 = vadd.f32 %v9251_v29, %v9284_v40 }
 0x39e   :  { %v9301_v21 = vpop.f32.mrf.mxu0  ;;  %v5160_v22 = vpop.f32.mrf.mxu1 }
 0x39f   :  { %5346 = vst [vmem:[#allocation2 + $0x8] sm:$0xff] %v5159_v10  ;;  %v5161_v1 = vadd.f32 %v5160_v22, %v4938_v51  ;;  %v4966_v10 = vadd.f32 %v9253_v34, %v9290_v62 }
 0x3a0   :  { %v9304_v63 = vpop.f32.mrf.mxu0  ;;  %v5162_v26 = vpop.f32.mrf.mxu1 }
 0x3a1   :  { %5347 = vst [vmem:[#allocation2 + $0x10] sm:$0xff] %v5161_v1  ;;  %v5163_v19 = vadd.f32 %v5162_v26, %v4940_v9  ;;  %v4968_v1 = vadd.f32 %v9255_v18, %v9284_v40 }
 0x3a2   :  { %v9307_v24 = vpop.f32.mrf.mxu0  ;;  %v5166_v30 = vpop.f32.mrf.mxu1 }
 0x3a3   :  { %5348 = vst [vmem:[#allocation2 + $0x18] sm:$0xff] %v5163_v19  ;;  %v5167_v42 = vadd.f32 %v5166_v30, %v4944_v33  ;;  %v4970_v19 = vadd.f32 %v9257_v55, %v9290_v62 }
 0x3a4   :  { %v9310_v52 = vpop.f32.mrf.mxu0  ;;  %v5168_v60 = vpop.f32.mrf.mxu1 }
 0x3a5   :  { %5349 = vst [vmem:[#allocation2 + $0x20] sm:$0xff] %v5167_v42  ;;  %v5169_v16 = vadd.f32 %v5168_v60, %v4946_v32  ;;  %v4974_v42 = vadd.f32 %v9259_v27, %v9284_v40 }
 0x3a6   :  { %v9313_v23 = vpop.f32.mrf.mxu0  ;;  %v5170_v28 = vpop.f32.mrf.mxu1 }
 0x3a7   :  { %5350 = vst [vmem:[#allocation2 + $0x28] sm:$0xff] %v5169_v16  ;;  %v5171_v0 = vadd.f32 %v5170_v28, %v4948_v17  ;;  %v4976_v16 = vadd.f32 %v9261_v49, %v9290_v62 }
 0x3a8   :  { %v9316_v50 = vpop.f32.mrf.mxu0  ;;  %v5172_v6 = vpop.f32.mrf.mxu1 }
 0x3a9   :  { %5351 = vst [vmem:[#allocation2 + $0x30] sm:$0xff] %v5171_v0  ;;  %v5173_v13 = vadd.f32 %v5172_v6, %v4950_v53  ;;  %v4978_v0 = vadd.f32 %v9263_v15, %v9284_v40 }
 0x3aa   :  { %v9319_v45 = vpop.f32.mrf.mxu0  ;;  %v5176_v14 = vpop.f32.mrf.mxu1 }
 0x3ab   :  { %5352 = vst [vmem:[#allocation2 + $0x38] sm:$0xff] %v5173_v13  ;;  %v5177_v12 = vadd.f32 %v5176_v14, %v4954_v25  ;;  %v4980_v13 = vadd.f32 %v9265_v41, %v9290_v62 }
 0x3ac   :  { %v9323_v2 = vpop.f32.mrf.mxu0  ;;  %v5178_v61 = vpop.f32.mrf.mxu1 }
 0x3ad   :  { %5353 = vst [vmem:[#allocation2 + $0x40] sm:$0xff] %v5177_v12  ;;  %v5179_v31 = vadd.f32 %v5178_v61, %v4956_v47  ;;  %v4984_v12 = vadd.f32 %v9267_v4, %v9284_v40  ;;  %v4990_v4 = vadd.f32 %v9273_v54, %v9290_v62  ;;  %v4998_v54 = vadd.f32 %v9286_v56, %v9284_v40 }
 0x3ae   :  { %v9327_v36 = vpop.f32.mrf.mxu0  ;;  %v5180_v8 = vpop.f32.mrf.mxu1  ;;  %v5006_v56 = vadd.f32 %v9298_v46, %v9290_v62  ;;  %v5014_v46 = vadd.f32 %v9307_v24, %v9284_v40  ;;  %v5020_v24 = vadd.f32 %v9316_v50, %v9290_v62 }
 0x3af   :  { %5354 = vst [vmem:[#allocation2 + $0x48] sm:$0xff] %v5179_v31  ;;  %v5181_v11 = vadd.f32 %v5180_v8, %v4958_v7  ;;  %v4986_v31 = vadd.f32 %v9269_v57, %v9290_v62  ;;  %v4994_v57 = vadd.f32 %v9278_v20, %v9284_v40  ;;  %v5000_v20 = vadd.f32 %v9292_v43, %v9290_v62 }
 0x3b0   :  { %v9331_v5 = vpop.f32.mrf.mxu0  ;;  %v5182_v39 = vpop.f32.mrf.mxu1  ;;  %v5008_v43 = vadd.f32 %v9301_v21, %v9284_v40  ;;  %v5016_v21 = vadd.f32 %v9310_v52, %v9290_v62  ;;  %v5024_v52 = vadd.f32 %v9319_v45, %v9284_v40  ;;  %v5028_v50 = vadd.f32 %v9327_v36, %v9284_v40 }
 0x3b1   :  { %5355 = vst [vmem:[#allocation2 + $0x50] sm:$0xff] %v5181_v11  ;;  %v5183_v44 = vadd.f32 %v5182_v39, %v4960_v35  ;;  %v4988_v11 = vadd.f32 %v9271_v48, %v9284_v40  ;;  %v4996_v48 = vadd.f32 %v9280_v37, %v9290_v62  ;;  %v5004_v37 = vadd.f32 %v9295_v38, %v9284_v40 }
 0x3b2   :  { %v9335_v51 = vpop.f32.mrf.mxu0  ;;  %v5186_v59 = vpop.f32.mrf.mxu1  ;;  %v5010_v38 = vadd.f32 %v9304_v63, %v9290_v62  ;;  %v5018_v63 = vadd.f32 %v9313_v23, %v9284_v40  ;;  %v5026_v23 = vadd.f32 %v9323_v2, %v9290_v62  ;;  %v5030_v45 = vadd.f32 %v9331_v5, %v9290_v62 }
 0x3b3   :  { %5356 = vst [vmem:[#allocation2 + $0x58] sm:$0xff] %v5183_v44  ;;  %v5187_v22 = vadd.f32 %v5186_v59, %v4964_v3  ;;  %v5034_v2 = vadd.f32 %v9335_v51, %v9284_v40 }
 0x3b4   :  { %v9339_v9 = vpop.f32.mrf.mxu0  ;;  %v5188_v58 = vpop.f32.mrf.mxu1 }
 0x3b5   :  { %5357 = vst [vmem:[#allocation2 + $0x60] sm:$0xff] %v5187_v22  ;;  %v5189_v26 = vadd.f32 %v5188_v58, %v4966_v10  ;;  %v5036_v36 = vadd.f32 %v9339_v9, %v9290_v62 }
 0x3b6   :  { %v9343_v33 = vpop.f32.mrf.mxu0  ;;  %v5190_v29 = vpop.f32.mrf.mxu1 }
 0x3b7   :  { %5358 = vst [vmem:[#allocation2 + $0x68] sm:$0xff] %v5189_v26  ;;  %v5191_v30 = vadd.f32 %v5190_v29, %v4968_v1  ;;  %v5038_v5 = vadd.f32 %v9343_v33, %v9284_v40 }
 0x3b8   :  { %v9347_v32 = vpop.f32.mrf.mxu0  ;;  %v5192_v34 = vpop.f32.mrf.mxu1 }
 0x3b9   :  { %5359 = vst [vmem:[#allocation2 + $0x70] sm:$0xff] %v5191_v30  ;;  %v5193_v60 = vadd.f32 %v5192_v34, %v4970_v19  ;;  %v5040_v51 = vadd.f32 %v9347_v32, %v9290_v62 }
 0x3ba   :  { %v9351_v17 = vpop.f32.mrf.mxu0  ;;  %v5196_v18 = vpop.f32.mrf.mxu1 }
 0x3bb   :  { %5360 = vst [vmem:[#allocation2 + $0x78] sm:$0xff] %v5193_v60  ;;  %v5197_v28 = vadd.f32 %v5196_v18, %v4974_v42  ;;  %v5044_v9 = vadd.f32 %v9351_v17, %v9284_v40 }
 0x3bc   :  { %v9355_v53 = vpop.f32.mrf.mxu0  ;;  %v5198_v55 = vpop.f32.mrf.mxu1 }
 0x3bd   :  { %5361 = vst [vmem:[#allocation2 + $0x80] sm:$0xff] %v5197_v28  ;;  %v5199_v6 = vadd.f32 %v5198_v55, %v4976_v16  ;;  %v5046_v33 = vadd.f32 %v9355_v53, %v9290_v62 }
 0x3be   :  { %v9359_v25 = vpop.f32.mrf.mxu0  ;;  %v5200_v27 = vpop.f32.mrf.mxu1 }
 0x3bf   :  { %5362 = vst [vmem:[#allocation2 + $0x88] sm:$0xff] %v5199_v6  ;;  %v5201_v14 = vadd.f32 %v5200_v27, %v4978_v0  ;;  %v5048_v32 = vadd.f32 %v9359_v25, %v9284_v40 }
 0x3c0   :  { %v9363_v47 = vpop.f32.mrf.mxu0  ;;  %v5202_v49 = vpop.f32.mrf.mxu1 }
 0x3c1   :  { %5363 = vst [vmem:[#allocation2 + $0x90] sm:$0xff] %v5201_v14  ;;  %v5203_v61 = vadd.f32 %v5202_v49, %v4980_v13  ;;  %v5050_v17 = vadd.f32 %v9363_v47, %v9290_v62 }
 0x3c2   :  { %v9367_v7 = vpop.f32.mrf.mxu0  ;;  %v5206_v15 = vpop.f32.mrf.mxu1 }
 0x3c3   :  { %5364 = vst [vmem:[#allocation2 + $0x98] sm:$0xff] %v5203_v61  ;;  %v5207_v8 = vadd.f32 %v5206_v15, %v4984_v12  ;;  %v5054_v53 = vadd.f32 %v9367_v7, %v9284_v40 }
 0x3c4   :  { %v9371_v35 = vpop.f32.mrf.mxu0  ;;  %v5208_v41 = vpop.f32.mrf.mxu1 }
 0x3c5   :  { %5365 = vst [vmem:[#allocation2 + $0xa0] sm:$0xff] %v5207_v8  ;;  %v5209_v39 = vadd.f32 %v5208_v41, %v4986_v31  ;;  %v5056_v25 = vadd.f32 %v9371_v35, %v9290_v62 }
 0x3c6   :  { %v5210_v3 = vpop.f32.mrf.mxu1  ;;  %v9377_v59 = vpop.f32.mrf.mxu0 }
 0x3c7   :  { %5366 = vst [vmem:[#allocation2 + $0xa8] sm:$0xff] %v5209_v39  ;;  %v5211_v44 = vadd.f32 %v5210_v3, %v4988_v11  ;;  %v5058_v47 = vadd.f32 %v9377_v59, %v9284_v40 }
 0x3c8   :  { %v5212_v10 = vpop.f32.mrf.mxu1  ;;  %v9383_v26 = vpop.f32.mrf.mxu0 }
 0x3c9   :  { %5367 = vst [vmem:[#allocation2 + $0xb0] sm:$0xff] %v5211_v44  ;;  %v5213_v22 = vadd.f32 %v5212_v10, %v4990_v4 }
 0x3ca   :  { %v5216_v58 = vpop.f32.mrf.mxu1  ;;  %v9389_v42 = vpop.f32.mrf.mxu0 }
 0x3cb   :  { %5368 = vst [vmem:[#allocation2 + $0xb8] sm:$0xff] %v5213_v22  ;;  %v5217_v1 = vadd.f32 %v5216_v58, %v4994_v57  ;;  %v5064_v35 = vadd.f32 %v9389_v42, %v9284_v40 }
 0x3cc   :  { %v5218_v29 = vpop.f32.mrf.mxu1  ;;  %v9395_v55 = vpop.f32.mrf.mxu0 }
 0x3cd   :  { %5369 = vst [vmem:[#allocation2 + $0xc0] sm:$0xff] %v5217_v1  ;;  %v5219_v19 = vadd.f32 %v5218_v29, %v4996_v48 }
 0x3ce   :  { %v5220_v30 = vpop.f32.mrf.mxu1  ;;  %v9401_v14 = vpop.f32.mrf.mxu0 }
 0x3cf   :  { %5370 = vst [vmem:[#allocation2 + $0xc8] sm:$0xff] %v5219_v19  ;;  %v5221_v34 = vadd.f32 %v5220_v30, %v4998_v54 }
 0x3d0   :  { %v5222_v60 = vpop.f32.mrf.mxu1  ;;  %v9407_v31 = vpop.f32.mrf.mxu0 }
 0x3d1   :  { %5371 = vst [vmem:[#allocation2 + $0xd0] sm:$0xff] %v5221_v34  ;;  %v5223_v18 = vadd.f32 %v5222_v60, %v5000_v20 }
 0x3d2   :  { %v5226_v16 = vpop.f32.mrf.mxu1  ;;  %v9413_v3 = vpop.f32.mrf.mxu0 }
 0x3d3   :  { %5372 = vst [vmem:[#allocation2 + $0xd8] sm:$0xff] %v5223_v18  ;;  %v5227_v28 = vadd.f32 %v5226_v16, %v5004_v37 }
 0x3d4   :  { %v5228_v0 = vpop.f32.mrf.mxu1  ;;  %v9419_v22 = vpop.f32.mrf.mxu0 }
 0x3d5   :  { %5373 = vst [vmem:[#allocation2 + $0xe0] sm:$0xff] %v5227_v28  ;;  %v5229_v6 = vadd.f32 %v5228_v0, %v5006_v56 }
 0x3d6   :  { %v5230_v27 = vpop.f32.mrf.mxu1  ;;  %v9425_v54 = vpop.f32.mrf.mxu0 }
 0x3d7   :  { %5374 = vst [vmem:[#allocation2 + $0xe8] sm:$0xff] %v5229_v6  ;;  %v5231_v13 = vadd.f32 %v5230_v27, %v5008_v43 }
 0x3d8   :  { %v5232_v49 = vpop.f32.mrf.mxu1  ;;  %v9431_v60 = vpop.f32.mrf.mxu0 }
 0x3d9   :  { %5375 = vst [vmem:[#allocation2 + $0xf0] sm:$0xff] %v5231_v13  ;;  %v5233_v12 = vadd.f32 %v5232_v49, %v5010_v38 }
 0x3da   :  { %v5236_v61 = vpop.f32.mrf.mxu1  ;;  %v9437_v28 = vpop.f32.mrf.mxu0 }
 0x3db   :  { %5376 = vst [vmem:[#allocation2 + $0xf8] sm:$0xff] %v5233_v12  ;;  %v5237_v15 = vadd.f32 %v5236_v61, %v5014_v46 }
 0x3dc   :  { %v5238_v8 = vpop.f32.mrf.mxu1  ;;  %v9443_v38 = vpop.f32.mrf.mxu0 }
 0x3dd   :  { %5377 = vst [vmem:[#allocation2 + $0x100] sm:$0xff] %v5237_v15  ;;  %v5239_v41 = vadd.f32 %v5238_v8, %v5016_v21 }
 0x3de   :  { %v5240_v11 = vpop.f32.mrf.mxu1  ;;  %v9449_v61 = vpop.f32.mrf.mxu0 }
 0x3df   :  { %5378 = vst [vmem:[#allocation2 + $0x108] sm:$0xff] %v5239_v41  ;;  %v5241_v39 = vadd.f32 %v5240_v11, %v5018_v63 }
 0x3e0   :  { %v5242_v4 = vpop.f32.mrf.mxu1  ;;  %v5089_v41 = vpop.f32.mrf.mxu0 }
 0x3e1   :  { %5379 = vst [vmem:[#allocation2 + $0x110] sm:$0xff] %v5241_v39  ;;  %v5243_v44 = vadd.f32 %v5242_v4, %v5020_v24  ;;  %v5060_v4 = vadd.f32 %v9383_v26, %v9290_v62  ;;  %v5068_v26 = vadd.f32 %v9401_v14, %v9284_v40 }
 0x3e2   :  { %v5246_v10 = vpop.f32.mrf.mxu1 }
 0x3e3   :  { %5380 = vst [vmem:[#allocation2 + $0x118] sm:$0xff] %v5243_v44  ;;  %v5247_v57 = vadd.f32 %v5246_v10, %v5024_v52  ;;  %v5093_v52 = vpop.f32.mrf.mxu0 }
 0x3e4   :  { %v5248_v58 = vpop.f32.mrf.mxu1 }
 0x3e5   :  { %5381 = vst [vmem:[#allocation2 + $0x120] sm:$0xff] %v5247_v57  ;;  %v5249_v48 = vadd.f32 %v5248_v58, %v5026_v23  ;;  %v5066_v57 = vadd.f32 %v9395_v55, %v9290_v62  ;;  %v5095_v58 = vpop.f32.mrf.mxu0  ;;  %v5074_v55 = vadd.f32 %v9413_v3, %v9284_v40 }
 0x3e6   :  { %v5250_v1 = vpop.f32.mrf.mxu1 }
 0x3e7   :  { %5382 = vst [vmem:[#allocation2 + $0x128] sm:$0xff] %v5249_v48  ;;  %v5251_v29 = vadd.f32 %v5250_v1, %v5028_v50 }
 0x3e8   :  { %v5252_v19 = vpop.f32.mrf.mxu1 }
 0x3e9   :  { %5383 = vst [vmem:[#allocation2 + $0x130] sm:$0xff] %v5251_v29  ;;  %v5253_v30 = vadd.f32 %v5252_v19, %v5030_v45  ;;  %v5070_v45 = vadd.f32 %v9407_v31, %v9290_v62  ;;  %v5097_v29 = vpop.f32.mrf.mxu0  ;;  %v5078_v31 = vadd.f32 %v9425_v54, %v9284_v40 }
 0x3ea   :  { %v5256_v20 = vpop.f32.mrf.mxu1 }
 0x3eb   :  { %5384 = vst [vmem:[#allocation2 + $0x138] sm:$0xff] %v5253_v30  ;;  %v5257_v34 = vadd.f32 %v5256_v20, %v5034_v2  ;;  %v5076_v20 = vadd.f32 %v9419_v22, %v9290_v62  ;;  %v5084_v22 = vadd.f32 %v9437_v28, %v9284_v40 }
 0x3ec   :  { %v5258_v37 = vpop.f32.mrf.mxu1 }
 0x3ed   :  { %5385 = vst [vmem:[#allocation2 + $0x140] sm:$0xff] %v5257_v34  ;;  %v5259_v18 = vadd.f32 %v5258_v37, %v5036_v36  ;;  %v5099_v36 = vpop.f32.mrf.mxu0 }
 0x3ee   :  { %v5260_v16 = vpop.f32.mrf.mxu1 }
 0x3ef   :  { %5386 = vst [vmem:[#allocation2 + $0x148] sm:$0xff] %v5259_v18  ;;  %v5261_v56 = vadd.f32 %v5260_v16, %v5038_v5  ;;  %v5080_v18 = vadd.f32 %v9431_v60, %v9290_v62  ;;  %v5103_v16 = vpop.f32.mrf.mxu0  ;;  %v5088_v60 = vadd.f32 %v9449_v61, %v9284_v40 }
 0x3f0   :  { %v5262_v0 = vpop.f32.mrf.mxu1 }
 0x3f1   :  { %5387 = vst [vmem:[#allocation2 + $0x150] sm:$0xff] %v5261_v56  ;;  %v5263_v43 = vadd.f32 %v5262_v0, %v5040_v51 }
 0x3f2   :  { %v5266_v6 = vpop.f32.mrf.mxu1 }
 0x3f3   :  { %5388 = vst [vmem:[#allocation2 + $0x158] sm:$0xff] %v5263_v43  ;;  %v5267_v27 = vadd.f32 %v5266_v6, %v5044_v9  ;;  %v5086_v9 = vadd.f32 %v9443_v38, %v9290_v62  ;;  %v5105_v43 = vpop.f32.mrf.mxu0 }
 0x3f4   :  { %v5268_v13 = vpop.f32.mrf.mxu1 }
 0x3f5   :  { %5389 = vst [vmem:[#allocation2 + $0x160] sm:$0xff] %v5267_v27  ;;  %v5269_v49 = vadd.f32 %v5268_v13, %v5046_v33  ;;  %v5090_v13 = vadd.f32 %v5089_v41, %v9290_v62 }
 0x3f6   :  { %v5270_v46 = vpop.f32.mrf.mxu1 }
 0x3f7   :  { %5390 = vst [vmem:[#allocation2 + $0x168] sm:$0xff] %v5269_v49  ;;  %v5271_v12 = vadd.f32 %v5270_v46, %v5048_v32  ;;  %v5107_v32 = vpop.f32.mrf.mxu0  ;;  %v5094_v46 = vadd.f32 %v5093_v52, %v9284_v40 }
 0x3f8   :  { %v5272_v21 = vpop.f32.mrf.mxu1 }
 0x3f9   :  { %5391 = vst [vmem:[#allocation2 + $0x170] sm:$0xff] %v5271_v12  ;;  %v5273_v15 = vadd.f32 %v5272_v21, %v5050_v17  ;;  %v5096_v12 = vadd.f32 %v5095_v58, %v9290_v62 }
 0x3fa   :  { %v5276_v8 = vpop.f32.mrf.mxu1 }
 0x3fb   :  { %5392 = vst [vmem:[#allocation2 + $0x178] sm:$0xff] %v5273_v15  ;;  %v5277_v63 = vadd.f32 %v5276_v8, %v5054_v53  ;;  %v5109_v53 = vpop.f32.mrf.mxu0  ;;  %v5098_v15 = vadd.f32 %v5097_v29, %v9284_v40 }
 0x3fc   :  { %v5278_v11 = vpop.f32.mrf.mxu1 }
 0x3fd   :  { %5393 = vst [vmem:[#allocation2 + $0x180] sm:$0xff] %v5277_v63  ;;  %v5279_v24 = vadd.f32 %v5278_v11, %v5056_v25  ;;  %v5100_v63 = vadd.f32 %v5099_v36, %v9290_v62  ;;  %v5113_v11 = vpop.f32.mrf.mxu0 }
 0x3fe   :  { %v5280_v39 = vpop.f32.mrf.mxu1 }
 0x3ff   :  { %5394 = vst [vmem:[#allocation2 + $0x188] sm:$0xff] %v5279_v24  ;;  %v5281_v7 = vadd.f32 %v5280_v39, %v5058_v47  ;;  %v5104_v24 = vadd.f32 %v5103_v16, %v9284_v40 }
 0x400   :  { %v5282_v44 = vpop.f32.mrf.mxu1 }
 0x401   :  { %5395 = vst [vmem:[#allocation2 + $0x190] sm:$0xff] %v5281_v7  ;;  %v5283_v10 = vadd.f32 %v5282_v44, %v5060_v4  ;;  %v5106_v7 = vadd.f32 %v5105_v43, %v9290_v62  ;;  %v5115_v44 = vpop.f32.mrf.mxu0 }
 0x402   :  { %v5286_v23 = vpop.f32.mrf.mxu1 }
 0x403   :  { %5396 = vst [vmem:[#allocation2 + $0x198] sm:$0xff] %v5283_v10  ;;  %v5287_v59 = vadd.f32 %v5286_v23, %v5064_v35  ;;  %v5108_v10 = vadd.f32 %v5107_v32, %v9284_v40 }
 0x404   :  { %v5288_v50 = vpop.f32.mrf.mxu1 }
 0x405   :  { %5397 = vst [vmem:[#allocation2 + $0x1a0] sm:$0xff] %v5287_v59  ;;  %v5289_v48 = vadd.f32 %v5288_v50, %v5066_v57  ;;  %v5110_v59 = vadd.f32 %v5109_v53, %v9290_v62  ;;  %v5117_v50 = vpop.f32.mrf.mxu0 }
 0x406   :  { %v5290_v1 = vpop.f32.mrf.mxu1 }
 0x407   :  { %5398 = vst [vmem:[#allocation2 + $0x1a8] sm:$0xff] %v5289_v48  ;;  %v5291_v42 = vadd.f32 %v5290_v1, %v5068_v26  ;;  %v5114_v48 = vadd.f32 %v5113_v11, %v9284_v40 }
 0x408   :  { %v5292_v19 = vpop.f32.mrf.mxu1 }
 0x409   :  { %5399 = vst [vmem:[#allocation2 + $0x1b0] sm:$0xff] %v5291_v42  ;;  %v5293_v2 = vadd.f32 %v5292_v19, %v5070_v45  ;;  %v5116_v42 = vadd.f32 %v5115_v44, %v9290_v62  ;;  %v5119_v19 = vpop.f32.mrf.mxu0 }
 0x40a   :  { %v5296_v30 = vpop.f32.mrf.mxu1 }
 0x40b   :  { %5400 = vst [vmem:[#allocation2 + $0x1b8] sm:$0xff] %v5293_v2  ;;  %v5297_v14 = vadd.f32 %v5296_v30, %v5074_v55  ;;  %v5118_v2 = vadd.f32 %v5117_v50, %v9284_v40 }
 0x40c   :  { %v5298_v34 = vpop.f32.mrf.mxu1 }
 0x40d   :  { %5401 = vst [vmem:[#allocation2 + $0x1c0] sm:$0xff] %v5297_v14  ;;  %v5299_v37 = vadd.f32 %v5298_v34, %v5076_v20  ;;  %v5120_v14 = vadd.f32 %v5119_v19, %v9290_v62 }
 0x40e   :  { %v5300_v5 = vpop.f32.mrf.mxu1 }
 0x40f   :  { %5402 = vst [vmem:[#allocation2 + $0x1c8] sm:$0xff] %v5299_v37  ;;  %v5301_v3 = vadd.f32 %v5300_v5, %v5078_v31 }
 0x410   :  { %v5302_v51 = vpop.f32.mrf.mxu1 }
 0x411   :  { %5403 = vst [vmem:[#allocation2 + $0x1d0] sm:$0xff] %v5301_v3  ;;  %v5303_v56 = vadd.f32 %v5302_v51, %v5080_v18 }
 0x412   :  { %v5306_v0 = vpop.f32.mrf.mxu1 }
 0x413   :  { %5404 = vst [vmem:[#allocation2 + $0x1d8] sm:$0xff] %v5303_v56  ;;  %v5307_v54 = vadd.f32 %v5306_v0, %v5084_v22 }
 0x414   :  { %v5308_v6 = vpop.f32.mrf.mxu1 }
 0x415   :  { %5405 = vst [vmem:[#allocation2 + $0x1e0] sm:$0xff] %v5307_v54  ;;  %v5309_v33 = vadd.f32 %v5308_v6, %v5086_v9 }
 0x416   :  { %v5310_v27 = vpop.f32.mrf.mxu1 }
 0x417   :  { %5406 = vst [vmem:[#allocation2 + $0x1e8] sm:$0xff] %v5309_v33  ;;  %v5311_v28 = vadd.f32 %v5310_v27, %v5088_v60 }
 0x418   :  { %v5312_v49 = vpop.f32.mrf.mxu1 }
 0x419   :  { %5407 = vst [vmem:[#allocation2 + $0x1f0] sm:$0xff] %v5311_v28  ;;  %v5313_v38 = vadd.f32 %v5312_v49, %v5090_v13 }
 0x41a   :  { %v5316_v17 = vpop.f32.mrf.mxu1 }
 0x41b   :  { %5408 = vst [vmem:[#allocation2 + $0x1f8] sm:$0xff] %v5313_v38  ;;  %v5317_v21 = vadd.f32 %v5316_v17, %v5094_v46 }
 0x41c   :  { %v5318_v61 = vpop.f32.mrf.mxu1 }
 0x41d   :  { %5409 = vst [vmem:[#allocation2 + $0x200] sm:$0xff] %v5317_v21  ;;  %v5319_v8 = vadd.f32 %v5318_v61, %v5096_v12 }
 0x41e   :  { %v5320_v25 = vpop.f32.mrf.mxu1 }
 0x41f   :  { %5410 = vst [vmem:[#allocation2 + $0x208] sm:$0xff] %v5319_v8  ;;  %v5321_v41 = vadd.f32 %v5320_v25, %v5098_v15 }
 0x420   :  { %v5322_v47 = vpop.f32.mrf.mxu1 }
 0x421   :  { %5411 = vst [vmem:[#allocation2 + $0x210] sm:$0xff] %v5321_v41  ;;  %v5323_v39 = vadd.f32 %v5322_v47, %v5100_v63 }
 0x422   :  { %v5326_v4 = vpop.f32.mrf.mxu1 }
 0x423   :  { %5412 = vst [vmem:[#allocation2 + $0x218] sm:$0xff] %v5323_v39  ;;  %v5327_v52 = vadd.f32 %v5326_v4, %v5104_v24 }
 0x424   :  { %v5328_v35 = vpop.f32.mrf.mxu1 }
 0x425   :  { %5413 = vst [vmem:[#allocation2 + $0x220] sm:$0xff] %v5327_v52  ;;  %v5329_v23 = vadd.f32 %v5328_v35, %v5106_v7 }
 0x426   :  { %v5330_v57 = vpop.f32.mrf.mxu1 }
 0x427   :  { %5414 = vst [vmem:[#allocation2 + $0x228] sm:$0xff] %v5329_v23  ;;  %v5331_v58 = vadd.f32 %v5330_v57, %v5108_v10 }
 0x428   :  { %v5332_v26 = vpop.f32.mrf.mxu1 }
 0x429   :  { %5415 = vst [vmem:[#allocation2 + $0x230] sm:$0xff] %v5331_v58  ;;  %v5333_v1 = vadd.f32 %v5332_v26, %v5110_v59 }
 0x42a   :  { %v5336_v45 = vpop.f32.mrf.mxu1 }
 0x42b   :  { %5416 = vst [vmem:[#allocation2 + $0x238] sm:$0xff] %v5333_v1  ;;  %v5337_v29 = vadd.f32 %v5336_v45, %v5114_v48 }
 0x42c   :  { %v5338_v55 = vpop.f32.mrf.mxu1 }
 0x42d   :  { %5417 = vst [vmem:[#allocation2 + $0x240] sm:$0xff] %v5337_v29  ;;  %v5339_v30 = vadd.f32 %v5338_v55, %v5116_v42 }
 0x42e   :  { %v5340_v20 = vpop.f32.mrf.mxu1 }
 0x42f   :  { %5418 = vst [vmem:[#allocation2 + $0x248] sm:$0xff] %v5339_v30  ;;  %v5341_v36 = vadd.f32 %v5340_v20, %v5118_v2 }
 0x430   :  { %v5342_v34 = vpop.f32.mrf.mxu1 }
 0x431   :  { %5419 = vst [vmem:[#allocation2 + $0x250] sm:$0xff] %v5341_v36  ;;  %v5343_v31 = vadd.f32 %v5342_v34, %v5120_v14 }
 0x433   :  { %5420 = vst [vmem:[#allocation2 + $0x258] sm:$0xff] %v5343_v31 }
 0x434   :  { %6404 = shalt.err (!%p6401_p4)
}
 0x435   :  { %s6416_s27 = smov 256   ;;  %s6417_s28 = smov 16  }
 0x436   :  { %5432 = dma.vmem_to_hbm [thread:$0]  %s5427_s25, 9728, %s9502_s5, [#allocation3], %s6416_s27, %s6416_s27, %s6417_s28  }
 0x437   :  { %6413 = dma.done.wait [#allocation3], 9728  }
 0x438   :  { %6414 = vsyncadd [#allocation3], 4294957568 }
 0x439   :  { %5436 = vsyncpa [#allocation3], 1 }

</bundles_post_ra>
